<compile_context>
chip_gen: v7x
topology: tpu7x:2x2x1
jax: 0.10.0
libtpu: 0.0.40
codegen_flags: <defaults>
</compile_context>

<pallas_src>
import jax
import jax.numpy as jnp
import numpy as np
from jax.experimental import pallas as pl
from jax.experimental.pallas import tpu as pltpu

NEG_INF = -1e9
LN_EPS = 1e-5
_SQRT1_2 = 0.7071067811865476


# ---------------------------------------------------------------------------
# Small math helpers (pure jnp -> usable inside the kernel and in the reference)
# ---------------------------------------------------------------------------
def _ln(v, gamma):
    mu = jnp.mean(v, axis=-1, keepdims=True)
    c = v - mu
    var = jnp.mean(c * c, axis=-1, keepdims=True)
    return c * jax.lax.rsqrt(var + LN_EPS) * gamma


def _erf(z):
    # Abramowitz & Stegun 7.1.26, max abs error 1.5e-7; only exp/mul/add/div ops.
    a1, a2, a3, a4, a5, p = (0.254829592, -0.284496736, 1.421413741,
                             -1.453152027, 1.061405429, 0.3275911)
    az = jnp.abs(z)
    t = 1.0 / (1.0 + p * az)
    poly = ((((a5 * t + a4) * t + a3) * t + a2) * t + a1) * t
    e = 1.0 - poly * jnp.exp(-az * az)
    return jnp.where(z < 0.0, -e, e)


def _gelu_exact(v):
    return 0.5 * v * (1.0 + _erf(v * _SQRT1_2))


# ---------------------------------------------------------------------------
# Fused whole-block Pallas kernel (all layers in one call)
# ---------------------------------------------------------------------------
def make_block_kernel(B, S, T, D, heads, depth, has_rel):
    dh = D // heads
    N_LAYER_ARGS = 10
    bf16, f32 = jnp.bfloat16, jnp.float32

    def kernel(*refs):
        x_ref, ctx_ref, msa_ref, mcr_ref = refs[:4]
        idx = 4
        rel_ref = None
        if has_rel:
            rel_ref = refs[idx]
            idx += 1
        g_sa_ref, g_cr_ref, g_out_ref = refs[idx:idx + 3]
        idx += 3
        layers = [refs[idx + l * N_LAYER_ARGS: idx + (l + 1) * N_LAYER_ARGS]
                  for l in range(depth)]
        idx += depth * N_LAYER_ARGS
        o_ref = refs[idx]
        scr = refs[idx + 1]                      # (B*S, D) f32 VMEM scratch

        x = x_ref[...].astype(f32)               # residual stream stays f32 in vregs
        ctx_bf = ctx_ref[...].astype(bf16)       # context only ever feeds the MXU
        g_sa = g_sa_ref[...]
        g_cr = g_cr_ref[...]
        g_out = g_out_ref[...]

        for (wqkv1_r, wo1_r, wq2_r, wkv2_r, wo2_r,
             nk_r, nv_r, w1_r, ffg_r, w2_r) in layers:

            # ---- self-attention (residual on the NORMED x, as in the module) ----
            xn = _ln(x, g_sa)
            qkv = jnp.dot(xn.astype(bf16), wqkv1_r[...],
                          preferred_element_type=f32)            # (B*S, 3D), q pre-scaled
            for b in range(B):
                qkv_b = qkv[b * S:(b + 1) * S]
                bias = msa_ref[b]                                # (1, S)
                for h in range(heads):
                    qh = qkv_b[:, h * dh:(h + 1) * dh]
                    kh = qkv_b[:, D + h * dh:D + (h + 1) * dh]
                    vh = qkv_b[:, 2 * D + h * dh:2 * D + (h + 1) * dh]
                    s = jax.lax.dot_general(
                        qh.astype(bf16), kh.astype(bf16),
                        (((1,), (1,)), ((), ())),
                        preferred_element_type=f32) + bias       # (S, S)
                    if rel_ref is not None:
                        s = s + rel_ref[h]
                    m = jnp.max(s, axis=-1, keepdims=True)
                    p = jnp.exp(s - m)
                    inv = pl.reciprocal(jnp.sum(p, axis=-1, keepdims=True), approx=True)
                    oh = jnp.dot(p.astype(bf16), vh.astype(bf16),
                                 preferred_element_type=f32) * inv
                    scr[b * S:(b + 1) * S, h * dh:(h + 1) * dh] = oh
            x = jnp.dot(scr[...].astype(bf16), wo1_r[...],
                        preferred_element_type=f32) + xn         # one Wo matmul, all b,h

            # ---- cross-attention (null K/V folded as rank-1 softmax correction) ----
            xn2 = _ln(x, g_cr)
            q2 = jnp.dot(xn2.astype(bf16), wq2_r[...], preferred_element_type=f32)
            kv2 = jnp.dot(ctx_bf, wkv2_r[...], preferred_element_type=f32)   # (B*T, 2D)
            nk = nk_r[...]                                        # (heads, dh) f32
            nv = nv_r[...]
            for b in range(B):
                q2b = q2[b * S:(b + 1) * S]
                kvb = kv2[b * T:(b + 1) * T]
                bias = mcr_ref[b]                                 # (1, T)
                for h in range(heads):
                    qh = q2b[:, h * dh:(h + 1) * dh]
                    kh = kvb[:, h * dh:(h + 1) * dh]
                    vh = kvb[:, D + h * dh:D + (h + 1) * dh]
                    nk_h = nk[h:h + 1, :]                         # (1, dh)
                    nv_h = nv[h:h + 1, :]
                    s = jax.lax.dot_general(
                        qh.astype(bf16), kh.astype(bf16),
                        (((1,), (1,)), ((), ())),
                        preferred_element_type=f32) + bias        # (S, T)
                    s_null = jnp.sum(qh * nk_h, axis=-1, keepdims=True)       # (S, 1)
                    m = jnp.maximum(jnp.max(s, axis=-1, keepdims=True), s_null)
                    p = jnp.exp(s - m)
                    p_null = jnp.exp(s_null - m)
                    inv = pl.reciprocal(jnp.sum(p, axis=-1, keepdims=True) + p_null,
                                        approx=True)
                    oh = (jnp.dot(p.astype(bf16), vh.astype(bf16),
                                  preferred_element_type=f32)
                          + p_null * nv_h) * inv
                    scr[b * S:(b + 1) * S, h * dh:(h + 1) * dh] = oh
            x = jnp.dot(scr[...].astype(bf16), wo2_r[...],
                        preferred_element_type=f32) + x

            # ---- FF (Linear -> GELU -> LN -> Linear) + residual + out-norm ----
            h1 = jnp.dot(x.astype(bf16), w1_r[...], preferred_element_type=f32)
            h1 = _ln(_gelu_exact(h1), ffg_r[...])                 # (B*S, 4D), lane-dense
            ff = jnp.dot(h1.astype(bf16), w2_r[...], preferred_element_type=f32)
            x = _ln(ff + x, g_out)

        o_ref[...] = x.astype(o_ref.dtype)                        # single HBM writeback

    return kernel


# ---------------------------------------------------------------------------
# Forward pass: ONE fused pallas_call for the whole block
# ---------------------------------------------------------------------------
def transformer_block_forward(x, mask, context, context_mask, params, *, heads,
                              rel_pos=None):
    B, S, D = x.shape
    T = context.shape[1]
    dh = D // heads
    scale = dh ** -0.5
    has_rel = rel_pos is not None
    depth = len(params["layers"])
    bf16 = jnp.bfloat16

    # boolean masks (True = valid) -> additive f32 biases (null key is never masked)
    mask_sa = jnp.where(mask, 0.0, NEG_INF).astype(jnp.float32)[:, None, :]          # (B,1,S)
    mask_cr = jnp.where(context_mask, 0.0, NEG_INF).astype(jnp.float32)[:, None, :]  # (B,1,T)

    inputs = [x.reshape(B * S, D), context.reshape(B * T, D), mask_sa, mask_cr]
    if has_rel:
        inputs.append(rel_pos.astype(jnp.float32))
    inputs += [params["gamma_sa"], params["gamma_cross"], params["gamma_out"]]
    for layer in params["layers"]:
        wq1, wk1, wv1, wo1 = layer["attn_w"]
        wq2, wk2, wv2, wo2 = layer["cross_w"]
        inputs += [
            jnp.concatenate([wq1 * scale, wk1, wv1], axis=1).astype(bf16),  # (D, 3D)
            wo1.astype(bf16),
            (wq2 * scale).astype(bf16),
            jnp.concatenate([wk2, wv2], axis=1).astype(bf16),               # (D, 2D)
            wo2.astype(bf16),
            layer["null_k"].astype(jnp.float32),                            # (H, dh)
            layer["null_v"].astype(jnp.float32),
            layer["ff_w1"].astype(bf16),
            layer["ff_gamma"],
            layer["ff_w2"].astype(bf16),
        ]

    kernel = make_block_kernel(B, S, T, D, heads, depth, has_rel)
    vmem = pltpu.MemorySpace.VMEM
    out2d = pl.pallas_call(
        kernel,
        out_shape=jax.ShapeDtypeStruct((B * S, D), x.dtype),
        in_specs=[pl.BlockSpec(memory_space=vmem) for _ in inputs],
        out_specs=pl.BlockSpec(memory_space=vmem),
        scratch_shapes=[pltpu.VMEM((B * S, D), jnp.float32)],
    )(*inputs)
    return out2d.reshape(B, S, D)


# ---------------------------------------------------------------------------
# Pure-JAX reference (same math, f32 "highest" precision) for correctness check
# ---------------------------------------------------------------------------
def _ref_mha(xq, xkv, mask_bias, rel, wq, wk, wv, wo, nk, nv, heads):
    b, s, d = xq.shape
    t = xkv.shape[1]
    dh = d // heads
    hp = "highest"
    q = jnp.einsum("bsd,de->bse", xq, wq, precision=hp).reshape(b, s, heads, dh) * dh ** -0.5
    k = jnp.einsum("btd,de->bte", xkv, wk, precision=hp).reshape(b, t, heads, dh)
    v = jnp.einsum("btd,de->bte", xkv, wv, precision=hp).reshape(b, t, heads, dh)
    sc = jnp.einsum("bshd,bthd->bhst", q, k, precision=hp)
    sc = sc + mask_bias[:, None, :, :]
    if rel is not None:
        sc = sc + rel[None]
    if nk is not None:
        s_null = jnp.einsum("bshd,hd->bhs", q, nk, precision=hp)[..., None]
        sc = jnp.concatenate([sc, s_null], axis=-1)
    p = jax.nn.softmax(sc, axis=-1)
    if nk is not None:
        out = (jnp.einsum("bhst,bthd->bshd", p[..., :t], v, precision=hp)
               + jnp.einsum("bhs,hd->bshd", p[..., t], nv, precision=hp))
    else:
        out = jnp.einsum("bhst,bthd->bshd", p, v, precision=hp)
    return jnp.einsum("bsd,de->bse", out.reshape(b, s, d), wo, precision=hp)


def _ref_ff(x, w1, gamma, w2):
    hp = "highest"
    h = jnp.einsum("nd,de->ne", x, w1, precision=hp)
    h = jax.nn.gelu(h, approximate=False)
    h = _ln(h, gamma)
    return jnp.einsum("ne,ed->nd", h, w2, precision=hp)


def reference_forward(x, mask, context, context_mask, params, *, heads, rel_pos=None):
    b, s, d = x.shape
    mask_bias = jnp.where(mask, 0.0, NEG_INF).astype(jnp.float32)[:, None, :]
    ctx_bias = jnp.where(context_mask, 0.0, NEG_INF).astype(jnp.float32)[:, None, :]
    for layer in params["layers"]:
        x = _ln(x, params["gamma_sa"])
        x = _ref_mha(x, x, mask_bias, rel_pos, *layer["attn_w"], None, None, heads) + x
        xn = _ln(x, params["gamma_cross"])
        x = _ref_mha(xn, context, ctx_bias, None, *layer["cross_w"],
                     layer["null_k"], layer["null_v"], heads) + x
        ffo = _ref_ff(x.reshape(b * s, d), layer["ff_w1"], layer["ff_gamma"],
                      layer["ff_w2"]).reshape(b, s, d)
        x = _ln(ffo + x, params["gamma_out"])
    return x


# ---------------------------------------------------------------------------
# Deterministic parameter construction (shapes per the module __init__)
# ---------------------------------------------------------------------------
def make_params(key, dim, heads, ff_mult, depth):
    dh = dim // heads
    inner = dim * ff_mult
    layers = []
    for _ in range(depth):
        key, *ks = jax.random.split(key, 13)
        w = lambda k, a, b: jax.random.normal(k, (a, b), jnp.float32) * 0.02
        layers.append({
            "attn_w": (w(ks[0], dim, dim), w(ks[1], dim, dim),
                       w(ks[2], dim, dim), w(ks[3], dim, dim)),
            "cross_w": (w(ks[4], dim, dim), w(ks[5], dim, dim),
                        w(ks[6], dim, dim), w(ks[7], dim, dim)),
            "null_k": jax.random.normal(ks[8], (heads, dh), jnp.float32) * 0.02,
            "null_v": jax.random.normal(ks[9], (heads, dh), jnp.float32) * 0.02,
            "ff_w1": w(ks[10], dim, inner),
            "ff_gamma": jnp.ones((1, inner), jnp.float32),
            "ff_w2": w(ks[11], inner, dim),
        })
    return {
        "layers": layers,
        "gamma_sa": jnp.ones((1, dim), jnp.float32),
        "gamma_cross": jnp.ones((1, dim), jnp.float32),
        "gamma_out": jnp.ones((1, dim), jnp.float32),
    }


# TODO(synk): CustomMHA source not provided; implemented as standard pre-softmax
# scaled dot-product MHA with bias-free q/k/v/out projections, key_padding_mask
# (True = valid), optional learned null key/value (add_null_kv=True) and additive
# rel_pos bias. Dropout p=0.0 -> identity (omitted).

if __name__ == "__main__":
    B, S, T, DIM, HEADS, FF_MULT, DEPTH = 2, 8, 8, 32, 4, 4, 1

    key = jax.random.PRNGKey(0)
    k_x, k_ctx, k_p = jax.random.split(key, 3)
    x = jax.random.normal(k_x, (B, S, DIM), jnp.float32)
    context = jax.random.normal(k_ctx, (B, T, DIM), jnp.float32)

    mask = jnp.ones((B, S), bool).at[1, -2:].set(False)           # True = valid token
    context_mask = jnp.ones((B, T), bool).at[0, -1].set(False)

    params = make_params(k_p, DIM, HEADS, FF_MULT, DEPTH)

    out = transformer_block_forward(x, mask, context, context_mask, params,
                                    heads=HEADS, rel_pos=None)
    out = jax.block_until_ready(out)

    ref = jax.block_until_ready(
        reference_forward(x, mask, context, context_mask, params,
                          heads=HEADS, rel_pos=None))

    # bf16 MXU operands (f32 accumulation) vs. f32-"highest" reference -> ~1e-3 level
    # element-wise error on O(1) outputs; 1e-2 gives comfortable margin.
    np.testing.assert_allclose(np.asarray(out), np.asarray(ref),
                               rtol=1e-2, atol=1e-2)
    assert out.shape == (B, S, DIM)
    print("KERNEL_OK")
</pallas_src>

<mosaic_0001>
module attributes {stable_mosaic.version = 11 : i64} {
  func.func @kernel(%arg0: memref<16x32xf32, #tpu.memory_space<vmem>>, %arg1: memref<16x32xf32, #tpu.memory_space<vmem>>, %arg2: memref<2x1x8xf32, #tpu.memory_space<vmem>>, %arg3: memref<2x1x8xf32, #tpu.memory_space<vmem>>, %arg4: memref<1x32xf32, #tpu.memory_space<vmem>>, %arg5: memref<1x32xf32, #tpu.memory_space<vmem>>, %arg6: memref<1x32xf32, #tpu.memory_space<vmem>>, %arg7: memref<32x96xbf16, #tpu.memory_space<vmem>>, %arg8: memref<32x32xbf16, #tpu.memory_space<vmem>>, %arg9: memref<32x32xbf16, #tpu.memory_space<vmem>>, %arg10: memref<32x64xbf16, #tpu.memory_space<vmem>>, %arg11: memref<32x32xbf16, #tpu.memory_space<vmem>>, %arg12: memref<4x8xf32, #tpu.memory_space<vmem>>, %arg13: memref<4x8xf32, #tpu.memory_space<vmem>>, %arg14: memref<32x128xbf16, #tpu.memory_space<vmem>>, %arg15: memref<1x128xf32, #tpu.memory_space<vmem>>, %arg16: memref<128x32xbf16, #tpu.memory_space<vmem>>, %arg17: memref<16x32xf32, #tpu.memory_space<vmem>>, %arg18: memref<16x32xf32, #tpu.memory_space<vmem>>) attributes {dimension_semantics = [], scalar_prefetch = 0 : i64, scratch_operands = 1 : i64, tpu.core_type = #tpu.core_type<tc>} {
    %c0 = arith.constant 0 : index
    %c0_0 = arith.constant 0 : index
    %0 = vector.load %arg0[%c0, %c0_0] : memref<16x32xf32, #tpu.memory_space<vmem>>, vector<16x32xf32>
    %c0_1 = arith.constant 0 : index
    %c0_2 = arith.constant 0 : index
    %1 = vector.load %arg1[%c0_1, %c0_2] : memref<16x32xf32, #tpu.memory_space<vmem>>, vector<16x32xf32>
    %2 = arith.truncf %1 : vector<16x32xf32> to vector<16x32xbf16>
    %c0_3 = arith.constant 0 : index
    %c0_4 = arith.constant 0 : index
    %3 = vector.load %arg4[%c0_3, %c0_4] : memref<1x32xf32, #tpu.memory_space<vmem>>, vector<1x32xf32>
    %c0_5 = arith.constant 0 : index
    %c0_6 = arith.constant 0 : index
    %4 = vector.load %arg5[%c0_5, %c0_6] : memref<1x32xf32, #tpu.memory_space<vmem>>, vector<1x32xf32>
    %c0_7 = arith.constant 0 : index
    %c0_8 = arith.constant 0 : index
    %5 = vector.load %arg6[%c0_7, %c0_8] : memref<1x32xf32, #tpu.memory_space<vmem>>, vector<1x32xf32>
    %cst = arith.constant dense<0.000000e+00> : vector<16xf32>
    %6 = vector.multi_reduction <add>, %0, %cst [1] : vector<16x32xf32> to vector<16xf32>
    %7 = vector.shape_cast %6 : vector<16xf32> to vector<16x1xf32>
    %cst_9 = arith.constant 3.200000e+01 : f32
    %8 = vector.broadcast %cst_9 : f32 to vector<16x1xf32>
    %9 = arith.divf %7, %8 : vector<16x1xf32>
    %10 = vector.broadcast %9 : vector<16x1xf32> to vector<16x32xf32>
    %11 = arith.subf %0, %10 : vector<16x32xf32>
    %12 = arith.mulf %11, %11 : vector<16x32xf32>
    %cst_10 = arith.constant dense<0.000000e+00> : vector<16xf32>
    %13 = vector.multi_reduction <add>, %12, %cst_10 [1] : vector<16x32xf32> to vector<16xf32>
    %14 = vector.shape_cast %13 : vector<16xf32> to vector<16x1xf32>
    %cst_11 = arith.constant 3.200000e+01 : f32
    %15 = vector.broadcast %cst_11 : f32 to vector<16x1xf32>
    %16 = arith.divf %14, %15 : vector<16x1xf32>
    %cst_12 = arith.constant 9.99999974E-6 : f32
    %17 = vector.broadcast %cst_12 : f32 to vector<16x1xf32>
    %18 = arith.addf %16, %17 : vector<16x1xf32>
    %19 = math.rsqrt %18 : vector<16x1xf32>
    %20 = vector.broadcast %19 : vector<16x1xf32> to vector<16x32xf32>
    %21 = arith.mulf %11, %20 : vector<16x32xf32>
    %22 = vector.broadcast %3 : vector<1x32xf32> to vector<16x32xf32>
    %23 = arith.mulf %21, %22 : vector<16x32xf32>
    %24 = arith.truncf %23 : vector<16x32xf32> to vector<16x32xbf16>
    %c0_13 = arith.constant 0 : index
    %c0_14 = arith.constant 0 : index
    %25 = vector.load %arg7[%c0_13, %c0_14] : memref<32x96xbf16, #tpu.memory_space<vmem>>, vector<32x96xbf16>
    %cst_15 = arith.constant dense<0.000000e+00> : vector<16x96xf32>
    %26 = tpu.matmul %24, %25, %cst_15 {dimension_numbers = #tpu.dot_dimension_numbers<[1], [0], [0], [1], [0, 0, 1, 1], [], []>} : vector<16x32xbf16>, vector<32x96xbf16>, vector<16x96xf32> -> vector<16x96xf32>
    %27 = vector.extract_strided_slice %26 {offsets = [0, 0], sizes = [8, 96], strides = [1, 1]} : vector<16x96xf32> to vector<8x96xf32>
    %c0_16 = arith.constant 0 : index
    %c0_17 = arith.constant 0 : index
    %c0_18 = arith.constant 0 : index
    %28 = vector.load %arg2[%c0_16, %c0_17, %c0_18] : memref<2x1x8xf32, #tpu.memory_space<vmem>>, vector<1x1x8xf32>
    %29 = vector.shape_cast %28 : vector<1x1x8xf32> to vector<1x8xf32>
    %30 = vector.extract_strided_slice %27 {offsets = [0, 0], sizes = [8, 8], strides = [1, 1]} : vector<8x96xf32> to vector<8x8xf32>
    %31 = vector.extract_strided_slice %27 {offsets = [0, 32], sizes = [8, 8], strides = [1, 1]} : vector<8x96xf32> to vector<8x8xf32>
    %32 = vector.extract_strided_slice %27 {offsets = [0, 64], sizes = [8, 8], strides = [1, 1]} : vector<8x96xf32> to vector<8x8xf32>
    %33 = arith.truncf %30 : vector<8x8xf32> to vector<8x8xbf16>
    %34 = arith.truncf %31 : vector<8x8xf32> to vector<8x8xbf16>
    %cst_19 = arith.constant dense<0.000000e+00> : vector<8x8xf32>
    %35 = tpu.matmul %33, %34, %cst_19 {dimension_numbers = #tpu.dot_dimension_numbers<[1], [1], [0], [0], [0, 0, 1, 0], [], []>} : vector<8x8xbf16>, vector<8x8xbf16>, vector<8x8xf32> -> vector<8x8xf32>
    %36 = vector.broadcast %29 : vector<1x8xf32> to vector<8x8xf32>
    %37 = arith.addf %35, %36 : vector<8x8xf32>
    %cst_20 = arith.constant dense<0xFF800000> : vector<8xf32>
    %38 = vector.multi_reduction <maximumf>, %37, %cst_20 [1] : vector<8x8xf32> to vector<8xf32>
    %39 = vector.shape_cast %38 : vector<8xf32> to vector<8x1xf32>
    %40 = vector.broadcast %39 : vector<8x1xf32> to vector<8x8xf32>
    %41 = arith.subf %37, %40 : vector<8x8xf32>
    %42 = math.exp %41 : vector<8x8xf32>
    %cst_21 = arith.constant dense<0.000000e+00> : vector<8xf32>
    %43 = vector.multi_reduction <add>, %42, %cst_21 [1] : vector<8x8xf32> to vector<8xf32>
    %44 = vector.shape_cast %43 : vector<8xf32> to vector<8x1xf32>
    %45 = tpu.reciprocal %44 {approx = true} : vector<8x1xf32> -> vector<8x1xf32>
    %46 = arith.truncf %42 : vector<8x8xf32> to vector<8x8xbf16>
    %47 = arith.truncf %32 : vector<8x8xf32> to vector<8x8xbf16>
    %cst_22 = arith.constant dense<0.000000e+00> : vector<8x8xf32>
    %48 = tpu.matmul %46, %47, %cst_22 {dimension_numbers = #tpu.dot_dimension_numbers<[1], [0], [0], [1], [0, 0, 1, 1], [], []>} : vector<8x8xbf16>, vector<8x8xbf16>, vector<8x8xf32> -> vector<8x8xf32>
    %49 = vector.broadcast %45 : vector<8x1xf32> to vector<8x8xf32>
    %50 = arith.mulf %48, %49 : vector<8x8xf32>
    %c0_23 = arith.constant 0 : index
    %c0_24 = arith.constant 0 : index
    %51 = vector.load %arg18[%c0_23, %c0_24] : memref<16x32xf32, #tpu.memory_space<vmem>>, vector<8x8xf32>
    tpu.vector_store %arg18[%c0_23, %c0_24], %50 {strides = array<i32>} : memref<16x32xf32, #tpu.memory_space<vmem>>, vector<8x8xf32>,
    %52 = vector.extract_strided_slice %27 {offsets = [0, 8], sizes = [8, 8], strides = [1, 1]} : vector<8x96xf32> to vector<8x8xf32>
    %53 = vector.extract_strided_slice %27 {offsets = [0, 40], sizes = [8, 8], strides = [1, 1]} : vector<8x96xf32> to vector<8x8xf32>
    %54 = vector.extract_strided_slice %27 {offsets = [0, 72], sizes = [8, 8], strides = [1, 1]} : vector<8x96xf32> to vector<8x8xf32>
    %55 = arith.truncf %52 : vector<8x8xf32> to vector<8x8xbf16>
    %56 = arith.truncf %53 : vector<8x8xf32> to vector<8x8xbf16>
    %cst_25 = arith.constant dense<0.000000e+00> : vector<8x8xf32>
    %57 = tpu.matmul %55, %56, %cst_25 {dimension_numbers = #tpu.dot_dimension_numbers<[1], [1], [0], [0], [0, 0, 1, 0], [], []>} : vector<8x8xbf16>, vector<8x8xbf16>, vector<8x8xf32> -> vector<8x8xf32>
    %58 = vector.broadcast %29 : vector<1x8xf32> to vector<8x8xf32>
    %59 = arith.addf %57, %58 : vector<8x8xf32>
    %cst_26 = arith.constant dense<0xFF800000> : vector<8xf32>
    %60 = vector.multi_reduction <maximumf>, %59, %cst_26 [1] : vector<8x8xf32> to vector<8xf32>
    %61 = vector.shape_cast %60 : vector<8xf32> to vector<8x1xf32>
    %62 = vector.broadcast %61 : vector<8x1xf32> to vector<8x8xf32>
    %63 = arith.subf %59, %62 : vector<8x8xf32>
    %64 = math.exp %63 : vector<8x8xf32>
    %cst_27 = arith.constant dense<0.000000e+00> : vector<8xf32>
    %65 = vector.multi_reduction <add>, %64, %cst_27 [1] : vector<8x8xf32> to vector<8xf32>
    %66 = vector.shape_cast %65 : vector<8xf32> to vector<8x1xf32>
    %67 = tpu.reciprocal %66 {approx = true} : vector<8x1xf32> -> vector<8x1xf32>
    %68 = arith.truncf %64 : vector<8x8xf32> to vector<8x8xbf16>
    %69 = arith.truncf %54 : vector<8x8xf32> to vector<8x8xbf16>
    %cst_28 = arith.constant dense<0.000000e+00> : vector<8x8xf32>
    %70 = tpu.matmul %68, %69, %cst_28 {dimension_numbers = #tpu.dot_dimension_numbers<[1], [0], [0], [1], [0, 0, 1, 1], [], []>} : vector<8x8xbf16>, vector<8x8xbf16>, vector<8x8xf32> -> vector<8x8xf32>
    %71 = vector.broadcast %67 : vector<8x1xf32> to vector<8x8xf32>
    %72 = arith.mulf %70, %71 : vector<8x8xf32>
    %c0_29 = arith.constant 0 : index
    %c8 = arith.constant 8 : index
    %73 = vector.load %arg18[%c0_29, %c8] : memref<16x32xf32, #tpu.memory_space<vmem>>, vector<8x8xf32>
    tpu.vector_store %arg18[%c0_29, %c8], %72 {strides = array<i32>} : memref<16x32xf32, #tpu.memory_space<vmem>>, vector<8x8xf32>,
    %74 = vector.extract_strided_slice %27 {offsets = [0, 16], sizes = [8, 8], strides = [1, 1]} : vector<8x96xf32> to vector<8x8xf32>
    %75 = vector.extract_strided_slice %27 {offsets = [0, 48], sizes = [8, 8], strides = [1, 1]} : vector<8x96xf32> to vector<8x8xf32>
    %76 = vector.extract_strided_slice %27 {offsets = [0, 80], sizes = [8, 8], strides = [1, 1]} : vector<8x96xf32> to vector<8x8xf32>
    %77 = arith.truncf %74 : vector<8x8xf32> to vector<8x8xbf16>
    %78 = arith.truncf %75 : vector<8x8xf32> to vector<8x8xbf16>
    %cst_30 = arith.constant dense<0.000000e+00> : vector<8x8xf32>
    %79 = tpu.matmul %77, %78, %cst_30 {dimension_numbers = #tpu.dot_dimension_numbers<[1], [1], [0], [0], [0, 0, 1, 0], [], []>} : vector<8x8xbf16>, vector<8x8xbf16>, vector<8x8xf32> -> vector<8x8xf32>
    %80 = vector.broadcast %29 : vector<1x8xf32> to vector<8x8xf32>
    %81 = arith.addf %79, %80 : vector<8x8xf32>
    %cst_31 = arith.constant dense<0xFF800000> : vector<8xf32>
    %82 = vector.multi_reduction <maximumf>, %81, %cst_31 [1] : vector<8x8xf32> to vector<8xf32>
    %83 = vector.shape_cast %82 : vector<8xf32> to vector<8x1xf32>
    %84 = vector.broadcast %83 : vector<8x1xf32> to vector<8x8xf32>
    %85 = arith.subf %81, %84 : vector<8x8xf32>
    %86 = math.exp %85 : vector<8x8xf32>
    %cst_32 = arith.constant dense<0.000000e+00> : vector<8xf32>
    %87 = vector.multi_reduction <add>, %86, %cst_32 [1] : vector<8x8xf32> to vector<8xf32>
    %88 = vector.shape_cast %87 : vector<8xf32> to vector<8x1xf32>
    %89 = tpu.reciprocal %88 {approx = true} : vector<8x1xf32> -> vector<8x1xf32>
    %90 = arith.truncf %86 : vector<8x8xf32> to vector<8x8xbf16>
    %91 = arith.truncf %76 : vector<8x8xf32> to vector<8x8xbf16>
    %cst_33 = arith.constant dense<0.000000e+00> : vector<8x8xf32>
    %92 = tpu.matmul %90, %91, %cst_33 {dimension_numbers = #tpu.dot_dimension_numbers<[1], [0], [0], [1], [0, 0, 1, 1], [], []>} : vector<8x8xbf16>, vector<8x8xbf16>, vector<8x8xf32> -> vector<8x8xf32>
    %93 = vector.broadcast %89 : vector<8x1xf32> to vector<8x8xf32>
    %94 = arith.mulf %92, %93 : vector<8x8xf32>
    %c0_34 = arith.constant 0 : index
    %c16 = arith.constant 16 : index
    %95 = vector.load %arg18[%c0_34, %c16] : memref<16x32xf32, #tpu.memory_space<vmem>>, vector<8x8xf32>
    tpu.vector_store %arg18[%c0_34, %c16], %94 {strides = array<i32>} : memref<16x32xf32, #tpu.memory_space<vmem>>, vector<8x8xf32>,
    %96 = vector.extract_strided_slice %27 {offsets = [0, 24], sizes = [8, 8], strides = [1, 1]} : vector<8x96xf32> to vector<8x8xf32>
    %97 = vector.extract_strided_slice %27 {offsets = [0, 56], sizes = [8, 8], strides = [1, 1]} : vector<8x96xf32> to vector<8x8xf32>
    %98 = vector.extract_strided_slice %27 {offsets = [0, 88], sizes = [8, 8], strides = [1, 1]} : vector<8x96xf32> to vector<8x8xf32>
    %99 = arith.truncf %96 : vector<8x8xf32> to vector<8x8xbf16>
    %100 = arith.truncf %97 : vector<8x8xf32> to vector<8x8xbf16>
    %cst_35 = arith.constant dense<0.000000e+00> : vector<8x8xf32>
    %101 = tpu.matmul %99, %100, %cst_35 {dimension_numbers = #tpu.dot_dimension_numbers<[1], [1], [0], [0], [0, 0, 1, 0], [], []>} : vector<8x8xbf16>, vector<8x8xbf16>, vector<8x8xf32> -> vector<8x8xf32>
    %102 = vector.broadcast %29 : vector<1x8xf32> to vector<8x8xf32>
    %103 = arith.addf %101, %102 : vector<8x8xf32>
    %cst_36 = arith.constant dense<0xFF800000> : vector<8xf32>
    %104 = vector.multi_reduction <maximumf>, %103, %cst_36 [1] : vector<8x8xf32> to vector<8xf32>
    %105 = vector.shape_cast %104 : vector<8xf32> to vector<8x1xf32>
    %106 = vector.broadcast %105 : vector<8x1xf32> to vector<8x8xf32>
    %107 = arith.subf %103, %106 : vector<8x8xf32>
    %108 = math.exp %107 : vector<8x8xf32>
    %cst_37 = arith.constant dense<0.000000e+00> : vector<8xf32>
    %109 = vector.multi_reduction <add>, %108, %cst_37 [1] : vector<8x8xf32> to vector<8xf32>
    %110 = vector.shape_cast %109 : vector<8xf32> to vector<8x1xf32>
    %111 = tpu.reciprocal %110 {approx = true} : vector<8x1xf32> -> vector<8x1xf32>
    %112 = arith.truncf %108 : vector<8x8xf32> to vector<8x8xbf16>
    %113 = arith.truncf %98 : vector<8x8xf32> to vector<8x8xbf16>
    %cst_38 = arith.constant dense<0.000000e+00> : vector<8x8xf32>
    %114 = tpu.matmul %112, %113, %cst_38 {dimension_numbers = #tpu.dot_dimension_numbers<[1], [0], [0], [1], [0, 0, 1, 1], [], []>} : vector<8x8xbf16>, vector<8x8xbf16>, vector<8x8xf32> -> vector<8x8xf32>
    %115 = vector.broadcast %111 : vector<8x1xf32> to vector<8x8xf32>
    %116 = arith.mulf %114, %115 : vector<8x8xf32>
    %c0_39 = arith.constant 0 : index
    %c24 = arith.constant 24 : index
    %117 = vector.load %arg18[%c0_39, %c24] : memref<16x32xf32, #tpu.memory_space<vmem>>, vector<8x8xf32>
    tpu.vector_store %arg18[%c0_39, %c24], %116 {strides = array<i32>} : memref<16x32xf32, #tpu.memory_space<vmem>>, vector<8x8xf32>,
    %118 = vector.extract_strided_slice %26 {offsets = [8, 0], sizes = [8, 96], strides = [1, 1]} : vector<16x96xf32> to vector<8x96xf32>
    %c1 = arith.constant 1 : index
    %c0_40 = arith.constant 0 : index
    %c0_41 = arith.constant 0 : index
    %119 = vector.load %arg2[%c1, %c0_40, %c0_41] : memref<2x1x8xf32, #tpu.memory_space<vmem>>, vector<1x1x8xf32>
    %120 = vector.shape_cast %119 : vector<1x1x8xf32> to vector<1x8xf32>
    %121 = vector.extract_strided_slice %118 {offsets = [0, 0], sizes = [8, 8], strides = [1, 1]} : vector<8x96xf32> to vector<8x8xf32>
    %122 = vector.extract_strided_slice %118 {offsets = [0, 32], sizes = [8, 8], strides = [1, 1]} : vector<8x96xf32> to vector<8x8xf32>
    %123 = vector.extract_strided_slice %118 {offsets = [0, 64], sizes = [8, 8], strides = [1, 1]} : vector<8x96xf32> to vector<8x8xf32>
    %124 = arith.truncf %121 : vector<8x8xf32> to vector<8x8xbf16>
    %125 = arith.truncf %122 : vector<8x8xf32> to vector<8x8xbf16>
    %cst_42 = arith.constant dense<0.000000e+00> : vector<8x8xf32>
    %126 = tpu.matmul %124, %125, %cst_42 {dimension_numbers = #tpu.dot_dimension_numbers<[1], [1], [0], [0], [0, 0, 1, 0], [], []>} : vector<8x8xbf16>, vector<8x8xbf16>, vector<8x8xf32> -> vector<8x8xf32>
    %127 = vector.broadcast %120 : vector<1x8xf32> to vector<8x8xf32>
    %128 = arith.addf %126, %127 : vector<8x8xf32>
    %cst_43 = arith.constant dense<0xFF800000> : vector<8xf32>
    %129 = vector.multi_reduction <maximumf>, %128, %cst_43 [1] : vector<8x8xf32> to vector<8xf32>
    %130 = vector.shape_cast %129 : vector<8xf32> to vector<8x1xf32>
    %131 = vector.broadcast %130 : vector<8x1xf32> to vector<8x8xf32>
    %132 = arith.subf %128, %131 : vector<8x8xf32>
    %133 = math.exp %132 : vector<8x8xf32>
    %cst_44 = arith.constant dense<0.000000e+00> : vector<8xf32>
    %134 = vector.multi_reduction <add>, %133, %cst_44 [1] : vector<8x8xf32> to vector<8xf32>
    %135 = vector.shape_cast %134 : vector<8xf32> to vector<8x1xf32>
    %136 = tpu.reciprocal %135 {approx = true} : vector<8x1xf32> -> vector<8x1xf32>
    %137 = arith.truncf %133 : vector<8x8xf32> to vector<8x8xbf16>
    %138 = arith.truncf %123 : vector<8x8xf32> to vector<8x8xbf16>
    %cst_45 = arith.constant dense<0.000000e+00> : vector<8x8xf32>
    %139 = tpu.matmul %137, %138, %cst_45 {dimension_numbers = #tpu.dot_dimension_numbers<[1], [0], [0], [1], [0, 0, 1, 1], [], []>} : vector<8x8xbf16>, vector<8x8xbf16>, vector<8x8xf32> -> vector<8x8xf32>
    %140 = vector.broadcast %136 : vector<8x1xf32> to vector<8x8xf32>
    %141 = arith.mulf %139, %140 : vector<8x8xf32>
    %c8_46 = arith.constant 8 : index
    %c0_47 = arith.constant 0 : index
    %142 = vector.load %arg18[%c8_46, %c0_47] : memref<16x32xf32, #tpu.memory_space<vmem>>, vector<8x8xf32>
    tpu.vector_store %arg18[%c8_46, %c0_47], %141 {strides = array<i32>} : memref<16x32xf32, #tpu.memory_space<vmem>>, vector<8x8xf32>,
    %143 = vector.extract_strided_slice %118 {offsets = [0, 8], sizes = [8, 8], strides = [1, 1]} : vector<8x96xf32> to vector<8x8xf32>
    %144 = vector.extract_strided_slice %118 {offsets = [0, 40], sizes = [8, 8], strides = [1, 1]} : vector<8x96xf32> to vector<8x8xf32>
    %145 = vector.extract_strided_slice %118 {offsets = [0, 72], sizes = [8, 8], strides = [1, 1]} : vector<8x96xf32> to vector<8x8xf32>
    %146 = arith.truncf %143 : vector<8x8xf32> to vector<8x8xbf16>
    %147 = arith.truncf %144 : vector<8x8xf32> to vector<8x8xbf16>
    %cst_48 = arith.constant dense<0.000000e+00> : vector<8x8xf32>
    %148 = tpu.matmul %146, %147, %cst_48 {dimension_numbers = #tpu.dot_dimension_numbers<[1], [1], [0], [0], [0, 0, 1, 0], [], []>} : vector<8x8xbf16>, vector<8x8xbf16>, vector<8x8xf32> -> vector<8x8xf32>
    %149 = vector.broadcast %120 : vector<1x8xf32> to vector<8x8xf32>
    %150 = arith.addf %148, %149 : vector<8x8xf32>
    %cst_49 = arith.constant dense<0xFF800000> : vector<8xf32>
    %151 = vector.multi_reduction <maximumf>, %150, %cst_49 [1] : vector<8x8xf32> to vector<8xf32>
    %152 = vector.shape_cast %151 : vector<8xf32> to vector<8x1xf32>
    %153 = vector.broadcast %152 : vector<8x1xf32> to vector<8x8xf32>
    %154 = arith.subf %150, %153 : vector<8x8xf32>
    %155 = math.exp %154 : vector<8x8xf32>
    %cst_50 = arith.constant dense<0.000000e+00> : vector<8xf32>
    %156 = vector.multi_reduction <add>, %155, %cst_50 [1] : vector<8x8xf32> to vector<8xf32>
    %157 = vector.shape_cast %156 : vector<8xf32> to vector<8x1xf32>
    %158 = tpu.reciprocal %157 {approx = true} : vector<8x1xf32> -> vector<8x1xf32>
    %159 = arith.truncf %155 : vector<8x8xf32> to vector<8x8xbf16>
    %160 = arith.truncf %145 : vector<8x8xf32> to vector<8x8xbf16>
    %cst_51 = arith.constant dense<0.000000e+00> : vector<8x8xf32>
    %161 = tpu.matmul %159, %160, %cst_51 {dimension_numbers = #tpu.dot_dimension_numbers<[1], [0], [0], [1], [0, 0, 1, 1], [], []>} : vector<8x8xbf16>, vector<8x8xbf16>, vector<8x8xf32> -> vector<8x8xf32>
    %162 = vector.broadcast %158 : vector<8x1xf32> to vector<8x8xf32>
    %163 = arith.mulf %161, %162 : vector<8x8xf32>
    %c8_52 = arith.constant 8 : index
    %c8_53 = arith.constant 8 : index
    %164 = vector.load %arg18[%c8_52, %c8_53] : memref<16x32xf32, #tpu.memory_space<vmem>>, vector<8x8xf32>
    tpu.vector_store %arg18[%c8_52, %c8_53], %163 {strides = array<i32>} : memref<16x32xf32, #tpu.memory_space<vmem>>, vector<8x8xf32>,
    %165 = vector.extract_strided_slice %118 {offsets = [0, 16], sizes = [8, 8], strides = [1, 1]} : vector<8x96xf32> to vector<8x8xf32>
    %166 = vector.extract_strided_slice %118 {offsets = [0, 48], sizes = [8, 8], strides = [1, 1]} : vector<8x96xf32> to vector<8x8xf32>
    %167 = vector.extract_strided_slice %118 {offsets = [0, 80], sizes = [8, 8], strides = [1, 1]} : vector<8x96xf32> to vector<8x8xf32>
    %168 = arith.truncf %165 : vector<8x8xf32> to vector<8x8xbf16>
    %169 = arith.truncf %166 : vector<8x8xf32> to vector<8x8xbf16>
    %cst_54 = arith.constant dense<0.000000e+00> : vector<8x8xf32>
    %170 = tpu.matmul %168, %169, %cst_54 {dimension_numbers = #tpu.dot_dimension_numbers<[1], [1], [0], [0], [0, 0, 1, 0], [], []>} : vector<8x8xbf16>, vector<8x8xbf16>, vector<8x8xf32> -> vector<8x8xf32>
    %171 = vector.broadcast %120 : vector<1x8xf32> to vector<8x8xf32>
    %172 = arith.addf %170, %171 : vector<8x8xf32>
    %cst_55 = arith.constant dense<0xFF800000> : vector<8xf32>
    %173 = vector.multi_reduction <maximumf>, %172, %cst_55 [1] : vector<8x8xf32> to vector<8xf32>
    %174 = vector.shape_cast %173 : vector<8xf32> to vector<8x1xf32>
    %175 = vector.broadcast %174 : vector<8x1xf32> to vector<8x8xf32>
    %176 = arith.subf %172, %175 : vector<8x8xf32>
    %177 = math.exp %176 : vector<8x8xf32>
    %cst_56 = arith.constant dense<0.000000e+00> : vector<8xf32>
    %178 = vector.multi_reduction <add>, %177, %cst_56 [1] : vector<8x8xf32> to vector<8xf32>
    %179 = vector.shape_cast %178 : vector<8xf32> to vector<8x1xf32>
    %180 = tpu.reciprocal %179 {approx = true} : vector<8x1xf32> -> vector<8x1xf32>
    %181 = arith.truncf %177 : vector<8x8xf32> to vector<8x8xbf16>
    %182 = arith.truncf %167 : vector<8x8xf32> to vector<8x8xbf16>
    %cst_57 = arith.constant dense<0.000000e+00> : vector<8x8xf32>
    %183 = tpu.matmul %181, %182, %cst_57 {dimension_numbers = #tpu.dot_dimension_numbers<[1], [0], [0], [1], [0, 0, 1, 1], [], []>} : vector<8x8xbf16>, vector<8x8xbf16>, vector<8x8xf32> -> vector<8x8xf32>
    %184 = vector.broadcast %180 : vector<8x1xf32> to vector<8x8xf32>
    %185 = arith.mulf %183, %184 : vector<8x8xf32>
    %c8_58 = arith.constant 8 : index
    %c16_59 = arith.constant 16 : index
    %186 = vector.load %arg18[%c8_58, %c16_59] : memref<16x32xf32, #tpu.memory_space<vmem>>, vector<8x8xf32>
    tpu.vector_store %arg18[%c8_58, %c16_59], %185 {strides = array<i32>} : memref<16x32xf32, #tpu.memory_space<vmem>>, vector<8x8xf32>,
    %187 = vector.extract_strided_slice %118 {offsets = [0, 24], sizes = [8, 8], strides = [1, 1]} : vector<8x96xf32> to vector<8x8xf32>
    %188 = vector.extract_strided_slice %118 {offsets = [0, 56], sizes = [8, 8], strides = [1, 1]} : vector<8x96xf32> to vector<8x8xf32>
    %189 = vector.extract_strided_slice %118 {offsets = [0, 88], sizes = [8, 8], strides = [1, 1]} : vector<8x96xf32> to vector<8x8xf32>
    %190 = arith.truncf %187 : vector<8x8xf32> to vector<8x8xbf16>
    %191 = arith.truncf %188 : vector<8x8xf32> to vector<8x8xbf16>
    %cst_60 = arith.constant dense<0.000000e+00> : vector<8x8xf32>
    %192 = tpu.matmul %190, %191, %cst_60 {dimension_numbers = #tpu.dot_dimension_numbers<[1], [1], [0], [0], [0, 0, 1, 0], [], []>} : vector<8x8xbf16>, vector<8x8xbf16>, vector<8x8xf32> -> vector<8x8xf32>
    %193 = vector.broadcast %120 : vector<1x8xf32> to vector<8x8xf32>
    %194 = arith.addf %192, %193 : vector<8x8xf32>
    %cst_61 = arith.constant dense<0xFF800000> : vector<8xf32>
    %195 = vector.multi_reduction <maximumf>, %194, %cst_61 [1] : vector<8x8xf32> to vector<8xf32>
    %196 = vector.shape_cast %195 : vector<8xf32> to vector<8x1xf32>
    %197 = vector.broadcast %196 : vector<8x1xf32> to vector<8x8xf32>
    %198 = arith.subf %194, %197 : vector<8x8xf32>
    %199 = math.exp %198 : vector<8x8xf32>
    %cst_62 = arith.constant dense<0.000000e+00> : vector<8xf32>
    %200 = vector.multi_reduction <add>, %199, %cst_62 [1] : vector<8x8xf32> to vector<8xf32>
    %201 = vector.shape_cast %200 : vector<8xf32> to vector<8x1xf32>
    %202 = tpu.reciprocal %201 {approx = true} : vector<8x1xf32> -> vector<8x1xf32>
    %203 = arith.truncf %199 : vector<8x8xf32> to vector<8x8xbf16>
    %204 = arith.truncf %189 : vector<8x8xf32> to vector<8x8xbf16>
    %cst_63 = arith.constant dense<0.000000e+00> : vector<8x8xf32>
    %205 = tpu.matmul %203, %204, %cst_63 {dimension_numbers = #tpu.dot_dimension_numbers<[1], [0], [0], [1], [0, 0, 1, 1], [], []>} : vector<8x8xbf16>, vector<8x8xbf16>, vector<8x8xf32> -> vector<8x8xf32>
    %206 = vector.broadcast %202 : vector<8x1xf32> to vector<8x8xf32>
    %207 = arith.mulf %205, %206 : vector<8x8xf32>
    %c8_64 = arith.constant 8 : index
    %c24_65 = arith.constant 24 : index
    %208 = vector.load %arg18[%c8_64, %c24_65] : memref<16x32xf32, #tpu.memory_space<vmem>>, vector<8x8xf32>
    tpu.vector_store %arg18[%c8_64, %c24_65], %207 {strides = array<i32>} : memref<16x32xf32, #tpu.memory_space<vmem>>, vector<8x8xf32>,
    %c0_66 = arith.constant 0 : index
    %c0_67 = arith.constant 0 : index
    %209 = vector.load %arg18[%c0_66, %c0_67] : memref<16x32xf32, #tpu.memory_space<vmem>>, vector<16x32xf32>
    %210 = arith.truncf %209 : vector<16x32xf32> to vector<16x32xbf16>
    %c0_68 = arith.constant 0 : index
    %c0_69 = arith.constant 0 : index
    %211 = vector.load %arg8[%c0_68, %c0_69] : memref<32x32xbf16, #tpu.memory_space<vmem>>, vector<32x32xbf16>
    %cst_70 = arith.constant dense<0.000000e+00> : vector<16x32xf32>
    %212 = tpu.matmul %210, %211, %cst_70 {dimension_numbers = #tpu.dot_dimension_numbers<[1], [0], [0], [1], [0, 0, 1, 1], [], []>} : vector<16x32xbf16>, vector<32x32xbf16>, vector<16x32xf32> -> vector<16x32xf32>
    %213 = arith.addf %212, %23 : vector<16x32xf32>
    %cst_71 = arith.constant dense<0.000000e+00> : vector<16xf32>
    %214 = vector.multi_reduction <add>, %213, %cst_71 [1] : vector<16x32xf32> to vector<16xf32>
    %215 = vector.shape_cast %214 : vector<16xf32> to vector<16x1xf32>
    %cst_72 = arith.constant 3.200000e+01 : f32
    %216 = vector.broadcast %cst_72 : f32 to vector<16x1xf32>
    %217 = arith.divf %215, %216 : vector<16x1xf32>
    %218 = vector.broadcast %217 : vector<16x1xf32> to vector<16x32xf32>
    %219 = arith.subf %213, %218 : vector<16x32xf32>
    %220 = arith.mulf %219, %219 : vector<16x32xf32>
    %cst_73 = arith.constant dense<0.000000e+00> : vector<16xf32>
    %221 = vector.multi_reduction <add>, %220, %cst_73 [1] : vector<16x32xf32> to vector<16xf32>
    %222 = vector.shape_cast %221 : vector<16xf32> to vector<16x1xf32>
    %cst_74 = arith.constant 3.200000e+01 : f32
    %223 = vector.broadcast %cst_74 : f32 to vector<16x1xf32>
    %224 = arith.divf %222, %223 : vector<16x1xf32>
    %cst_75 = arith.constant 9.99999974E-6 : f32
    %225 = vector.broadcast %cst_75 : f32 to vector<16x1xf32>
    %226 = arith.addf %224, %225 : vector<16x1xf32>
    %227 = math.rsqrt %226 : vector<16x1xf32>
    %228 = vector.broadcast %227 : vector<16x1xf32> to vector<16x32xf32>
    %229 = arith.mulf %219, %228 : vector<16x32xf32>
    %230 = vector.broadcast %4 : vector<1x32xf32> to vector<16x32xf32>
    %231 = arith.mulf %229, %230 : vector<16x32xf32>
    %232 = arith.truncf %231 : vector<16x32xf32> to vector<16x32xbf16>
    %c0_76 = arith.constant 0 : index
    %c0_77 = arith.constant 0 : index
    %233 = vector.load %arg9[%c0_76, %c0_77] : memref<32x32xbf16, #tpu.memory_space<vmem>>, vector<32x32xbf16>
    %cst_78 = arith.constant dense<0.000000e+00> : vector<16x32xf32>
    %234 = tpu.matmul %232, %233, %cst_78 {dimension_numbers = #tpu.dot_dimension_numbers<[1], [0], [0], [1], [0, 0, 1, 1], [], []>} : vector<16x32xbf16>, vector<32x32xbf16>, vector<16x32xf32> -> vector<16x32xf32>
    %c0_79 = arith.constant 0 : index
    %c0_80 = arith.constant 0 : index
    %235 = vector.load %arg10[%c0_79, %c0_80] : memref<32x64xbf16, #tpu.memory_space<vmem>>, vector<32x64xbf16>
    %cst_81 = arith.constant dense<0.000000e+00> : vector<16x64xf32>
    %236 = tpu.matmul %2, %235, %cst_81 {dimension_numbers = #tpu.dot_dimension_numbers<[1], [0], [0], [1], [0, 0, 1, 1], [], []>} : vector<16x32xbf16>, vector<32x64xbf16>, vector<16x64xf32> -> vector<16x64xf32>
    %c0_82 = arith.constant 0 : index
    %c0_83 = arith.constant 0 : index
    %237 = vector.load %arg12[%c0_82, %c0_83] : memref<4x8xf32, #tpu.memory_space<vmem>>, vector<4x8xf32>
    %c0_84 = arith.constant 0 : index
    %c0_85 = arith.constant 0 : index
    %238 = vector.load %arg13[%c0_84, %c0_85] : memref<4x8xf32, #tpu.memory_space<vmem>>, vector<4x8xf32>
    %239 = vector.extract_strided_slice %234 {offsets = [0, 0], sizes = [8, 32], strides = [1, 1]} : vector<16x32xf32> to vector<8x32xf32>
    %240 = vector.extract_strided_slice %236 {offsets = [0, 0], sizes = [8, 64], strides = [1, 1]} : vector<16x64xf32> to vector<8x64xf32>
    %c0_86 = arith.constant 0 : index
    %c0_87 = arith.constant 0 : index
    %c0_88 = arith.constant 0 : index
    %241 = vector.load %arg3[%c0_86, %c0_87, %c0_88] : memref<2x1x8xf32, #tpu.memory_space<vmem>>, vector<1x1x8xf32>
    %242 = vector.shape_cast %241 : vector<1x1x8xf32> to vector<1x8xf32>
    %243 = vector.extract_strided_slice %239 {offsets = [0, 0], sizes = [8, 8], strides = [1, 1]} : vector<8x32xf32> to vector<8x8xf32>
    %244 = vector.extract_strided_slice %240 {offsets = [0, 0], sizes = [8, 8], strides = [1, 1]} : vector<8x64xf32> to vector<8x8xf32>
    %245 = vector.extract_strided_slice %240 {offsets = [0, 32], sizes = [8, 8], strides = [1, 1]} : vector<8x64xf32> to vector<8x8xf32>
    %246 = vector.extract_strided_slice %237 {offsets = [0, 0], sizes = [1, 8], strides = [1, 1]} : vector<4x8xf32> to vector<1x8xf32>
    %247 = vector.extract_strided_slice %238 {offsets = [0, 0], sizes = [1, 8], strides = [1, 1]} : vector<4x8xf32> to vector<1x8xf32>
    %248 = arith.truncf %243 : vector<8x8xf32> to vector<8x8xbf16>
    %249 = arith.truncf %244 : vector<8x8xf32> to vector<8x8xbf16>
    %cst_89 = arith.constant dense<0.000000e+00> : vector<8x8xf32>
    %250 = tpu.matmul %248, %249, %cst_89 {dimension_numbers = #tpu.dot_dimension_numbers<[1], [1], [0], [0], [0, 0, 1, 0], [], []>} : vector<8x8xbf16>, vector<8x8xbf16>, vector<8x8xf32> -> vector<8x8xf32>
    %251 = vector.broadcast %242 : vector<1x8xf32> to vector<8x8xf32>
    %252 = arith.addf %250, %251 : vector<8x8xf32>
    %253 = vector.broadcast %246 : vector<1x8xf32> to vector<8x8xf32>
    %254 = arith.mulf %243, %253 : vector<8x8xf32>
    %cst_90 = arith.constant dense<0.000000e+00> : vector<8xf32>
    %255 = vector.multi_reduction <add>, %254, %cst_90 [1] : vector<8x8xf32> to vector<8xf32>
    %256 = vector.shape_cast %255 : vector<8xf32> to vector<8x1xf32>
    %cst_91 = arith.constant dense<0xFF800000> : vector<8xf32>
    %257 = vector.multi_reduction <maximumf>, %252, %cst_91 [1] : vector<8x8xf32> to vector<8xf32>
    %258 = vector.shape_cast %257 : vector<8xf32> to vector<8x1xf32>
    %259 = arith.maximumf %258, %256 : vector<8x1xf32>
    %260 = vector.broadcast %259 : vector<8x1xf32> to vector<8x8xf32>
    %261 = arith.subf %252, %260 : vector<8x8xf32>
    %262 = math.exp %261 : vector<8x8xf32>
    %263 = arith.subf %256, %259 : vector<8x1xf32>
    %264 = math.exp %263 : vector<8x1xf32>
    %cst_92 = arith.constant dense<0.000000e+00> : vector<8xf32>
    %265 = vector.multi_reduction <add>, %262, %cst_92 [1] : vector<8x8xf32> to vector<8xf32>
    %266 = vector.shape_cast %265 : vector<8xf32> to vector<8x1xf32>
    %267 = arith.addf %266, %264 : vector<8x1xf32>
    %268 = tpu.reciprocal %267 {approx = true} : vector<8x1xf32> -> vector<8x1xf32>
    %269 = arith.truncf %262 : vector<8x8xf32> to vector<8x8xbf16>
    %270 = arith.truncf %245 : vector<8x8xf32> to vector<8x8xbf16>
    %cst_93 = arith.constant dense<0.000000e+00> : vector<8x8xf32>
    %271 = tpu.matmul %269, %270, %cst_93 {dimension_numbers = #tpu.dot_dimension_numbers<[1], [0], [0], [1], [0, 0, 1, 1], [], []>} : vector<8x8xbf16>, vector<8x8xbf16>, vector<8x8xf32> -> vector<8x8xf32>
    %272 = vector.broadcast %264 : vector<8x1xf32> to vector<8x8xf32>
    %273 = vector.broadcast %247 : vector<1x8xf32> to vector<8x8xf32>
    %274 = arith.mulf %272, %273 : vector<8x8xf32>
    %275 = arith.addf %271, %274 : vector<8x8xf32>
    %276 = vector.broadcast %268 : vector<8x1xf32> to vector<8x8xf32>
    %277 = arith.mulf %275, %276 : vector<8x8xf32>
    %c0_94 = arith.constant 0 : index
    %c0_95 = arith.constant 0 : index
    %278 = vector.load %arg18[%c0_94, %c0_95] : memref<16x32xf32, #tpu.memory_space<vmem>>, vector<8x8xf32>
    tpu.vector_store %arg18[%c0_94, %c0_95], %277 {strides = array<i32>} : memref<16x32xf32, #tpu.memory_space<vmem>>, vector<8x8xf32>,
    %279 = vector.extract_strided_slice %239 {offsets = [0, 8], sizes = [8, 8], strides = [1, 1]} : vector<8x32xf32> to vector<8x8xf32>
    %280 = vector.extract_strided_slice %240 {offsets = [0, 8], sizes = [8, 8], strides = [1, 1]} : vector<8x64xf32> to vector<8x8xf32>
    %281 = vector.extract_strided_slice %240 {offsets = [0, 40], sizes = [8, 8], strides = [1, 1]} : vector<8x64xf32> to vector<8x8xf32>
    %282 = vector.extract_strided_slice %237 {offsets = [1, 0], sizes = [1, 8], strides = [1, 1]} : vector<4x8xf32> to vector<1x8xf32>
    %283 = vector.extract_strided_slice %238 {offsets = [1, 0], sizes = [1, 8], strides = [1, 1]} : vector<4x8xf32> to vector<1x8xf32>
    %284 = arith.truncf %279 : vector<8x8xf32> to vector<8x8xbf16>
    %285 = arith.truncf %280 : vector<8x8xf32> to vector<8x8xbf16>
    %cst_96 = arith.constant dense<0.000000e+00> : vector<8x8xf32>
    %286 = tpu.matmul %284, %285, %cst_96 {dimension_numbers = #tpu.dot_dimension_numbers<[1], [1], [0], [0], [0, 0, 1, 0], [], []>} : vector<8x8xbf16>, vector<8x8xbf16>, vector<8x8xf32> -> vector<8x8xf32>
    %287 = vector.broadcast %242 : vector<1x8xf32> to vector<8x8xf32>
    %288 = arith.addf %286, %287 : vector<8x8xf32>
    %289 = vector.broadcast %282 : vector<1x8xf32> to vector<8x8xf32>
    %290 = arith.mulf %279, %289 : vector<8x8xf32>
    %cst_97 = arith.constant dense<0.000000e+00> : vector<8xf32>
    %291 = vector.multi_reduction <add>, %290, %cst_97 [1] : vector<8x8xf32> to vector<8xf32>
    %292 = vector.shape_cast %291 : vector<8xf32> to vector<8x1xf32>
    %cst_98 = arith.constant dense<0xFF800000> : vector<8xf32>
    %293 = vector.multi_reduction <maximumf>, %288, %cst_98 [1] : vector<8x8xf32> to vector<8xf32>
    %294 = vector.shape_cast %293 : vector<8xf32> to vector<8x1xf32>
    %295 = arith.maximumf %294, %292 : vector<8x1xf32>
    %296 = vector.broadcast %295 : vector<8x1xf32> to vector<8x8xf32>
    %297 = arith.subf %288, %296 : vector<8x8xf32>
    %298 = math.exp %297 : vector<8x8xf32>
    %299 = arith.subf %292, %295 : vector<8x1xf32>
    %300 = math.exp %299 : vector<8x1xf32>
    %cst_99 = arith.constant dense<0.000000e+00> : vector<8xf32>
    %301 = vector.multi_reduction <add>, %298, %cst_99 [1] : vector<8x8xf32> to vector<8xf32>
    %302 = vector.shape_cast %301 : vector<8xf32> to vector<8x1xf32>
    %303 = arith.addf %302, %300 : vector<8x1xf32>
    %304 = tpu.reciprocal %303 {approx = true} : vector<8x1xf32> -> vector<8x1xf32>
    %305 = arith.truncf %298 : vector<8x8xf32> to vector<8x8xbf16>
    %306 = arith.truncf %281 : vector<8x8xf32> to vector<8x8xbf16>
    %cst_100 = arith.constant dense<0.000000e+00> : vector<8x8xf32>
    %307 = tpu.matmul %305, %306, %cst_100 {dimension_numbers = #tpu.dot_dimension_numbers<[1], [0], [0], [1], [0, 0, 1, 1], [], []>} : vector<8x8xbf16>, vector<8x8xbf16>, vector<8x8xf32> -> vector<8x8xf32>
    %308 = vector.broadcast %300 : vector<8x1xf32> to vector<8x8xf32>
    %309 = vector.broadcast %283 : vector<1x8xf32> to vector<8x8xf32>
    %310 = arith.mulf %308, %309 : vector<8x8xf32>
    %311 = arith.addf %307, %310 : vector<8x8xf32>
    %312 = vector.broadcast %304 : vector<8x1xf32> to vector<8x8xf32>
    %313 = arith.mulf %311, %312 : vector<8x8xf32>
    %c0_101 = arith.constant 0 : index
    %c8_102 = arith.constant 8 : index
    %314 = vector.load %arg18[%c0_101, %c8_102] : memref<16x32xf32, #tpu.memory_space<vmem>>, vector<8x8xf32>
    tpu.vector_store %arg18[%c0_101, %c8_102], %313 {strides = array<i32>} : memref<16x32xf32, #tpu.memory_space<vmem>>, vector<8x8xf32>,
    %315 = vector.extract_strided_slice %239 {offsets = [0, 16], sizes = [8, 8], strides = [1, 1]} : vector<8x32xf32> to vector<8x8xf32>
    %316 = vector.extract_strided_slice %240 {offsets = [0, 16], sizes = [8, 8], strides = [1, 1]} : vector<8x64xf32> to vector<8x8xf32>
    %317 = vector.extract_strided_slice %240 {offsets = [0, 48], sizes = [8, 8], strides = [1, 1]} : vector<8x64xf32> to vector<8x8xf32>
    %318 = vector.extract_strided_slice %237 {offsets = [2, 0], sizes = [1, 8], strides = [1, 1]} : vector<4x8xf32> to vector<1x8xf32>
    %319 = vector.extract_strided_slice %238 {offsets = [2, 0], sizes = [1, 8], strides = [1, 1]} : vector<4x8xf32> to vector<1x8xf32>
    %320 = arith.truncf %315 : vector<8x8xf32> to vector<8x8xbf16>
    %321 = arith.truncf %316 : vector<8x8xf32> to vector<8x8xbf16>
    %cst_103 = arith.constant dense<0.000000e+00> : vector<8x8xf32>
    %322 = tpu.matmul %320, %321, %cst_103 {dimension_numbers = #tpu.dot_dimension_numbers<[1], [1], [0], [0], [0, 0, 1, 0], [], []>} : vector<8x8xbf16>, vector<8x8xbf16>, vector<8x8xf32> -> vector<8x8xf32>
    %323 = vector.broadcast %242 : vector<1x8xf32> to vector<8x8xf32>
    %324 = arith.addf %322, %323 : vector<8x8xf32>
    %325 = vector.broadcast %318 : vector<1x8xf32> to vector<8x8xf32>
    %326 = arith.mulf %315, %325 : vector<8x8xf32>
    %cst_104 = arith.constant dense<0.000000e+00> : vector<8xf32>
    %327 = vector.multi_reduction <add>, %326, %cst_104 [1] : vector<8x8xf32> to vector<8xf32>
    %328 = vector.shape_cast %327 : vector<8xf32> to vector<8x1xf32>
    %cst_105 = arith.constant dense<0xFF800000> : vector<8xf32>
    %329 = vector.multi_reduction <maximumf>, %324, %cst_105 [1] : vector<8x8xf32> to vector<8xf32>
    %330 = vector.shape_cast %329 : vector<8xf32> to vector<8x1xf32>
    %331 = arith.maximumf %330, %328 : vector<8x1xf32>
    %332 = vector.broadcast %331 : vector<8x1xf32> to vector<8x8xf32>
    %333 = arith.subf %324, %332 : vector<8x8xf32>
    %334 = math.exp %333 : vector<8x8xf32>
    %335 = arith.subf %328, %331 : vector<8x1xf32>
    %336 = math.exp %335 : vector<8x1xf32>
    %cst_106 = arith.constant dense<0.000000e+00> : vector<8xf32>
    %337 = vector.multi_reduction <add>, %334, %cst_106 [1] : vector<8x8xf32> to vector<8xf32>
    %338 = vector.shape_cast %337 : vector<8xf32> to vector<8x1xf32>
    %339 = arith.addf %338, %336 : vector<8x1xf32>
    %340 = tpu.reciprocal %339 {approx = true} : vector<8x1xf32> -> vector<8x1xf32>
    %341 = arith.truncf %334 : vector<8x8xf32> to vector<8x8xbf16>
    %342 = arith.truncf %317 : vector<8x8xf32> to vector<8x8xbf16>
    %cst_107 = arith.constant dense<0.000000e+00> : vector<8x8xf32>
    %343 = tpu.matmul %341, %342, %cst_107 {dimension_numbers = #tpu.dot_dimension_numbers<[1], [0], [0], [1], [0, 0, 1, 1], [], []>} : vector<8x8xbf16>, vector<8x8xbf16>, vector<8x8xf32> -> vector<8x8xf32>
    %344 = vector.broadcast %336 : vector<8x1xf32> to vector<8x8xf32>
    %345 = vector.broadcast %319 : vector<1x8xf32> to vector<8x8xf32>
    %346 = arith.mulf %344, %345 : vector<8x8xf32>
    %347 = arith.addf %343, %346 : vector<8x8xf32>
    %348 = vector.broadcast %340 : vector<8x1xf32> to vector<8x8xf32>
    %349 = arith.mulf %347, %348 : vector<8x8xf32>
    %c0_108 = arith.constant 0 : index
    %c16_109 = arith.constant 16 : index
    %350 = vector.load %arg18[%c0_108, %c16_109] : memref<16x32xf32, #tpu.memory_space<vmem>>, vector<8x8xf32>
    tpu.vector_store %arg18[%c0_108, %c16_109], %349 {strides = array<i32>} : memref<16x32xf32, #tpu.memory_space<vmem>>, vector<8x8xf32>,
    %351 = vector.extract_strided_slice %239 {offsets = [0, 24], sizes = [8, 8], strides = [1, 1]} : vector<8x32xf32> to vector<8x8xf32>
    %352 = vector.extract_strided_slice %240 {offsets = [0, 24], sizes = [8, 8], strides = [1, 1]} : vector<8x64xf32> to vector<8x8xf32>
    %353 = vector.extract_strided_slice %240 {offsets = [0, 56], sizes = [8, 8], strides = [1, 1]} : vector<8x64xf32> to vector<8x8xf32>
    %354 = vector.extract_strided_slice %237 {offsets = [3, 0], sizes = [1, 8], strides = [1, 1]} : vector<4x8xf32> to vector<1x8xf32>
    %355 = vector.extract_strided_slice %238 {offsets = [3, 0], sizes = [1, 8], strides = [1, 1]} : vector<4x8xf32> to vector<1x8xf32>
    %356 = arith.truncf %351 : vector<8x8xf32> to vector<8x8xbf16>
    %357 = arith.truncf %352 : vector<8x8xf32> to vector<8x8xbf16>
    %cst_110 = arith.constant dense<0.000000e+00> : vector<8x8xf32>
    %358 = tpu.matmul %356, %357, %cst_110 {dimension_numbers = #tpu.dot_dimension_numbers<[1], [1], [0], [0], [0, 0, 1, 0], [], []>} : vector<8x8xbf16>, vector<8x8xbf16>, vector<8x8xf32> -> vector<8x8xf32>
    %359 = vector.broadcast %242 : vector<1x8xf32> to vector<8x8xf32>
    %360 = arith.addf %358, %359 : vector<8x8xf32>
    %361 = vector.broadcast %354 : vector<1x8xf32> to vector<8x8xf32>
    %362 = arith.mulf %351, %361 : vector<8x8xf32>
    %cst_111 = arith.constant dense<0.000000e+00> : vector<8xf32>
    %363 = vector.multi_reduction <add>, %362, %cst_111 [1] : vector<8x8xf32> to vector<8xf32>
    %364 = vector.shape_cast %363 : vector<8xf32> to vector<8x1xf32>
    %cst_112 = arith.constant dense<0xFF800000> : vector<8xf32>
    %365 = vector.multi_reduction <maximumf>, %360, %cst_112 [1] : vector<8x8xf32> to vector<8xf32>
    %366 = vector.shape_cast %365 : vector<8xf32> to vector<8x1xf32>
    %367 = arith.maximumf %366, %364 : vector<8x1xf32>
    %368 = vector.broadcast %367 : vector<8x1xf32> to vector<8x8xf32>
    %369 = arith.subf %360, %368 : vector<8x8xf32>
    %370 = math.exp %369 : vector<8x8xf32>
    %371 = arith.subf %364, %367 : vector<8x1xf32>
    %372 = math.exp %371 : vector<8x1xf32>
    %cst_113 = arith.constant dense<0.000000e+00> : vector<8xf32>
    %373 = vector.multi_reduction <add>, %370, %cst_113 [1] : vector<8x8xf32> to vector<8xf32>
    %374 = vector.shape_cast %373 : vector<8xf32> to vector<8x1xf32>
    %375 = arith.addf %374, %372 : vector<8x1xf32>
    %376 = tpu.reciprocal %375 {approx = true} : vector<8x1xf32> -> vector<8x1xf32>
    %377 = arith.truncf %370 : vector<8x8xf32> to vector<8x8xbf16>
    %378 = arith.truncf %353 : vector<8x8xf32> to vector<8x8xbf16>
    %cst_114 = arith.constant dense<0.000000e+00> : vector<8x8xf32>
    %379 = tpu.matmul %377, %378, %cst_114 {dimension_numbers = #tpu.dot_dimension_numbers<[1], [0], [0], [1], [0, 0, 1, 1], [], []>} : vector<8x8xbf16>, vector<8x8xbf16>, vector<8x8xf32> -> vector<8x8xf32>
    %380 = vector.broadcast %372 : vector<8x1xf32> to vector<8x8xf32>
    %381 = vector.broadcast %355 : vector<1x8xf32> to vector<8x8xf32>
    %382 = arith.mulf %380, %381 : vector<8x8xf32>
    %383 = arith.addf %379, %382 : vector<8x8xf32>
    %384 = vector.broadcast %376 : vector<8x1xf32> to vector<8x8xf32>
    %385 = arith.mulf %383, %384 : vector<8x8xf32>
    %c0_115 = arith.constant 0 : index
    %c24_116 = arith.constant 24 : index
    %386 = vector.load %arg18[%c0_115, %c24_116] : memref<16x32xf32, #tpu.memory_space<vmem>>, vector<8x8xf32>
    tpu.vector_store %arg18[%c0_115, %c24_116], %385 {strides = array<i32>} : memref<16x32xf32, #tpu.memory_space<vmem>>, vector<8x8xf32>,
    %387 = vector.extract_strided_slice %234 {offsets = [8, 0], sizes = [8, 32], strides = [1, 1]} : vector<16x32xf32> to vector<8x32xf32>
    %388 = vector.extract_strided_slice %236 {offsets = [8, 0], sizes = [8, 64], strides = [1, 1]} : vector<16x64xf32> to vector<8x64xf32>
    %c1_117 = arith.constant 1 : index
    %c0_118 = arith.constant 0 : index
    %c0_119 = arith.constant 0 : index
    %389 = vector.load %arg3[%c1_117, %c0_118, %c0_119] : memref<2x1x8xf32, #tpu.memory_space<vmem>>, vector<1x1x8xf32>
    %390 = vector.shape_cast %389 : vector<1x1x8xf32> to vector<1x8xf32>
    %391 = vector.extract_strided_slice %387 {offsets = [0, 0], sizes = [8, 8], strides = [1, 1]} : vector<8x32xf32> to vector<8x8xf32>
    %392 = vector.extract_strided_slice %388 {offsets = [0, 0], sizes = [8, 8], strides = [1, 1]} : vector<8x64xf32> to vector<8x8xf32>
    %393 = vector.extract_strided_slice %388 {offsets = [0, 32], sizes = [8, 8], strides = [1, 1]} : vector<8x64xf32> to vector<8x8xf32>
    %394 = vector.extract_strided_slice %237 {offsets = [0, 0], sizes = [1, 8], strides = [1, 1]} : vector<4x8xf32> to vector<1x8xf32>
    %395 = vector.extract_strided_slice %238 {offsets = [0, 0], sizes = [1, 8], strides = [1, 1]} : vector<4x8xf32> to vector<1x8xf32>
    %396 = arith.truncf %391 : vector<8x8xf32> to vector<8x8xbf16>
    %397 = arith.truncf %392 : vector<8x8xf32> to vector<8x8xbf16>
    %cst_120 = arith.constant dense<0.000000e+00> : vector<8x8xf32>
    %398 = tpu.matmul %396, %397, %cst_120 {dimension_numbers = #tpu.dot_dimension_numbers<[1], [1], [0], [0], [0, 0, 1, 0], [], []>} : vector<8x8xbf16>, vector<8x8xbf16>, vector<8x8xf32> -> vector<8x8xf32>
    %399 = vector.broadcast %390 : vector<1x8xf32> to vector<8x8xf32>
    %400 = arith.addf %398, %399 : vector<8x8xf32>
    %401 = vector.broadcast %394 : vector<1x8xf32> to vector<8x8xf32>
    %402 = arith.mulf %391, %401 : vector<8x8xf32>
    %cst_121 = arith.constant dense<0.000000e+00> : vector<8xf32>
    %403 = vector.multi_reduction <add>, %402, %cst_121 [1] : vector<8x8xf32> to vector<8xf32>
    %404 = vector.shape_cast %403 : vector<8xf32> to vector<8x1xf32>
    %cst_122 = arith.constant dense<0xFF800000> : vector<8xf32>
    %405 = vector.multi_reduction <maximumf>, %400, %cst_122 [1] : vector<8x8xf32> to vector<8xf32>
    %406 = vector.shape_cast %405 : vector<8xf32> to vector<8x1xf32>
    %407 = arith.maximumf %406, %404 : vector<8x1xf32>
    %408 = vector.broadcast %407 : vector<8x1xf32> to vector<8x8xf32>
    %409 = arith.subf %400, %408 : vector<8x8xf32>
    %410 = math.exp %409 : vector<8x8xf32>
    %411 = arith.subf %404, %407 : vector<8x1xf32>
    %412 = math.exp %411 : vector<8x1xf32>
    %cst_123 = arith.constant dense<0.000000e+00> : vector<8xf32>
    %413 = vector.multi_reduction <add>, %410, %cst_123 [1] : vector<8x8xf32> to vector<8xf32>
    %414 = vector.shape_cast %413 : vector<8xf32> to vector<8x1xf32>
    %415 = arith.addf %414, %412 : vector<8x1xf32>
    %416 = tpu.reciprocal %415 {approx = true} : vector<8x1xf32> -> vector<8x1xf32>
    %417 = arith.truncf %410 : vector<8x8xf32> to vector<8x8xbf16>
    %418 = arith.truncf %393 : vector<8x8xf32> to vector<8x8xbf16>
    %cst_124 = arith.constant dense<0.000000e+00> : vector<8x8xf32>
    %419 = tpu.matmul %417, %418, %cst_124 {dimension_numbers = #tpu.dot_dimension_numbers<[1], [0], [0], [1], [0, 0, 1, 1], [], []>} : vector<8x8xbf16>, vector<8x8xbf16>, vector<8x8xf32> -> vector<8x8xf32>
    %420 = vector.broadcast %412 : vector<8x1xf32> to vector<8x8xf32>
    %421 = vector.broadcast %395 : vector<1x8xf32> to vector<8x8xf32>
    %422 = arith.mulf %420, %421 : vector<8x8xf32>
    %423 = arith.addf %419, %422 : vector<8x8xf32>
    %424 = vector.broadcast %416 : vector<8x1xf32> to vector<8x8xf32>
    %425 = arith.mulf %423, %424 : vector<8x8xf32>
    %c8_125 = arith.constant 8 : index
    %c0_126 = arith.constant 0 : index
    %426 = vector.load %arg18[%c8_125, %c0_126] : memref<16x32xf32, #tpu.memory_space<vmem>>, vector<8x8xf32>
    tpu.vector_store %arg18[%c8_125, %c0_126], %425 {strides = array<i32>} : memref<16x32xf32, #tpu.memory_space<vmem>>, vector<8x8xf32>,
    %427 = vector.extract_strided_slice %387 {offsets = [0, 8], sizes = [8, 8], strides = [1, 1]} : vector<8x32xf32> to vector<8x8xf32>
    %428 = vector.extract_strided_slice %388 {offsets = [0, 8], sizes = [8, 8], strides = [1, 1]} : vector<8x64xf32> to vector<8x8xf32>
    %429 = vector.extract_strided_slice %388 {offsets = [0, 40], sizes = [8, 8], strides = [1, 1]} : vector<8x64xf32> to vector<8x8xf32>
    %430 = vector.extract_strided_slice %237 {offsets = [1, 0], sizes = [1, 8], strides = [1, 1]} : vector<4x8xf32> to vector<1x8xf32>
    %431 = vector.extract_strided_slice %238 {offsets = [1, 0], sizes = [1, 8], strides = [1, 1]} : vector<4x8xf32> to vector<1x8xf32>
    %432 = arith.truncf %427 : vector<8x8xf32> to vector<8x8xbf16>
    %433 = arith.truncf %428 : vector<8x8xf32> to vector<8x8xbf16>
    %cst_127 = arith.constant dense<0.000000e+00> : vector<8x8xf32>
    %434 = tpu.matmul %432, %433, %cst_127 {dimension_numbers = #tpu.dot_dimension_numbers<[1], [1], [0], [0], [0, 0, 1, 0], [], []>} : vector<8x8xbf16>, vector<8x8xbf16>, vector<8x8xf32> -> vector<8x8xf32>
    %435 = vector.broadcast %390 : vector<1x8xf32> to vector<8x8xf32>
    %436 = arith.addf %434, %435 : vector<8x8xf32>
    %437 = vector.broadcast %430 : vector<1x8xf32> to vector<8x8xf32>
    %438 = arith.mulf %427, %437 : vector<8x8xf32>
    %cst_128 = arith.constant dense<0.000000e+00> : vector<8xf32>
    %439 = vector.multi_reduction <add>, %438, %cst_128 [1] : vector<8x8xf32> to vector<8xf32>
    %440 = vector.shape_cast %439 : vector<8xf32> to vector<8x1xf32>
    %cst_129 = arith.constant dense<0xFF800000> : vector<8xf32>
    %441 = vector.multi_reduction <maximumf>, %436, %cst_129 [1] : vector<8x8xf32> to vector<8xf32>
    %442 = vector.shape_cast %441 : vector<8xf32> to vector<8x1xf32>
    %443 = arith.maximumf %442, %440 : vector<8x1xf32>
    %444 = vector.broadcast %443 : vector<8x1xf32> to vector<8x8xf32>
    %445 = arith.subf %436, %444 : vector<8x8xf32>
    %446 = math.exp %445 : vector<8x8xf32>
    %447 = arith.subf %440, %443 : vector<8x1xf32>
    %448 = math.exp %447 : vector<8x1xf32>
    %cst_130 = arith.constant dense<0.000000e+00> : vector<8xf32>
    %449 = vector.multi_reduction <add>, %446, %cst_130 [1] : vector<8x8xf32> to vector<8xf32>
    %450 = vector.shape_cast %449 : vector<8xf32> to vector<8x1xf32>
    %451 = arith.addf %450, %448 : vector<8x1xf32>
    %452 = tpu.reciprocal %451 {approx = true} : vector<8x1xf32> -> vector<8x1xf32>
    %453 = arith.truncf %446 : vector<8x8xf32> to vector<8x8xbf16>
    %454 = arith.truncf %429 : vector<8x8xf32> to vector<8x8xbf16>
    %cst_131 = arith.constant dense<0.000000e+00> : vector<8x8xf32>
    %455 = tpu.matmul %453, %454, %cst_131 {dimension_numbers = #tpu.dot_dimension_numbers<[1], [0], [0], [1], [0, 0, 1, 1], [], []>} : vector<8x8xbf16>, vector<8x8xbf16>, vector<8x8xf32> -> vector<8x8xf32>
    %456 = vector.broadcast %448 : vector<8x1xf32> to vector<8x8xf32>
    %457 = vector.broadcast %431 : vector<1x8xf32> to vector<8x8xf32>
    %458 = arith.mulf %456, %457 : vector<8x8xf32>
    %459 = arith.addf %455, %458 : vector<8x8xf32>
    %460 = vector.broadcast %452 : vector<8x1xf32> to vector<8x8xf32>
    %461 = arith.mulf %459, %460 : vector<8x8xf32>
    %c8_132 = arith.constant 8 : index
    %c8_133 = arith.constant 8 : index
    %462 = vector.load %arg18[%c8_132, %c8_133] : memref<16x32xf32, #tpu.memory_space<vmem>>, vector<8x8xf32>
    tpu.vector_store %arg18[%c8_132, %c8_133], %461 {strides = array<i32>} : memref<16x32xf32, #tpu.memory_space<vmem>>, vector<8x8xf32>,
    %463 = vector.extract_strided_slice %387 {offsets = [0, 16], sizes = [8, 8], strides = [1, 1]} : vector<8x32xf32> to vector<8x8xf32>
    %464 = vector.extract_strided_slice %388 {offsets = [0, 16], sizes = [8, 8], strides = [1, 1]} : vector<8x64xf32> to vector<8x8xf32>
    %465 = vector.extract_strided_slice %388 {offsets = [0, 48], sizes = [8, 8], strides = [1, 1]} : vector<8x64xf32> to vector<8x8xf32>
    %466 = vector.extract_strided_slice %237 {offsets = [2, 0], sizes = [1, 8], strides = [1, 1]} : vector<4x8xf32> to vector<1x8xf32>
    %467 = vector.extract_strided_slice %238 {offsets = [2, 0], sizes = [1, 8], strides = [1, 1]} : vector<4x8xf32> to vector<1x8xf32>
    %468 = arith.truncf %463 : vector<8x8xf32> to vector<8x8xbf16>
    %469 = arith.truncf %464 : vector<8x8xf32> to vector<8x8xbf16>
    %cst_134 = arith.constant dense<0.000000e+00> : vector<8x8xf32>
    %470 = tpu.matmul %468, %469, %cst_134 {dimension_numbers = #tpu.dot_dimension_numbers<[1], [1], [0], [0], [0, 0, 1, 0], [], []>} : vector<8x8xbf16>, vector<8x8xbf16>, vector<8x8xf32> -> vector<8x8xf32>
    %471 = vector.broadcast %390 : vector<1x8xf32> to vector<8x8xf32>
    %472 = arith.addf %470, %471 : vector<8x8xf32>
    %473 = vector.broadcast %466 : vector<1x8xf32> to vector<8x8xf32>
    %474 = arith.mulf %463, %473 : vector<8x8xf32>
    %cst_135 = arith.constant dense<0.000000e+00> : vector<8xf32>
    %475 = vector.multi_reduction <add>, %474, %cst_135 [1] : vector<8x8xf32> to vector<8xf32>
    %476 = vector.shape_cast %475 : vector<8xf32> to vector<8x1xf32>
    %cst_136 = arith.constant dense<0xFF800000> : vector<8xf32>
    %477 = vector.multi_reduction <maximumf>, %472, %cst_136 [1] : vector<8x8xf32> to vector<8xf32>
    %478 = vector.shape_cast %477 : vector<8xf32> to vector<8x1xf32>
    %479 = arith.maximumf %478, %476 : vector<8x1xf32>
    %480 = vector.broadcast %479 : vector<8x1xf32> to vector<8x8xf32>
    %481 = arith.subf %472, %480 : vector<8x8xf32>
    %482 = math.exp %481 : vector<8x8xf32>
    %483 = arith.subf %476, %479 : vector<8x1xf32>
    %484 = math.exp %483 : vector<8x1xf32>
    %cst_137 = arith.constant dense<0.000000e+00> : vector<8xf32>
    %485 = vector.multi_reduction <add>, %482, %cst_137 [1] : vector<8x8xf32> to vector<8xf32>
    %486 = vector.shape_cast %485 : vector<8xf32> to vector<8x1xf32>
    %487 = arith.addf %486, %484 : vector<8x1xf32>
    %488 = tpu.reciprocal %487 {approx = true} : vector<8x1xf32> -> vector<8x1xf32>
    %489 = arith.truncf %482 : vector<8x8xf32> to vector<8x8xbf16>
    %490 = arith.truncf %465 : vector<8x8xf32> to vector<8x8xbf16>
    %cst_138 = arith.constant dense<0.000000e+00> : vector<8x8xf32>
    %491 = tpu.matmul %489, %490, %cst_138 {dimension_numbers = #tpu.dot_dimension_numbers<[1], [0], [0], [1], [0, 0, 1, 1], [], []>} : vector<8x8xbf16>, vector<8x8xbf16>, vector<8x8xf32> -> vector<8x8xf32>
    %492 = vector.broadcast %484 : vector<8x1xf32> to vector<8x8xf32>
    %493 = vector.broadcast %467 : vector<1x8xf32> to vector<8x8xf32>
    %494 = arith.mulf %492, %493 : vector<8x8xf32>
    %495 = arith.addf %491, %494 : vector<8x8xf32>
    %496 = vector.broadcast %488 : vector<8x1xf32> to vector<8x8xf32>
    %497 = arith.mulf %495, %496 : vector<8x8xf32>
    %c8_139 = arith.constant 8 : index
    %c16_140 = arith.constant 16 : index
    %498 = vector.load %arg18[%c8_139, %c16_140] : memref<16x32xf32, #tpu.memory_space<vmem>>, vector<8x8xf32>
    tpu.vector_store %arg18[%c8_139, %c16_140], %497 {strides = array<i32>} : memref<16x32xf32, #tpu.memory_space<vmem>>, vector<8x8xf32>,
    %499 = vector.extract_strided_slice %387 {offsets = [0, 24], sizes = [8, 8], strides = [1, 1]} : vector<8x32xf32> to vector<8x8xf32>
    %500 = vector.extract_strided_slice %388 {offsets = [0, 24], sizes = [8, 8], strides = [1, 1]} : vector<8x64xf32> to vector<8x8xf32>
    %501 = vector.extract_strided_slice %388 {offsets = [0, 56], sizes = [8, 8], strides = [1, 1]} : vector<8x64xf32> to vector<8x8xf32>
    %502 = vector.extract_strided_slice %237 {offsets = [3, 0], sizes = [1, 8], strides = [1, 1]} : vector<4x8xf32> to vector<1x8xf32>
    %503 = vector.extract_strided_slice %238 {offsets = [3, 0], sizes = [1, 8], strides = [1, 1]} : vector<4x8xf32> to vector<1x8xf32>
    %504 = arith.truncf %499 : vector<8x8xf32> to vector<8x8xbf16>
    %505 = arith.truncf %500 : vector<8x8xf32> to vector<8x8xbf16>
    %cst_141 = arith.constant dense<0.000000e+00> : vector<8x8xf32>
    %506 = tpu.matmul %504, %505, %cst_141 {dimension_numbers = #tpu.dot_dimension_numbers<[1], [1], [0], [0], [0, 0, 1, 0], [], []>} : vector<8x8xbf16>, vector<8x8xbf16>, vector<8x8xf32> -> vector<8x8xf32>
    %507 = vector.broadcast %390 : vector<1x8xf32> to vector<8x8xf32>
    %508 = arith.addf %506, %507 : vector<8x8xf32>
    %509 = vector.broadcast %502 : vector<1x8xf32> to vector<8x8xf32>
    %510 = arith.mulf %499, %509 : vector<8x8xf32>
    %cst_142 = arith.constant dense<0.000000e+00> : vector<8xf32>
    %511 = vector.multi_reduction <add>, %510, %cst_142 [1] : vector<8x8xf32> to vector<8xf32>
    %512 = vector.shape_cast %511 : vector<8xf32> to vector<8x1xf32>
    %cst_143 = arith.constant dense<0xFF800000> : vector<8xf32>
    %513 = vector.multi_reduction <maximumf>, %508, %cst_143 [1] : vector<8x8xf32> to vector<8xf32>
    %514 = vector.shape_cast %513 : vector<8xf32> to vector<8x1xf32>
    %515 = arith.maximumf %514, %512 : vector<8x1xf32>
    %516 = vector.broadcast %515 : vector<8x1xf32> to vector<8x8xf32>
    %517 = arith.subf %508, %516 : vector<8x8xf32>
    %518 = math.exp %517 : vector<8x8xf32>
    %519 = arith.subf %512, %515 : vector<8x1xf32>
    %520 = math.exp %519 : vector<8x1xf32>
    %cst_144 = arith.constant dense<0.000000e+00> : vector<8xf32>
    %521 = vector.multi_reduction <add>, %518, %cst_144 [1] : vector<8x8xf32> to vector<8xf32>
    %522 = vector.shape_cast %521 : vector<8xf32> to vector<8x1xf32>
    %523 = arith.addf %522, %520 : vector<8x1xf32>
    %524 = tpu.reciprocal %523 {approx = true} : vector<8x1xf32> -> vector<8x1xf32>
    %525 = arith.truncf %518 : vector<8x8xf32> to vector<8x8xbf16>
    %526 = arith.truncf %501 : vector<8x8xf32> to vector<8x8xbf16>
    %cst_145 = arith.constant dense<0.000000e+00> : vector<8x8xf32>
    %527 = tpu.matmul %525, %526, %cst_145 {dimension_numbers = #tpu.dot_dimension_numbers<[1], [0], [0], [1], [0, 0, 1, 1], [], []>} : vector<8x8xbf16>, vector<8x8xbf16>, vector<8x8xf32> -> vector<8x8xf32>
    %528 = vector.broadcast %520 : vector<8x1xf32> to vector<8x8xf32>
    %529 = vector.broadcast %503 : vector<1x8xf32> to vector<8x8xf32>
    %530 = arith.mulf %528, %529 : vector<8x8xf32>
    %531 = arith.addf %527, %530 : vector<8x8xf32>
    %532 = vector.broadcast %524 : vector<8x1xf32> to vector<8x8xf32>
    %533 = arith.mulf %531, %532 : vector<8x8xf32>
    %c8_146 = arith.constant 8 : index
    %c24_147 = arith.constant 24 : index
    %534 = vector.load %arg18[%c8_146, %c24_147] : memref<16x32xf32, #tpu.memory_space<vmem>>, vector<8x8xf32>
    tpu.vector_store %arg18[%c8_146, %c24_147], %533 {strides = array<i32>} : memref<16x32xf32, #tpu.memory_space<vmem>>, vector<8x8xf32>,
    %c0_148 = arith.constant 0 : index
    %c0_149 = arith.constant 0 : index
    %535 = vector.load %arg18[%c0_148, %c0_149] : memref<16x32xf32, #tpu.memory_space<vmem>>, vector<16x32xf32>
    %536 = arith.truncf %535 : vector<16x32xf32> to vector<16x32xbf16>
    %c0_150 = arith.constant 0 : index
    %c0_151 = arith.constant 0 : index
    %537 = vector.load %arg11[%c0_150, %c0_151] : memref<32x32xbf16, #tpu.memory_space<vmem>>, vector<32x32xbf16>
    %cst_152 = arith.constant dense<0.000000e+00> : vector<16x32xf32>
    %538 = tpu.matmul %536, %537, %cst_152 {dimension_numbers = #tpu.dot_dimension_numbers<[1], [0], [0], [1], [0, 0, 1, 1], [], []>} : vector<16x32xbf16>, vector<32x32xbf16>, vector<16x32xf32> -> vector<16x32xf32>
    %539 = arith.addf %538, %213 : vector<16x32xf32>
    %540 = arith.truncf %539 : vector<16x32xf32> to vector<16x32xbf16>
    %c0_153 = arith.constant 0 : index
    %c0_154 = arith.constant 0 : index
    %541 = vector.load %arg14[%c0_153, %c0_154] : memref<32x128xbf16, #tpu.memory_space<vmem>>, vector<32x128xbf16>
    %cst_155 = arith.constant dense<0.000000e+00> : vector<16x128xf32>
    %542 = tpu.matmul %540, %541, %cst_155 {dimension_numbers = #tpu.dot_dimension_numbers<[1], [0], [0], [1], [0, 0, 1, 1], [], []>} : vector<16x32xbf16>, vector<32x128xbf16>, vector<16x128xf32> -> vector<16x128xf32>
    %cst_156 = arith.constant 5.000000e-01 : f32
    %543 = vector.broadcast %cst_156 : f32 to vector<16x128xf32>
    %544 = arith.mulf %543, %542 : vector<16x128xf32>
    %cst_157 = arith.constant 0.707106769 : f32
    %545 = vector.broadcast %cst_157 : f32 to vector<16x128xf32>
    %546 = arith.mulf %542, %545 : vector<16x128xf32>
    %547 = math.absf %546 : vector<16x128xf32>
    %cst_158 = arith.constant 0.327591091 : f32
    %548 = vector.broadcast %cst_158 : f32 to vector<16x128xf32>
    %549 = arith.mulf %548, %547 : vector<16x128xf32>
    %cst_159 = arith.constant 1.000000e+00 : f32
    %550 = vector.broadcast %cst_159 : f32 to vector<16x128xf32>
    %551 = arith.addf %550, %549 : vector<16x128xf32>
    %cst_160 = arith.constant 1.000000e+00 : f32
    %552 = vector.broadcast %cst_160 : f32 to vector<16x128xf32>
    %553 = arith.divf %552, %551 : vector<16x128xf32>
    %cst_161 = arith.constant 1.06140542 : f32
    %554 = vector.broadcast %cst_161 : f32 to vector<16x128xf32>
    %555 = arith.mulf %554, %553 : vector<16x128xf32>
    %cst_162 = arith.constant -1.45315206 : f32
    %556 = vector.broadcast %cst_162 : f32 to vector<16x128xf32>
    %557 = arith.addf %555, %556 : vector<16x128xf32>
    %558 = arith.mulf %557, %553 : vector<16x128xf32>
    %cst_163 = arith.constant 1.42141378 : f32
    %559 = vector.broadcast %cst_163 : f32 to vector<16x128xf32>
    %560 = arith.addf %558, %559 : vector<16x128xf32>
    %561 = arith.mulf %560, %553 : vector<16x128xf32>
    %cst_164 = arith.constant -0.284496725 : f32
    %562 = vector.broadcast %cst_164 : f32 to vector<16x128xf32>
    %563 = arith.addf %561, %562 : vector<16x128xf32>
    %564 = arith.mulf %563, %553 : vector<16x128xf32>
    %cst_165 = arith.constant 0.254829586 : f32
    %565 = vector.broadcast %cst_165 : f32 to vector<16x128xf32>
    %566 = arith.addf %564, %565 : vector<16x128xf32>
    %567 = arith.mulf %566, %553 : vector<16x128xf32>
    %cst_166 = arith.constant 0.000000e+00 : f32
    %568 = vector.broadcast %cst_166 : f32 to vector<16x128xf32>
    %569 = arith.subf %568, %547 : vector<16x128xf32>
    %570 = arith.mulf %569, %547 : vector<16x128xf32>
    %571 = math.exp %570 : vector<16x128xf32>
    %572 = arith.mulf %567, %571 : vector<16x128xf32>
    %cst_167 = arith.constant 1.000000e+00 : f32
    %573 = vector.broadcast %cst_167 : f32 to vector<16x128xf32>
    %574 = arith.subf %573, %572 : vector<16x128xf32>
    %cst_168 = arith.constant 0.000000e+00 : f32
    %575 = vector.broadcast %cst_168 : f32 to vector<16x128xf32>
    %576 = arith.cmpf olt, %546, %575 : vector<16x128xf32>
    %cst_169 = arith.constant 0.000000e+00 : f32
    %577 = vector.broadcast %cst_169 : f32 to vector<16x128xf32>
    %578 = arith.subf %577, %574 : vector<16x128xf32>
    %579 = arith.select %576, %578, %574 : vector<16x128xi1>, vector<16x128xf32>
    %cst_170 = arith.constant 1.000000e+00 : f32
    %580 = vector.broadcast %cst_170 : f32 to vector<16x128xf32>
    %581 = arith.addf %580, %579 : vector<16x128xf32>
    %582 = arith.mulf %544, %581 : vector<16x128xf32>
    %c0_171 = arith.constant 0 : index
    %c0_172 = arith.constant 0 : index
    %583 = vector.load %arg15[%c0_171, %c0_172] : memref<1x128xf32, #tpu.memory_space<vmem>>, vector<1x128xf32>
    %cst_173 = arith.constant dense<0.000000e+00> : vector<16xf32>
    %584 = vector.multi_reduction <add>, %582, %cst_173 [1] : vector<16x128xf32> to vector<16xf32>
    %585 = vector.shape_cast %584 : vector<16xf32> to vector<16x1xf32>
    %cst_174 = arith.constant 1.280000e+02 : f32
    %586 = vector.broadcast %cst_174 : f32 to vector<16x1xf32>
    %587 = arith.divf %585, %586 : vector<16x1xf32>
    %588 = vector.broadcast %587 : vector<16x1xf32> to vector<16x128xf32>
    %589 = arith.subf %582, %588 : vector<16x128xf32>
    %590 = arith.mulf %589, %589 : vector<16x128xf32>
    %cst_175 = arith.constant dense<0.000000e+00> : vector<16xf32>
    %591 = vector.multi_reduction <add>, %590, %cst_175 [1] : vector<16x128xf32> to vector<16xf32>
    %592 = vector.shape_cast %591 : vector<16xf32> to vector<16x1xf32>
    %cst_176 = arith.constant 1.280000e+02 : f32
    %593 = vector.broadcast %cst_176 : f32 to vector<16x1xf32>
    %594 = arith.divf %592, %593 : vector<16x1xf32>
    %cst_177 = arith.constant 9.99999974E-6 : f32
    %595 = vector.broadcast %cst_177 : f32 to vector<16x1xf32>
    %596 = arith.addf %594, %595 : vector<16x1xf32>
    %597 = math.rsqrt %596 : vector<16x1xf32>
    %598 = vector.broadcast %597 : vector<16x1xf32> to vector<16x128xf32>
    %599 = arith.mulf %589, %598 : vector<16x128xf32>
    %600 = vector.broadcast %583 : vector<1x128xf32> to vector<16x128xf32>
    %601 = arith.mulf %599, %600 : vector<16x128xf32>
    %602 = arith.truncf %601 : vector<16x128xf32> to vector<16x128xbf16>
    %c0_178 = arith.constant 0 : index
    %c0_179 = arith.constant 0 : index
    %603 = vector.load %arg16[%c0_178, %c0_179] : memref<128x32xbf16, #tpu.memory_space<vmem>>, vector<128x32xbf16>
    %cst_180 = arith.constant dense<0.000000e+00> : vector<16x32xf32>
    %604 = tpu.matmul %602, %603, %cst_180 {dimension_numbers = #tpu.dot_dimension_numbers<[1], [0], [0], [1], [0, 0, 1, 1], [], []>} : vector<16x128xbf16>, vector<128x32xbf16>, vector<16x32xf32> -> vector<16x32xf32>
    %605 = arith.addf %604, %539 : vector<16x32xf32>
    %cst_181 = arith.constant dense<0.000000e+00> : vector<16xf32>
    %606 = vector.multi_reduction <add>, %605, %cst_181 [1] : vector<16x32xf32> to vector<16xf32>
    %607 = vector.shape_cast %606 : vector<16xf32> to vector<16x1xf32>
    %cst_182 = arith.constant 3.200000e+01 : f32
    %608 = vector.broadcast %cst_182 : f32 to vector<16x1xf32>
    %609 = arith.divf %607, %608 : vector<16x1xf32>
    %610 = vector.broadcast %609 : vector<16x1xf32> to vector<16x32xf32>
    %611 = arith.subf %605, %610 : vector<16x32xf32>
    %612 = arith.mulf %611, %611 : vector<16x32xf32>
    %cst_183 = arith.constant dense<0.000000e+00> : vector<16xf32>
    %613 = vector.multi_reduction <add>, %612, %cst_183 [1] : vector<16x32xf32> to vector<16xf32>
    %614 = vector.shape_cast %613 : vector<16xf32> to vector<16x1xf32>
    %cst_184 = arith.constant 3.200000e+01 : f32
    %615 = vector.broadcast %cst_184 : f32 to vector<16x1xf32>
    %616 = arith.divf %614, %615 : vector<16x1xf32>
    %cst_185 = arith.constant 9.99999974E-6 : f32
    %617 = vector.broadcast %cst_185 : f32 to vector<16x1xf32>
    %618 = arith.addf %616, %617 : vector<16x1xf32>
    %619 = math.rsqrt %618 : vector<16x1xf32>
    %620 = vector.broadcast %619 : vector<16x1xf32> to vector<16x32xf32>
    %621 = arith.mulf %611, %620 : vector<16x32xf32>
    %622 = vector.broadcast %5 : vector<1x32xf32> to vector<16x32xf32>
    %623 = arith.mulf %621, %622 : vector<16x32xf32>
    %c0_186 = arith.constant 0 : index
    %c0_187 = arith.constant 0 : index
    %624 = vector.load %arg17[%c0_186, %c0_187] : memref<16x32xf32, #tpu.memory_space<vmem>>, vector<16x32xf32>
    tpu.vector_store %arg17[%c0_186, %c0_187], %623 {strides = array<i32>} : memref<16x32xf32, #tpu.memory_space<vmem>>, vector<16x32xf32>,
    return
  }
}

</mosaic_0001>

<bundles_post_ra>
// kernel: tpu_custom_call.1
= control target key start
LH: loop header
LB: loop body
LE: loop exit
PB: predicated region body
PF: predicated region fallthrough
CT: control target
= control target key end

     0   :  { %s4435_s0 = inlined_call_operand.vmem [shape: f32[16,32], index: 0, kind: input, shape index: {}]   ;;  %s4436_s1 = inlined_call_operand.vmem [shape: f32[16,32], index: 1, kind: input, shape index: {}]   ;;  %s4437_s2 = inlined_call_operand.hbm [shape: f32[2,1,8], index: 2, kind: input, shape index: {}]   ;;  %s4438_s3 = inlined_call_operand.hbm [shape: f32[2,1,8], index: 3, kind: input, shape index: {}]   ;;  %s4439_s4 = inlined_call_operand.vmem [shape: f32[1,32], index: 4, kind: input, shape index: {}]   ;;  %s4440_s5 = inlined_call_operand.hbm [shape: f32[1,32], index: 5, kind: input, shape index: {}]   ;;  %s4441_s6 = inlined_call_operand.hbm [shape: f32[1,32], index: 6, kind: input, shape index: {}]   ;;  %s4442_s7 = inlined_call_operand.vmem [shape: bf16[32,96], index: 7, kind: input, shape index: {}]   ;;  %s4443_s8 = inlined_call_operand.vmem [shape: bf16[32,32], index: 8, kind: input, shape index: {}]   ;;  %s4444_s9 = inlined_call_operand.vmem [shape: bf16[32,32], index: 9, kind: input, shape index: {}]   ;;  %s4445_s10 = inlined_call_operand.vmem [shape: bf16[32,64], index: 10, kind: input, shape index: {}]   ;;  %s4446_s11 = inlined_call_operand.vmem [shape: bf16[32,32], index: 11, kind: input, shape index: {}]   ;;  %s4447_s12 = inlined_call_operand.hbm [shape: f32[4,8], index: 12, kind: input, shape index: {}]   ;;  %s4448_s13 = inlined_call_operand.hbm [shape: f32[4,8], index: 13, kind: input, shape index: {}]   ;;  %s4449_s14 = inlined_call_operand.vmem [shape: bf16[32,128], index: 14, kind: input, shape index: {}]   ;;  %s4450_s15 = inlined_call_operand.vmem [shape: f32[1,128], index: 15, kind: input, shape index: {}]   ;;  %s4451_s16 = inlined_call_operand.vmem [shape: bf16[128,32], index: 16, kind: input, shape index: {}]   ;;  %s4452_s17 = inlined_call_operand.hbm [shape: f32[16,32], index: 17, kind: output, shape index: {}]  }
   0x1   :  { %4455 = sst [smem:[#allocation20_spill]] %s4435_s0 }
   0x2   :  { %4456 = sst [smem:[#allocation21_spill]] %s4436_s1 }
   0x3   :  { %22 = vsyncpa [#allocation4], 0 }
   0x4   :  { %23 = vsyncpa [#allocation7], 0 }
   0x5   :  { %24 = vsyncpa [#allocation10], 0 }
   0x6   :  { %25 = vsyncpa [#allocation13], 0 }
   0x7   :  { %26 = vsyncpa [#allocation5], 0  ;;  %s3566_s24 = smov [#allocation6]   ;;  %s3567_s26 = smov [#allocation9]  }
   0x8   :  { %s48_s25 = sshll.u32 %s3566_s24, 4  ;;  %s73_s27 = sshll.u32 %s3567_s26, 4  ;;  %s49_s25 = int_to_ptr.vmem [resolvable:$true] %s48_s25  ;;  %s3681_s27 = int_to_ptr.vmem [resolvable:$true] %s73_s27 }
   0x9   :  { %s3402_s0 = scalar_lea.hbm %s4438_s3, 32 }
   0xa   :  { %p3403_p0 = scmp.ne.s32.totalorder %s4438_s3, %s3402_s0  ;;  %p3406_p1 = scmp.lt.u32.totalorder %s3402_s0, %s4438_s3 }
   0xc   :  { %p3408_p2 = pnand %p3406_p1, %p3403_p0 }
   0xe   :  { %3411 = shalt.err (!%p3408_p2)
}
   0xf   :  { %s3412_s20 = scalar_lea.vmem %s49_s25, 32  ;;  %p3417_p4 = scmp.lt.s32.totalorder %s49_s25, %s49_s25 }
  0x10   :  { %p3413_p3 = scmp.ne.s32.totalorder %s49_s25, %s3412_s20  ;;  %p3418_p5 = scmp.lt.s32.totalorder %s3412_s20, %s3412_s20 }
  0x12   :  { %p3419_p6 = por %p3418_p5, %p3417_p4 }
  0x14   :  { %p3420_p7 = pnand %p3419_p6, %p3413_p3 }
  0x16   :  { %3423 = shalt.err (!%p3420_p7)
}
  0x17   :  { %s3568_s21 = smov 16   ;;  %s3569_s22 = smov 1  }
  0x18   :  { %54 = dma.hbm_to_vmem [thread:$0]  %s4438_s3, 32, %s49_s25, [#allocation7], %s3568_s21, %s3568_s21, %s3569_s22  }
  0x19   :  { %s3424_s29 = scalar_lea.hbm %s4441_s6, 16 }
  0x1a   :  { %p3425_p8 = scmp.ne.s32.totalorder %s4441_s6, %s3424_s29  ;;  %p3428_p9 = scmp.lt.u32.totalorder %s3424_s29, %s4441_s6 }
  0x1c   :  { %p3430_p10 = pnand %p3428_p9, %p3425_p8 }
  0x1e   :  { %3433 = shalt.err (!%p3430_p10)
}
  0x1f   :  { %s3434_s1 = scalar_lea.vmem %s3681_s27, 16  ;;  %s3438_s3 = scalar_lea.vmem %s3681_s27, 32 }
  0x20   :  { %p3435_p11 = scmp.ne.s32.totalorder %s3681_s27, %s3434_s1  ;;  %p3439_p12 = scmp.lt.s32.totalorder %s3681_s27, %s3681_s27 }
  0x21   :  { %p3440_p13 = scmp.lt.s32.totalorder %s3438_s3, %s3434_s1 }
  0x23   :  { %p3441_p0 = por %p3440_p13, %p3439_p12 }
  0x25   :  { %p3442_p1 = pnand %p3441_p0, %p3435_p11 }
  0x27   :  { %3445 = shalt.err (!%p3442_p1)
}
  0x28   :  { %76 = dma.hbm_to_vmem [thread:$0]  %s4441_s6, 16, %s3681_s27, [#allocation10]  }
  0x29   :  { %s3570_s23 = smov [#allocation3]   ;;  %s3571_s26 = smov [#allocation8]  }
  0x2a   :  { %s36_s24 = sshll.u32 %s3570_s23, 4  ;;  %s63_s28 = sshll.u32 %s3571_s26, 4  ;;  %s37_s24 = int_to_ptr.vmem [resolvable:$true] %s36_s24  ;;  %s64_s28 = int_to_ptr.vmem [resolvable:$true] %s63_s28 }
  0x2b   :  { %s3446_s30 = scalar_lea.hbm %s4437_s2, 32 }
  0x2c   :  { %p3447_p2 = scmp.ne.s32.totalorder %s4437_s2, %s3446_s30  ;;  %p3450_p3 = scmp.lt.u32.totalorder %s3446_s30, %s4437_s2 }
  0x2e   :  { %p3452_p4 = pnand %p3450_p3, %p3447_p2 }
  0x30   :  { %3455 = shalt.err (!%p3452_p4)
}
  0x31   :  { %s3456_s6 = scalar_lea.vmem %s37_s24, 32  ;;  %p3461_p6 = scmp.lt.s32.totalorder %s37_s24, %s37_s24 }
  0x32   :  { %p3457_p5 = scmp.ne.s32.totalorder %s37_s24, %s3456_s6  ;;  %p3462_p7 = scmp.lt.s32.totalorder %s3456_s6, %s3456_s6 }
  0x34   :  { %p3463_p8 = por %p3462_p7, %p3461_p6 }
  0x36   :  { %p3464_p9 = pnand %p3463_p8, %p3457_p5 }
  0x38   :  { %3467 = shalt.err (!%p3464_p9)
}
  0x39   :  { %42 = dma.hbm_to_vmem [thread:$0]  %s4437_s2, 32, %s37_s24, [#allocation4], %s3568_s21, %s3568_s21, %s3569_s22  }
  0x3a   :  { %s3468_s26 = scalar_lea.hbm %s4440_s5, 16 }
  0x3b   :  { %p3469_p10 = scmp.ne.s32.totalorder %s4440_s5, %s3468_s26  ;;  %p3472_p11 = scmp.lt.u32.totalorder %s3468_s26, %s4440_s5 }
  0x3d   :  { %p3474_p12 = pnand %p3472_p11, %p3469_p10 }
  0x3f   :  { %3477 = shalt.err (!%p3474_p12)
}
  0x40   :  { %s3478_s19 = scalar_lea.vmem %s64_s28, 16  ;;  %s3482_s1 = scalar_lea.vmem %s64_s28, 32 }
  0x41   :  { %p3479_p13 = scmp.ne.s32.totalorder %s64_s28, %s3478_s19  ;;  %p3483_p0 = scmp.lt.s32.totalorder %s64_s28, %s64_s28 }
  0x42   :  { %p3484_p1 = scmp.lt.s32.totalorder %s3482_s1, %s3478_s19 }
  0x44   :  { %p3485_p2 = por %p3484_p1, %p3483_p0 }
  0x46   :  { %p3486_p3 = pnand %p3485_p2, %p3479_p13 }
  0x48   :  { %3489 = shalt.err (!%p3486_p3)
}
  0x49   :  { %66 = dma.hbm_to_vmem [thread:$0]  %s4440_s5, 16, %s64_s28, [#allocation7]  }
  0x4a   :  { %s3572_s24 = smov [#allocation11]   ;;  %s3573_s6 = smov [#allocation12]  }
  0x4b   :  { %s93_s3 = sshll.u32 %s3572_s24, 4  ;;  %s103_s27 = sshll.u32 %s3573_s6, 4  ;;  %s94_s3 = int_to_ptr.vmem [resolvable:$true] %s93_s3  ;;  %s104_s27 = int_to_ptr.vmem [resolvable:$true] %s103_s27 }
  0x4c   :  { %s3490_s23 = scalar_lea.hbm %s4447_s12, 64 }
  0x4d   :  { %p3491_p4 = scmp.ne.s32.totalorder %s4447_s12, %s3490_s23  ;;  %p3494_p5 = scmp.lt.u32.totalorder %s3490_s23, %s4447_s12 }
  0x4f   :  { %p3496_p6 = pnand %p3494_p5, %p3491_p4 }
  0x51   :  { %3499 = shalt.err (!%p3496_p6)
}
  0x52   :  { %s3500_s5 = scalar_lea.vmem %s94_s3, 64  ;;  %p3505_p8 = scmp.lt.s32.totalorder %s94_s3, %s94_s3 }
  0x53   :  { %p3501_p7 = scmp.ne.s32.totalorder %s94_s3, %s3500_s5  ;;  %p3506_p9 = scmp.lt.s32.totalorder %s3500_s5, %s3500_s5 }
  0x55   :  { %p3507_p10 = por %p3506_p9, %p3505_p8 }
  0x57   :  { %p3508_p11 = pnand %p3507_p10, %p3501_p7 }
  0x59   :  { %3511 = shalt.err (!%p3508_p11)
}
  0x5a   :  { %96 = dma.hbm_to_vmem [thread:$0]  %s4447_s12, 64, %s94_s3, [#allocation10]  }
  0x5b   :  { %s3512_s2 = scalar_lea.hbm %s4448_s13, 64 }
  0x5c   :  { %p3513_p12 = scmp.ne.s32.totalorder %s4448_s13, %s3512_s2  ;;  %p3516_p13 = scmp.lt.u32.totalorder %s3512_s2, %s4448_s13 }
  0x5e   :  { %p3518_p0 = pnand %p3516_p13, %p3513_p12 }
  0x60   :  { %3521 = shalt.err (!%p3518_p0)
}
  0x61   :  { %s3522_s20 = scalar_lea.vmem %s104_s27, 64  ;;  %p3527_p2 = scmp.lt.s32.totalorder %s104_s27, %s104_s27 }
  0x62   :  { %p3523_p1 = scmp.ne.s32.totalorder %s104_s27, %s3522_s20  ;;  %p3528_p3 = scmp.lt.s32.totalorder %s3522_s20, %s3522_s20 }
  0x64   :  { %p3529_p4 = por %p3528_p3, %p3527_p2 }
  0x66   :  { %p3530_p5 = pnand %p3529_p4, %p3523_p1 }
  0x68   :  { %3533 = shalt.err (!%p3530_p5)
}
  0x69   :  { %106 = dma.hbm_to_vmem [thread:$0]  %s4448_s13, 64, %s104_s27, [#allocation13]  }
  0x6a   :  { %3556 = dma.done.wait [#allocation4], 32  }
  0x6b   :  { %3557 = vsyncadd [#allocation4], 4294967264 }
  0x6c   :  { %3558 = dma.done.wait [#allocation7], 48  }
  0x6d   :  { %3559 = vsyncadd [#allocation7], 4294967248 }
  0x6e   :  { %3560 = dma.done.wait [#allocation10], 80  }
  0x6f   :  { %3561 = vsyncadd [#allocation10], 4294967216 }
  0x70   :  { %3562 = dma.done.wait [#allocation13], 64  }
  0x71   :  { %3563 = vsyncadd [#allocation13], 4294967232  ;;  %vm140_vm0 = vcmask 261120   ;;  %s4457_s29 = sld [smem:[#allocation20_spill]]  ;;  %v3278_v14 = vld [vmem:[%s4442_s7] sm:$0xff]   ;;  %v3574_v15 = vmov 0.0  }
  0x72   :  { %2993 = vmatprep.subr.bf16.mxu1 %v3574_v15  ;;  %vm3575_vm1 = vmmov 0   ;;  %v3279_v16 = vld [vmem:[%s4442_s7 + $0x8] sm:$0xff]   ;;  %3019 = vmatprep.subr.bf16.mxu0 %v3574_v15  ;;  %v2836_v26 = vld [vmem:[%s4439_s4] ss:$0 sm:$0xff]  ;;  %s3576_s19 = smov 64   ;;  %s3577_s4 = smov 96  }
  0x73   :  { %2997 = vmatprep.mubr.msk.bf16.mxu1 %vm3575_vm1, %v3574_v15  ;;  %2994 = vmatpush3.bf16.msra.mxu1 %v3278_v14  ;;  %s3578_s1 = smov 120   ;;  %s3579_s2 = smov 112   ;;  %vm248_vm2 = vcmask 64512   ;;  %vm311_vm3 = vcmask 1043456   ;;  %v3835_v49 = vld [vmem:[#allocation3] ss:$0 sm:$0xff] }
  0x74   :  { %2995 = vmatprep.subr.bf16.mxu1 %v3574_v15  ;;  %3021 = vmatprep.mubr.msk.bf16.mxu0 %vm3575_vm1, %v3574_v15  ;;  %s3580_s22 = smov 104   ;;  %s3581_s24 = smov 88   ;;  %vm471_vm4 = vcmask 130112   ;;  %vm587_vm5 = vcmask 195712   ;;  %vm703_vm6 = vcmask 261312  }
  0x75   :  { %s3582_s6 = smov 80   ;;  %s3583_s25 = smov 72  }
  0x76   :  { %s3584_s20 = smov 56   ;;  %s3585_s12 = smov 40  }
  0x77   :  { %v132_v0 = vld [vmem:[%s4457_s29] sm:$0xff]  ;;  %v133_v1 = vld [vmem:[%s4457_s29 + $0x8] sm:$0xff]  ;;  %2996 = vmatpush3.bf16.msra.mxu1 %v3279_v16  ;;  %s3586_s3 = smov 48   ;;  %s3587_s23 = smov 8  }
  0x78   :  { %v141_v2 = vsel %vm140_vm0, %v132_v0, 0.0  ;;  %v144_v3 = vsel %vm140_vm0, %v133_v1, 0.0  ;;  %3001 = vmatprep.subr.bf16.mxu1 %v3574_v15  ;;  %s3588_s26 = smov 24  }
  0x79   :  { %142 = vadd.xlane.f32.xlu0 %v141_v2 }
  0x7d   :  { %145 = vadd.xlane.f32.xlu0 %v144_v3 }
 0x106   :  { %v143_v4 = vpop.xlane.xlu0 %142 }
 0x107   :  { %v148_v5 = vmul.f32 0.03125, %v143_v4 }
 0x109   :  { %v150_v6 = vsub.f32 %v132_v0, %v148_v5 }
 0x10a   :  { %v146_v7 = vpop.xlane.xlu0 %145 }
 0x10b   :  { %v149_v8 = vmul.f32 0.03125, %v146_v7  ;;  %v152_v9 = vmul.f32 %v150_v6, %v150_v6 }
 0x10d   :  { %v151_v10 = vsub.f32 %v133_v1, %v149_v8  ;;  %v154_v11 = vsel %vm140_vm0, %v152_v9, 0.0 }
 0x10e   :  { %155 = vadd.xlane.f32.xlu1 %v154_v11 }
 0x10f   :  { %v153_v12 = vmul.f32 %v151_v10, %v151_v10 }
 0x111   :  { %v157_v13 = vsel %vm140_vm0, %v153_v12, 0.0 }
 0x112   :  { %158 = vadd.xlane.f32.xlu1 %v157_v13 }
 0x19b   :  { %v156_v17 = vpop.xlane.xlu1 %155 }
 0x19c   :  { %v160_v18 = vmul.f32 0.03125, %v156_v17 }
 0x19e   :  { %v162_v19 = vadd.f32 1e-05, %v160_v18 }
 0x19f   :  { %v159_v20 = vpop.xlane.xlu1 %158 }
 0x1a0   :  { %3298 = vrsqrt.f32 %v162_v19  ;;  %v161_v21 = vmul.f32 0.03125, %v159_v20 }
 0x1a2   :  { %v163_v22 = vadd.f32 1e-05, %v161_v21 }
 0x1a4   :  { %3300 = vrsqrt.f32 %v163_v22 }
 0x1aa   :  { %v3299_v23 = vpop.eup %3298 }
 0x1ab   :  { %v166_v24 = vmul.f32 %v3299_v23, %v150_v6 }
 0x1ad   :  { %v3794_v28 = vmul.f32 %v2836_v26, %v166_v24 }
 0x1ae   :  { %v3301_v25 = vpop.eup %3300 }
 0x1af   :  { %v167_v27 = vmul.f32 %v3301_v25, %v151_v10 }
 0x1b1   :  { %v3796_v29 = vmul.f32 %v2836_v26, %v167_v27 }
 0x1b3   :  { %v176_v30 = vpack.c.bf16 %v3796_v29, %v3794_v28 }
 0x1b5   :  { %2998 = vmatmul.mubr.msk.bf16.vlgmr.msra.gmra.mrb[0].mxu1 %vm140_vm0, %v176_v30 }
 0x1b6   :  { %3003 = vmatprep.mubr.msk.bf16.mxu1 %vm3575_vm1, %v3574_v15 }
 0x288   :  { %v230_v31 = vpop.f32.mrb[0].mxu1 }
 0x289   :  { %v3803_v32 = vpack.c.bf16 %v230_v31, %v230_v31  ;;  %v2999_v33 = vpop.f32.mrb[1].mxu1 }
 0x28a   :  { %v233_v34 = vpop.f32.mrb[2].mxu1 }
 0x28b   :  { %306 = vrot.lane.b32.xlu1 %v3803_v32, %s3576_s19  ;;  %246 = vrot.lane.b32.xlu0 %v3803_v32, %s3577_s4  ;;  %v3000_v35 = vpop.f32.mrb[3].mxu1  ;;  %v3815_v36 = vpack.c.bf16 %v233_v34, %v233_v34 }
 0x28f   :  { %357 = vrot.lane.b32.xlu0 %v3803_v32, %s3578_s1 }
 0x293   :  { %473 = vrot.lane.b32.xlu0 %v3803_v32, %s3579_s2 }
 0x297   :  { %589 = vrot.lane.b32.xlu0 %v3803_v32, %s3580_s22 }
 0x29b   :  { %826 = vrot.lane.b32.xlu0 %v3815_v36, %s3581_s24 }
 0x29f   :  { %941 = vrot.lane.b32.xlu0 %v3815_v36, %s3582_s6 }
 0x2a3   :  { %1056 = vrot.lane.b32.xlu0 %v3815_v36, %s3583_s25 }
 0x2a7   :  { %418 = vrot.lane.b32.xlu0 %v3803_v32, %s3584_s20 }
 0x2fd   :  { %v247_v37 = vpop.permute.xlu0 %246  ;;  %v307_v40 = vpop.permute.xlu1 %306 }
 0x2fe   :  { %v253_v38 = vsel %vm248_vm2, %v247_v37, 0  ;;  %v313_v42 = vsel %vm311_vm3, %v307_v40, 0 }
 0x2ff   :  { %3002 = vmatpush3.bf16.xpose.msra.mxu1 %v253_v38 }
 0x300   :  { %3007 = vmatprep.subr.bf16.mxu1 %v3574_v15 }
 0x301   :  { %v358_v39 = vpop.permute.xlu0 %357 }
 0x305   :  { %v474_v41 = vpop.permute.xlu0 %473 }
 0x306   :  { %3004 = vmatmul.mubr.msk.bf16.vlgmr.msra.gmra.mrb[4].mxu1 %vm248_vm2, %v3803_v32 }
 0x307   :  { %3008 = vmatpush3.bf16.msra.mxu1 %v313_v42  ;;  %3009 = vmatprep.mubr.msk.bf16.mxu1 %vm3575_vm1, %v3574_v15 }
 0x308   :  { %3013 = vmatprep.subr.bf16.mxu1 %v3574_v15 }
 0x309   :  { %v590_v43 = vpop.permute.xlu0 %589 }
 0x30d   :  { %v827_v44 = vpop.permute.xlu0 %826 }
 0x30e   :  { %v832_v5 = vsel %vm248_vm2, %v827_v44, 0 }
 0x311   :  { %v942_v45 = vpop.permute.xlu0 %941 }
 0x312   :  { %v947_v7 = vsel %vm248_vm2, %v942_v45, 0 }
 0x315   :  { %v1057_v46 = vpop.permute.xlu0 %1056 }
 0x316   :  { %v1062_v9 = vsel %vm248_vm2, %v1057_v46, 0 }
 0x319   :  { %v419_v47 = vpop.permute.xlu0 %418 }
 0x31a   :  { %v424_v48 = vsel %vm311_vm3, %v419_v47, 0 }
 0x31b   :  { %3020 = vmatpush3.bf16.msra.mxu0 %v424_v48 }
 0x31c   :  { %3031 = vmatprep.subr.bf16.mxu0 %v3574_v15 }
 0x3d9   :  { %v289_v50 = vpop.f32.mrb[4].mxu1 }
 0x3da   :  { %v290_v51 = vadd.f32 %v3835_v49, %v289_v50  ;;  %v3005_v52 = vpop.f32.mrb[5].mxu1 }
 0x3db   :  { %v292_v53 = vpop.f32.mrb[6].mxu1 }
 0x3dc   :  { %v3006_v54 = vpop.f32.mrb[7].mxu1  ;;  %v295_v55 = vsel %vm248_vm2, %v290_v51, -inf }
 0x3dd   :  { %296 = vmax.xlane.f32.xlu1 %v295_v55  ;;  %v2849_v54 = vld [vmem:[#allocation3 + $0x1] ss:$0 sm:$0xff] }
 0x3ee   :  { %359 = vrot.lane.b32.xlu1 %v3803_v32, %s3581_s24 }
 0x3f2   :  { %475 = vrot.lane.b32.xlu1 %v3803_v32, %s3582_s6 }
 0x3f6   :  { %591 = vrot.lane.b32.xlu1 %v3803_v32, %s3583_s25 }
 0x3fa   :  { %715 = vrot.lane.b32.xlu1 %v3815_v36, %s3577_s4 }
 0x3fe   :  { %824 = vrot.lane.b32.xlu1 %v3815_v36, %s3578_s1 }
 0x402   :  { %939 = vrot.lane.b32.xlu1 %v3815_v36, %s3579_s2 }
 0x406   :  { %1054 = vrot.lane.b32.xlu1 %v3815_v36, %s3580_s22 }
 0x46a   :  { %v297_v56 = vpop.xlane.xlu1 %296 }
 0x46b   :  { %v298_v57 = vsub.f32 %v290_v51, %v297_v56 }
 0x46d   :  { %v299_v58 = vmul.f32 1.442695, %v298_v57 }
 0x46e   :  { %v360_v60 = vpop.permute.xlu1 %359 }
 0x46f   :  { %3302 = vpow2.f32 %v299_v58  ;;  %v365_v62 = vsel %vm248_vm2, %v360_v60, 0 }
 0x472   :  { %v476_v63 = vpop.permute.xlu1 %475 }
 0x473   :  { %v481_v0 = vsel %vm248_vm2, %v476_v63, 0 }
 0x476   :  { %v592_v1 = vpop.permute.xlu1 %591 }
 0x477   :  { %v597_v2 = vsel %vm248_vm2, %v592_v1, 0 }
 0x479   :  { %v3853_v59 = vpop.eup %3302 }
 0x47a   :  { %v305_v61 = vpack.c.bf16 %v3853_v59, %v3853_v59  ;;  %v716_v3 = vpop.permute.xlu1 %715 }
 0x47b   :  { %v721_v4 = vsel %vm248_vm2, %v716_v3, 0 }
 0x47c   :  { %3010 = vmatmul.mubr.msk.bf16.vlgmr.msra.gmra.mrb[8].mxu1 %vm248_vm2, %v305_v61 }
 0x47d   :  { %3014 = vmatpush3.bf16.xpose.msra.mxu1 %v365_v62  ;;  %3015 = vmatprep.mubr.msk.bf16.mxu1 %vm3575_vm1, %v3574_v15 }
 0x47e   :  { %3025 = vmatprep.subr.bf16.mxu1 %v3574_v15  ;;  %v825_v6 = vpop.permute.xlu1 %824 }
 0x482   :  { %v940_v8 = vpop.permute.xlu1 %939 }
 0x484   :  { %3016 = vmatmul.mubr.msk.bf16.vlgmr.msra.gmra.mrb[12].mxu1 %vm248_vm2, %v358_v39 }
 0x485   :  { %3026 = vmatpush3.bf16.xpose.msra.mxu1 %v481_v0  ;;  %3027 = vmatprep.mubr.msk.bf16.mxu1 %vm3575_vm1, %v3574_v15 }
 0x486   :  { %3037 = vmatprep.subr.bf16.mxu1 %v3574_v15  ;;  %v1055_v10 = vpop.permute.xlu1 %1054 }
 0x48c   :  { %3028 = vmatmul.mubr.msk.bf16.vlgmr.msra.gmra.mrb[16].mxu1 %vm248_vm2, %v474_v41 }
 0x48d   :  { %3038 = vmatpush3.bf16.xpose.msra.mxu1 %v597_v2  ;;  %3039 = vmatprep.mubr.msk.bf16.mxu1 %vm3575_vm1, %v3574_v15 }
 0x48e   :  { %3049 = vmatprep.subr.bf16.mxu1 %v3574_v15 }
 0x494   :  { %3040 = vmatmul.mubr.msk.bf16.vlgmr.msra.gmra.mrb[20].mxu1 %vm248_vm2, %v590_v43 }
 0x495   :  { %3050 = vmatpush3.bf16.xpose.msra.mxu1 %v721_v4  ;;  %3051 = vmatprep.mubr.msk.bf16.mxu1 %vm3575_vm1, %v3574_v15 }
 0x496   :  { %3061 = vmatprep.subr.bf16.mxu1 %v3574_v15 }
 0x49c   :  { %3052 = vmatmul.mubr.msk.bf16.vlgmr.msra.gmra.mrb[24].mxu1 %vm248_vm2, %v3815_v36 }
 0x49d   :  { %3062 = vmatpush3.bf16.xpose.msra.mxu1 %v832_v5  ;;  %3063 = vmatprep.mubr.msk.bf16.mxu1 %vm3575_vm1, %v3574_v15 }
 0x49e   :  { %3073 = vmatprep.subr.bf16.mxu1 %v3574_v15 }
 0x4a4   :  { %3064 = vmatmul.mubr.msk.bf16.vlgmr.msra.gmra.mrb[28].mxu1 %vm248_vm2, %v825_v6 }
 0x4a5   :  { %3074 = vmatpush3.bf16.xpose.msra.mxu1 %v947_v7  ;;  %3075 = vmatprep.mubr.msk.bf16.mxu1 %vm3575_vm1, %v3574_v15 }
 0x4a6   :  { %3085 = vmatprep.subr.bf16.mxu1 %v3574_v15 }
 0x4ac   :  { %3076 = vmatmul.mubr.msk.bf16.vlgmr.msra.gmra.mrb[32].mxu1 %vm248_vm2, %v940_v8 }
 0x4ad   :  { %3086 = vmatpush3.bf16.xpose.msra.mxu1 %v1062_v9  ;;  %3087 = vmatprep.mubr.msk.bf16.mxu1 %vm3575_vm1, %v3574_v15 }
 0x4ae   :  { %3097 = vmatprep.subr.bf16.mxu1 %v3574_v15 }
 0x4b4   :  { %3088 = vmatmul.mubr.msk.bf16.vlgmr.msra.gmra.mrb[36].mxu1 %vm248_vm2, %v1055_v10 }
 0x4b5   :  { %3101 = vmatprep.mubr.msk.bf16.mxu1 %vm3575_vm1, %v3574_v15 }
 0x54f   :  { %v3896_v11 = vpop.f32.mrb[8].mxu1 }
 0x550   :  { %v3011_v12 = vpop.f32.mrb[9].mxu1 }
 0x551   :  { %v352_v13 = vpop.f32.mrb[10].mxu1 }
 0x552   :  { %v3012_v14 = vpop.f32.mrb[11].mxu1 }
 0x557   :  { %v401_v16 = vpop.f32.mrb[12].mxu1 }
 0x558   :  { %v402_v17 = vadd.f32 %v3835_v49, %v401_v16  ;;  %v3017_v18 = vpop.f32.mrb[13].mxu1 }
 0x559   :  { %v404_v19 = vpop.f32.mrb[14].mxu1 }
 0x55a   :  { %v3018_v20 = vpop.f32.mrb[15].mxu1  ;;  %v407_v21 = vsel %vm248_vm2, %v402_v17, -inf }
 0x55b   :  { %408 = vmax.xlane.f32.xlu0 %v407_v21 }
 0x55f   :  { %v517_v22 = vpop.f32.mrb[16].mxu1 }
 0x560   :  { %v518_v23 = vadd.f32 %v3835_v49, %v517_v22  ;;  %v3029_v24 = vpop.f32.mrb[17].mxu1 }
 0x561   :  { %v520_v25 = vpop.f32.mrb[18].mxu1 }
 0x562   :  { %v3030_v26 = vpop.f32.mrb[19].mxu1  ;;  %v523_v27 = vsel %vm248_vm2, %v518_v23, -inf }
 0x563   :  { %524 = vmax.xlane.f32.xlu1 %v523_v27 }
 0x567   :  { %v633_v30 = vpop.f32.mrb[20].mxu1 }
 0x568   :  { %v3041_v31 = vpop.f32.mrb[21].mxu1  ;;  %v634_v53 = vadd.f32 %v3835_v49, %v633_v30 }
 0x569   :  { %v636_v33 = vpop.f32.mrb[22].mxu1 }
 0x56a   :  { %v3042_v34 = vpop.f32.mrb[23].mxu1  ;;  %v639_v56 = vsel %vm248_vm2, %v634_v53, -inf }
 0x56f   :  { %v757_v35 = vpop.f32.mrb[24].mxu1 }
 0x570   :  { %v3053_v37 = vpop.f32.mrb[25].mxu1  ;;  %v758_v55 = vadd.f32 %v2849_v54, %v757_v35 }
 0x571   :  { %650 = vrot.lane.b32.xlu0 %v3803_v32, %s3585_s12  ;;  %v760_v38 = vpop.f32.mrb[26].mxu1 }
 0x572   :  { %v3054_v39 = vpop.f32.mrb[27].mxu1  ;;  %v763_v58 = vsel %vm248_vm2, %v758_v55, -inf }
 0x574   :  { %534 = vrot.lane.b32.xlu1 %v3803_v32, %s3586_s3 }
 0x577   :  { %v868_v40 = vpop.f32.mrb[28].mxu1 }
 0x578   :  { %v3065_v41 = vpop.f32.mrb[29].mxu1  ;;  %v869_v32 = vadd.f32 %v2849_v54, %v868_v40 }
 0x579   :  { %v871_v42 = vpop.f32.mrb[30].mxu1 }
 0x57a   :  { %v3066_v43 = vpop.f32.mrb[31].mxu1  ;;  %v874_v61 = vsel %vm248_vm2, %v869_v32, -inf }
 0x57f   :  { %v983_v44 = vpop.f32.mrb[32].mxu1 }
 0x580   :  { %v3077_v45 = vpop.f32.mrb[33].mxu1  ;;  %v984_v60 = vadd.f32 %v2849_v54, %v983_v44 }
 0x581   :  { %v986_v46 = vpop.f32.mrb[34].mxu1 }
 0x582   :  { %v3078_v47 = vpop.f32.mrb[35].mxu1  ;;  %v989_v63 = vsel %vm248_vm2, %v984_v60, -inf }
 0x587   :  { %v1098_v48 = vpop.f32.mrb[36].mxu1 }
 0x588   :  { %v3089_v50 = vpop.f32.mrb[37].mxu1  ;;  %v1099_v57 = vadd.f32 %v2849_v54, %v1098_v48 }
 0x589   :  { %v1101_v51 = vpop.f32.mrb[38].mxu1 }
 0x58a   :  { %v3090_v52 = vpop.f32.mrb[39].mxu1  ;;  %v1104_v62 = vsel %vm248_vm2, %v1099_v57, -inf }
 0x590   :  { %640 = vmax.xlane.f32.xlu0 %v639_v56 }
 0x594   :  { %764 = vmax.xlane.f32.xlu0 %v763_v58 }
 0x598   :  { %875 = vmax.xlane.f32.xlu1 %v874_v61  ;;  %1105 = vmax.xlane.f32.xlu0 %v1104_v62 }
 0x59c   :  { %990 = vmax.xlane.f32.xlu1 %v989_v63 }
 0x5ad   :  { %885 = vrot.lane.b32.xlu1 %v3815_v36, %s3584_s20 }
 0x5ae   :  { %774 = vrot.lane.b32.xlu0 %v3815_v36, %s3576_s19  ;;  %s4458_s19 = sld [smem:[#allocation21_spill]] }
 0x5b1   :  { %1000 = vrot.lane.b32.xlu1 %v3815_v36, %s3586_s3 }
 0x5b5   :  { %1115 = vrot.lane.b32.xlu1 %v3815_v36, %s3585_s12 }
 0x5e8   :  { %v409_v49 = vpop.xlane.xlu0 %408 }
 0x5e9   :  { %v410_v0 = vsub.f32 %v402_v17, %v409_v49 }
 0x5eb   :  { %v411_v1 = vmul.f32 1.442695, %v410_v0 }
 0x5ec   :  { %v651_v10 = vpop.permute.xlu0 %650 }
 0x5ed   :  { %3304 = vpow2.f32 %v411_v1  ;;  %v656_v14 = vsel %vm311_vm3, %v651_v10, 0 }
 0x5f0   :  { %v525_v2 = vpop.xlane.xlu1 %524 }
 0x5f1   :  { %v526_v3 = vsub.f32 %v518_v23, %v525_v2 }
 0x5f3   :  { %v527_v4 = vmul.f32 1.442695, %v526_v3 }
 0x5f4   :  { %v535_v6 = vpop.permute.xlu1 %534 }
 0x5f5   :  { %3306 = vpow2.f32 %v527_v4  ;;  %v540_v9 = vsel %vm311_vm3, %v535_v6, 0 }
 0x5f7   :  { %v3305_v5 = vpop.eup %3304 }
 0x5f8   :  { %v413_v7 = vsel %vm248_vm2, %v3305_v5, 0.0  ;;  %v417_v8 = vpack.c.bf16 %v3305_v5, %v3305_v5 }
 0x5f9   :  { %414 = vadd.xlane.f32.xlu0 %v413_v7 }
 0x5fa   :  { %3022 = vmatmul.mubr.msk.bf16.vlgmr.msra.gmra.mrb[0].mxu0 %vm248_vm2, %v417_v8 }
 0x5fb   :  { %3032 = vmatpush3.bf16.msra.mxu0 %v540_v9  ;;  %3033 = vmatprep.mubr.msk.bf16.mxu0 %vm3575_vm1, %v3574_v15 }
 0x5fc   :  { %3043 = vmatprep.subr.bf16.mxu0 %v3574_v15 }
 0x5ff   :  { %v3307_v36 = vpop.eup %3306 }
 0x600   :  { %v529_v12 = vsel %vm248_vm2, %v3307_v36, 0.0  ;;  %v533_v13 = vpack.c.bf16 %v3307_v36, %v3307_v36 }
 0x601   :  { %530 = vadd.xlane.f32.xlu0 %v529_v12 }
 0x602   :  { %3034 = vmatmul.mubr.msk.bf16.vlgmr.msra.gmra.mrb[4].mxu0 %vm248_vm2, %v533_v13 }
 0x603   :  { %3044 = vmatpush3.bf16.msra.mxu0 %v656_v14  ;;  %3045 = vmatprep.mubr.msk.bf16.mxu0 %vm3575_vm1, %v3574_v15 }
 0x604   :  { %3055 = vmatprep.subr.bf16.mxu0 %v3574_v15 }
 0x61d   :  { %v641_v16 = vpop.xlane.xlu0 %640 }
 0x61e   :  { %v642_v17 = vsub.f32 %v634_v53, %v641_v16 }
 0x620   :  { %v643_v18 = vmul.f32 1.442695, %v642_v17 }
 0x621   :  { %v765_v19 = vpop.xlane.xlu0 %764 }
 0x622   :  { %3308 = vpow2.f32 %v643_v18  ;;  %v766_v20 = vsub.f32 %v758_v55, %v765_v19  ;;  %v301_v55 = vsel %vm248_vm2, %v3853_v59, 0.0 }
 0x624   :  { %v767_v21 = vmul.f32 1.442695, %v766_v20 }
 0x625   :  { %v876_v22 = vpop.xlane.xlu1 %875  ;;  %v1106_v23 = vpop.xlane.xlu0 %1105 }
 0x626   :  { %v877_v24 = vsub.f32 %v869_v32, %v876_v22  ;;  %v1107_v25 = vsub.f32 %v1099_v57, %v1106_v23  ;;  %3310 = vpow2.f32 %v767_v21 }
 0x628   :  { %v878_v26 = vmul.f32 1.442695, %v877_v24  ;;  %v1108_v27 = vmul.f32 1.442695, %v1107_v25 }
 0x629   :  { %v991_v30 = vpop.xlane.xlu1 %990  ;;  %v775_v35 = vpop.permute.xlu0 %774 }
 0x62a   :  { %3312 = vpow2.f32 %v878_v26  ;;  %v992_v31 = vsub.f32 %v984_v60, %v991_v30  ;;  %v780_v38 = vsel %vm311_vm3, %v775_v35, 0 }
 0x62b   :  { %3314 = vpow2.f32 %v1108_v27 }
 0x62c   :  { %v3309_v33 = vpop.eup %3308  ;;  %v993_v34 = vmul.f32 1.442695, %v992_v31 }
 0x62d   :  { %v649_v37 = vpack.c.bf16 %v3309_v33, %v3309_v33  ;;  %v886_v41 = vpop.permute.xlu1 %885  ;;  %v645_v51 = vsel %vm248_vm2, %v3309_v33, 0.0 }
 0x62e   :  { %3316 = vpow2.f32 %v993_v34  ;;  %v891_v45 = vsel %vm311_vm3, %v886_v41, 0  ;;  %v3281_v41 = vld [vmem:[%s4443_s8 + $0x8] sm:$0xff]  }
 0x62f   :  { %3046 = vmatmul.mubr.msk.bf16.vlgmr.msra.gmra.mrb[8].mxu0 %vm248_vm2, %v649_v37 }
 0x630   :  { %3056 = vmatpush3.bf16.msra.mxu0 %v780_v38  ;;  %3057 = vmatprep.mubr.msk.bf16.mxu0 %vm3575_vm1, %v3574_v15  ;;  %v3311_v39 = vpop.eup %3310  ;;  %v3280_v38 = vld [vmem:[%s4443_s8] sm:$0xff]  }
 0x631   :  { %3067 = vmatprep.subr.bf16.mxu0 %v3574_v15  ;;  %v773_v43 = vpack.c.bf16 %v3311_v39, %v3311_v39  ;;  %v1001_v50 = vpop.permute.xlu1 %1000  ;;  %v769_v52 = vsel %vm248_vm2, %v3311_v39, 0.0  ;;  %3098 = vmatpush3.bf16.msra.mxu1 %v3280_v38 }
 0x632   :  { %v1006_v54 = vsel %vm311_vm3, %v1001_v50, 0  ;;  %3099 = vmatprep.subr.bf16.mxu1 %v3574_v15 }
 0x634   :  { %v3313_v40 = vpop.eup %3312 }
 0x635   :  { %v880_v42 = vsel %vm248_vm2, %v3313_v40, 0.0  ;;  %v3315_v44 = vpop.eup %3314  ;;  %v884_v53 = vpack.c.bf16 %v3313_v40, %v3313_v40  ;;  %v1116_v56 = vpop.permute.xlu1 %1115  ;;  %3100 = vmatpush3.bf16.msra.mxu1 %v3281_v41 }
 0x636   :  { %881 = vadd.xlane.f32.xlu1 %v880_v42  ;;  %v1110_v48 = vsel %vm248_vm2, %v3315_v44, 0.0  ;;  %v1121_v57 = vsel %vm311_vm3, %v1116_v56, 0  ;;  %v1114_v58 = vpack.c.bf16 %v3315_v44, %v3315_v44  ;;  %3113 = vmatprep.subr.bf16.mxu1 %v3574_v15 }
 0x637   :  { %3058 = vmatmul.mubr.msk.bf16.vlgmr.msra.gmra.mrb[12].mxu0 %vm248_vm2, %v773_v43 }
 0x638   :  { %v3317_v46 = vpop.eup %3316  ;;  %3068 = vmatpush3.bf16.msra.mxu0 %v891_v45  ;;  %3069 = vmatprep.mubr.msk.bf16.mxu0 %vm3575_vm1, %v3574_v15 }
 0x639   :  { %v995_v47 = vsel %vm248_vm2, %v3317_v46, 0.0  ;;  %3079 = vmatprep.subr.bf16.mxu0 %v3574_v15  ;;  %v999_v32 = vpack.c.bf16 %v3317_v46, %v3317_v46 }
 0x63a   :  { %996 = vadd.xlane.f32.xlu0 %v995_v47  ;;  %1111 = vadd.xlane.f32.xlu1 %v1110_v48 }
 0x63e   :  { %646 = vadd.xlane.f32.xlu0 %v645_v51  ;;  %770 = vadd.xlane.f32.xlu1 %v769_v52 }
 0x63f   :  { %3070 = vmatmul.mubr.msk.bf16.vlgmr.msra.gmra.mrb[16].mxu0 %vm248_vm2, %v884_v53 }
 0x640   :  { %3080 = vmatpush3.bf16.msra.mxu0 %v1006_v54  ;;  %3081 = vmatprep.mubr.msk.bf16.mxu0 %vm3575_vm1, %v3574_v15 }
 0x641   :  { %3091 = vmatprep.subr.bf16.mxu0 %v3574_v15 }
 0x642   :  { %302 = vadd.xlane.f32.xlu0 %v301_v55 }
 0x647   :  { %3082 = vmatmul.mubr.msk.bf16.vlgmr.msra.gmra.mrb[20].mxu0 %vm248_vm2, %v999_v32 }
 0x648   :  { %3092 = vmatpush3.bf16.msra.mxu0 %v1121_v57  ;;  %3093 = vmatprep.mubr.msk.bf16.mxu0 %vm3575_vm1, %v3574_v15 }
 0x649   :  { %3105 = vmatprep.subr.bf16.mxu0 %v3574_v15 }
 0x64f   :  { %3094 = vmatmul.mubr.msk.bf16.vlgmr.msra.gmra.mrb[24].mxu0 %vm248_vm2, %v1114_v58 }
 0x650   :  { %3109 = vmatprep.mubr.msk.bf16.mxu0 %vm3575_vm1, %v3574_v15 }
 0x686   :  { %v415_v59 = vpop.xlane.xlu0 %414 }
 0x687   :  { %3318 = vrcp.f32 %v415_v59 }
 0x68e   :  { %v531_v60 = vpop.xlane.xlu0 %530 }
 0x68f   :  { %3320 = vrcp.f32 %v531_v60 }
 0x691   :  { %v3319_v63 = vpop.eup %3318 }
 0x699   :  { %v3321_v5 = vpop.eup %3320 }
 0x6c3   :  { %v882_v13 = vpop.xlane.xlu1 %881 }
 0x6c7   :  { %v997_v61 = vpop.xlane.xlu0 %996  ;;  %v1112_v14 = vpop.xlane.xlu1 %1111 }
 0x6cb   :  { %v647_v62 = vpop.xlane.xlu0 %646  ;;  %v771_v16 = vpop.xlane.xlu1 %770 }
 0x6cd   :  { %v460_v49 = vpop.f32.mrb[0].mxu0 }
 0x6ce   :  { %v466_v0 = vmul.f32 %v3319_v63, %v460_v49  ;;  %v3023_v1 = vpop.f32.mrb[1].mxu0 }
 0x6cf   :  { %v463_v2 = vpop.f32.mrb[2].mxu0  ;;  %v303_v3 = vpop.xlane.xlu0 %302 }
 0x6d0   :  { %3322 = vrcp.f32 %v303_v3  ;;  %v3024_v4 = vpop.f32.mrb[3].mxu0  ;;  %468 = vrot.lane.b32.xlu0 %v466_v0, %s3587_s23 }
 0x6d1   :  { %3324 = vrcp.f32 %v647_v62  ;;  %v3282_v4 = vld [vmem:[%s4445_s10] sm:$0xff]  }
 0x6d2   :  { %3326 = vrcp.f32 %v771_v16 }
 0x6d3   :  { %3328 = vrcp.f32 %v882_v13 }
 0x6d4   :  { %3330 = vrcp.f32 %v997_v61 }
 0x6d5   :  { %v576_v6 = vpop.f32.mrb[4].mxu0  ;;  %3332 = vrcp.f32 %v1112_v14 }
 0x6d6   :  { %v582_v7 = vmul.f32 %v3321_v5, %v576_v6  ;;  %v3035_v8 = vpop.f32.mrb[5].mxu0  ;;  %v135_v5 = vld [vmem:[%s4458_s19 + $0x8] sm:$0xff] }
 0x6d7   :  { %v579_v9 = vpop.f32.mrb[6].mxu0 }
 0x6d8   :  { %v3036_v36 = vpop.f32.mrb[7].mxu0  ;;  %584 = vrot.lane.b32.xlu1 %v582_v7, %s3568_s21 }
 0x6da   :  { %v3323_v10 = vpop.eup %3322 }
 0x6db   :  { %v355_v12 = vmul.f32 %v3323_v10, %v3896_v11  ;;  %v3325_v17 = vpop.eup %3324 }
 0x6dc   :  { %v3327_v23 = vpop.eup %3326 }
 0x6dd   :  { %356 = vst.msk [vmem:[#allocation2] sm:$0xff] %vm248_vm2, %v355_v12  ;;  %v3329_v30 = vpop.eup %3328 }
 0x6de   :  { %v3331_v39 = vpop.eup %3330 }
 0x6df   :  { %v3333_v46 = vpop.eup %3332 }
 0x702   :  { %v692_v18 = vpop.f32.mrb[8].mxu0 }
 0x703   :  { %v698_v19 = vmul.f32 %v3325_v17, %v692_v18  ;;  %v3047_v20 = vpop.f32.mrb[9].mxu0  ;;  %v3284_v18 = vld [vmem:[%s4444_s9] sm:$0xff]  }
 0x704   :  { %v695_v21 = vpop.f32.mrb[10].mxu0  ;;  %3106 = vmatpush3.bf16.msra.mxu0 %v3284_v18 }
 0x705   :  { %v3048_v22 = vpop.f32.mrb[11].mxu0  ;;  %700 = vrot.lane.b32.xlu0 %v698_v19, %s3588_s26  ;;  %v3285_v19 = vld [vmem:[%s4444_s9 + $0x8] sm:$0xff]   ;;  %3107 = vmatprep.subr.bf16.mxu0 %v3574_v15 }
 0x708   :  { %3108 = vmatpush3.bf16.msra.mxu0 %v3285_v19 }
 0x709   :  { %3121 = vmatprep.subr.bf16.mxu0 %v3574_v15 }
 0x70a   :  { %v816_v24 = vpop.f32.mrb[12].mxu0 }
 0x70b   :  { %v822_v11 = vmul.f32 %v3327_v23, %v816_v24  ;;  %v3059_v25 = vpop.f32.mrb[13].mxu0 }
 0x70c   :  { %v819_v26 = vpop.f32.mrb[14].mxu0  ;;  %v1444_v25 = vlaneseq }
 0x70d   :  { %823 = vst.msk [vmem:[#allocation2 + $0x8] sm:$0xff] %vm248_vm2, %v822_v11  ;;  %v3060_v27 = vpop.f32.mrb[15].mxu0 }
 0x70e   :  { %v4037_v26 = vshrl.u32 %v1444_v25, 7 }
 0x710   :  { %v1577_v27 = vsub.s32 1, %v4037_v26 }
 0x712   :  { %v927_v31 = vpop.f32.mrb[16].mxu0 }
 0x713   :  { %v933_v33 = vmul.f32 %v3329_v30, %v927_v31  ;;  %v3071_v34 = vpop.f32.mrb[17].mxu0  ;;  %v1387_v30 = vld [vmem:[#allocation11] sm:$0xf] }
 0x714   :  { %v930_v35 = vpop.f32.mrb[18].mxu0  ;;  %v1578_v31 = vrot.slane %v1387_v30, %v1577_v27 }
 0x715   :  { %v3072_v37 = vpop.f32.mrb[19].mxu0  ;;  %935 = vrot.lane.b32.xlu1 %v933_v33, %s3587_s23  ;;  %v1859_v33 = vsub.s32 3, %v4037_v26 }
 0x717   :  { %v1860_v34 = vrot.slane %v1387_v30, %v1859_v33 }
 0x71a   :  { %v1042_v40 = vpop.f32.mrb[20].mxu0 }
 0x71b   :  { %v1048_v42 = vmul.f32 %v3331_v39, %v1042_v40  ;;  %v3083_v43 = vpop.f32.mrb[21].mxu0 }
 0x71c   :  { %v1045_v44 = vpop.f32.mrb[22].mxu0 }
 0x71d   :  { %v3084_v45 = vpop.f32.mrb[23].mxu0  ;;  %1050 = vrot.lane.b32.xlu1 %v1048_v42, %s3568_s21 }
 0x71e   :  { %v2861_v45 = vld [vmem:[#allocation8] ss:$0 sm:$0xff] }
 0x722   :  { %v1157_v47 = vpop.f32.mrb[24].mxu0 }
 0x723   :  { %v1163_v48 = vmul.f32 %v3333_v46, %v1157_v47  ;;  %v3095_v50 = vpop.f32.mrb[25].mxu0 }
 0x724   :  { %v1160_v51 = vpop.f32.mrb[26].mxu0 }
 0x725   :  { %v3096_v52 = vpop.f32.mrb[27].mxu0  ;;  %1165 = vrot.lane.b32.xlu1 %v1163_v48, %s3588_s26 }
 0x742   :  { %v469_v53 = vpop.permute.xlu0 %468 }
 0x743   :  { %472 = vst.msk [vmem:[#allocation2] sm:$0xff] %vm471_vm4, %v469_v53  ;;  %v1446_v53 = vsub.s32 0, %v4037_v26 }
 0x74a   :  { %v585_v54 = vpop.permute.xlu1 %584 }
 0x74b   :  { %588 = vst.msk [vmem:[#allocation2] sm:$0xff] %vm587_vm5, %v585_v54 }
 0x777   :  { %v701_v55 = vpop.permute.xlu0 %700 }
 0x778   :  { %704 = vst.msk [vmem:[#allocation2] sm:$0xff] %vm703_vm6, %v701_v55 }
 0x77f   :  { %v1169_v58 = vld [vmem:[#allocation2] sm:$0xff] }
 0x787   :  { %v936_v56 = vpop.permute.xlu1 %935 }
 0x788   :  { %938 = vst.msk [vmem:[#allocation2 + $0x8] sm:$0xff] %vm471_vm4, %v936_v56 }
 0x78f   :  { %v1051_v32 = vpop.permute.xlu1 %1050 }
 0x790   :  { %1053 = vst.msk [vmem:[#allocation2 + $0x8] sm:$0xff] %vm587_vm5, %v1051_v32 }
 0x797   :  { %v1166_v57 = vpop.permute.xlu1 %1165 }
 0x798   :  { %1168 = vst.msk [vmem:[#allocation2 + $0x8] sm:$0xff] %vm703_vm6, %v1166_v57 }
 0x79f   :  { %v1170_v59 = vld [vmem:[#allocation2 + $0x8] sm:$0xff] }
 0x7a0   :  { %v1171_v60 = vpack.c.bf16 %v1170_v59, %v1169_v58  ;;  %v1447_v58 = vrot.slane %v1387_v30, %v1446_v53 }
 0x7a2   :  { %3102 = vmatmul.mubr.msk.bf16.vlgmr.msra.gmra.mrb[40].mxu1 %vm140_vm0, %v1171_v60 }
 0x7a3   :  { %3117 = vmatprep.mubr.msk.bf16.mxu1 %vm3575_vm1, %v3574_v15  ;;  %3114 = vmatpush3.bf16.msra.mxu1 %v3282_v4 }
 0x7a4   :  { %3115 = vmatprep.subr.bf16.mxu1 %v3574_v15 }
 0x875   :  { %v1225_v61 = vpop.f32.mrb[40].mxu1 }
 0x876   :  { %v3989_v62 = vadd.f32 %v1225_v61, %v3794_v28  ;;  %v3103_v63 = vpop.f32.mrb[41].mxu1  ;;  %v3283_v28 = vld [vmem:[%s4445_s10 + $0x8] sm:$0xff]  }
 0x877   :  { %v1228_v49 = vpop.f32.mrb[42].mxu1  ;;  %3116 = vmatpush3.bf16.msra.mxu1 %v3283_v28 }
 0x878   :  { %v3992_v0 = vadd.f32 %v1228_v49, %v3796_v29  ;;  %v3104_v1 = vpop.f32.mrb[43].mxu1  ;;  %v1232_v2 = vsel %vm140_vm0, %v3989_v62, 0.0  ;;  %v134_v29 = vld [vmem:[%s4458_s19] sm:$0xff]  ;;  %3127 = vmatprep.subr.bf16.mxu1 %v3574_v15 }
 0x879   :  { %1233 = vadd.xlane.f32.xlu0 %v1232_v2  ;;  %v136_v6 = vpack.c.bf16 %v135_v5, %v134_v29 }
 0x87a   :  { %v1235_v3 = vsel %vm140_vm0, %v3992_v0, 0.0 }
 0x87b   :  { %1236 = vadd.xlane.f32.xlu1 %v1235_v3  ;;  %3118 = vmatmul.mubr.msk.bf16.vlgmr.msra.gmra.mrb[44].mxu1 %vm140_vm0, %v136_v6  ;;  %v1718_v3 = vsub.s32 2, %v4037_v26 }
 0x87c   :  { %3129 = vmatprep.mubr.msk.bf16.mxu1 %vm3575_vm1, %v3574_v15 }
 0x87d   :  { %v1719_v4 = vrot.slane %v1387_v30, %v1718_v3 }
 0x906   :  { %v1234_v7 = vpop.xlane.xlu0 %1233 }
 0x907   :  { %v1238_v8 = vmul.f32 0.03125, %v1234_v7 }
 0x908   :  { %v1237_v9 = vpop.xlane.xlu1 %1236 }
 0x909   :  { %v1240_v36 = vsub.f32 %v3989_v62, %v1238_v8  ;;  %v1239_v10 = vmul.f32 0.03125, %v1237_v9 }
 0x90b   :  { %v1241_v12 = vsub.f32 %v3992_v0, %v1239_v10  ;;  %v1242_v13 = vmul.f32 %v1240_v36, %v1240_v36 }
 0x90d   :  { %v1244_v14 = vsel %vm140_vm0, %v1242_v13, 0.0  ;;  %v1243_v16 = vmul.f32 %v1241_v12, %v1241_v12 }
 0x90e   :  { %1245 = vadd.xlane.f32.xlu0 %v1244_v14 }
 0x90f   :  { %v1247_v17 = vsel %vm140_vm0, %v1243_v16, 0.0 }
 0x912   :  { %1248 = vadd.xlane.f32.xlu0 %v1247_v17 }
 0x94e   :  { %v1380_v20 = vpop.f32.mrb[44].mxu1 }
 0x94f   :  { %v4027_v21 = vpack.c.bf16 %v1380_v20, %v1380_v20  ;;  %v3119_v22 = vpop.f32.mrb[45].mxu1 }
 0x950   :  { %v1383_v23 = vpop.f32.mrb[46].mxu1 }
 0x951   :  { %1527 = vrot.lane.b32.xlu0 %v4027_v21, %s3578_s1  ;;  %v3120_v24 = vpop.f32.mrb[47].mxu1  ;;  %v4033_v11 = vpack.c.bf16 %v1383_v23, %v1383_v23  ;;  %v1402_v51 = vsel %vm248_vm2, %v4027_v21, 0 }
 0x953   :  { %v1962_v18 = vsel %vm248_vm2, %v4033_v11, 0 }
 0x955   :  { %1809 = vrot.lane.b32.xlu0 %v4027_v21, %s3580_s22 }
 0x959   :  { %2079 = vrot.lane.b32.xlu0 %v4033_v11, %s3578_s1 }
 0x95d   :  { %2208 = vrot.lane.b32.xlu0 %v4033_v11, %s3579_s2 }
 0x961   :  { %2337 = vrot.lane.b32.xlu0 %v4033_v11, %s3580_s22 }
 0x965   :  { %1580 = vrot.lane.b32.xlu0 %v1578_v31, %s3587_s23 }
 0x969   :  { %1862 = vrot.lane.b32.xlu0 %v1860_v34, %s3588_s26 }
 0x99b   :  { %v1246_v35 = vpop.xlane.xlu0 %1245 }
 0x99c   :  { %v1250_v37 = vmul.f32 0.03125, %v1246_v35 }
 0x99e   :  { %v1252_v38 = vadd.f32 1e-05, %v1250_v37 }
 0x99f   :  { %v1249_v39 = vpop.xlane.xlu0 %1248 }
 0x9a0   :  { %3334 = vrsqrt.f32 %v1252_v38  ;;  %v1251_v40 = vmul.f32 0.03125, %v1249_v39 }
 0x9a2   :  { %v1253_v41 = vadd.f32 1e-05, %v1251_v40  ;;  %v2868_v40 = vld [vmem:[#allocation6] ss:$0 sm:$0xff] }
 0x9a4   :  { %3336 = vrsqrt.f32 %v1253_v41 }
 0x9aa   :  { %v3335_v42 = vpop.eup %3334 }
 0x9ab   :  { %v1256_v43 = vmul.f32 %v3335_v42, %v1240_v36 }
 0x9ad   :  { %v1264_v47 = vmul.f32 %v2861_v45, %v1256_v43 }
 0x9ae   :  { %v3337_v44 = vpop.eup %3336 }
 0x9af   :  { %v1257_v46 = vmul.f32 %v3337_v44, %v1241_v12 }
 0x9b1   :  { %v1265_v48 = vmul.f32 %v2861_v45, %v1257_v46 }
 0x9b3   :  { %v1266_v50 = vpack.c.bf16 %v1265_v48, %v1264_v47 }
 0x9b5   :  { %3110 = vmatmul.mubr.msk.bf16.vlgmr.msra.gmra.mrb[28].mxu0 %vm140_vm0, %v1266_v50 }
 0x9b6   :  { %3122 = vmatpush3.bf16.xpose.msra.mxu0 %v1402_v51  ;;  %3123 = vmatprep.mubr.msk.bf16.mxu0 %vm3575_vm1, %v3574_v15 }
 0x9b7   :  { %3133 = vmatprep.subr.bf16.mxu0 %v3574_v15 }
 0x9c3   :  { %v1528_v52 = vpop.permute.xlu0 %1527 }
 0x9c4   :  { %v1533_v55 = vsel %vm248_vm2, %v1528_v52, 0 }
 0x9c7   :  { %v1810_v60 = vpop.permute.xlu0 %1809 }
 0x9c8   :  { %v1815_v14 = vsel %vm248_vm2, %v1810_v60, 0 }
 0x9cb   :  { %v2080_v63 = vpop.permute.xlu0 %2079 }
 0x9cc   :  { %v2085_v22 = vsel %vm248_vm2, %v2080_v63, 0 }
 0x9cf   :  { %v2209_v49 = vpop.permute.xlu0 %2208 }
 0x9d0   :  { %v2214_v25 = vsel %vm248_vm2, %v2209_v49, 0 }
 0x9d3   :  { %v2338_v2 = vpop.permute.xlu0 %2337 }
 0x9d4   :  { %v2343_v34 = vsel %vm248_vm2, %v2338_v2, 0 }
 0x9d7   :  { %v1581_v28 = vpop.permute.xlu0 %1580 }
 0x9db   :  { %v1863_v5 = vpop.permute.xlu0 %1862 }
 0xa88   :  { %v1320_v54 = vpop.f32.mrb[28].mxu0 }
 0xa89   :  { %v3111_v56 = vpop.f32.mrb[29].mxu0  ;;  %v1390_v32 = vpack.c.bf16 %v1320_v54, %v1320_v54  ;;  %v1583_v29 = vmul.f32 %v1581_v28, %v1320_v54  ;;  %v1865_v6 = vmul.f32 %v1863_v5, %v1320_v54  ;;  %v1448_v7 = vmul.f32 %v1447_v58, %v1320_v54 }
 0xa8a   :  { %v4059_v57 = vpop.f32.mrb[30].mxu0 }
 0xa8b   :  { %1525 = vrot.lane.b32.xlu1 %v1390_v32, %s3578_s1  ;;  %v3112_v59 = vpop.f32.mrb[31].mxu0  ;;  %3124 = vmatmul.mubr.msk.bf16.vlgmr.msra.gmra.mrb[32].mxu0 %vm248_vm2, %v1390_v32  ;;  %v4068_v61 = vmul.f32 %v1447_v58, %v4059_v57  ;;  %v1950_v1 = vpack.c.bf16 %v4059_v57, %v4059_v57  ;;  %v1449_v8 = vsel %vm248_vm2, %v1448_v7, 0.0  ;;  %v2127_v30 = vmul.f32 %v1581_v28, %v4059_v57 }
 0xa8c   :  { %3134 = vmatpush3.bf16.xpose.msra.mxu0 %v1533_v55  ;;  %3135 = vmatprep.mubr.msk.bf16.mxu0 %vm3575_vm1, %v3574_v15  ;;  %v2385_v31 = vmul.f32 %v1863_v5, %v4059_v57 }
 0xa8d   :  { %3145 = vmatprep.subr.bf16.mxu0 %v3574_v15  ;;  %v2005_v35 = vsel %vm248_vm2, %v4068_v61, 0.0 }
 0xa8f   :  { %1668 = vrot.lane.b32.xlu1 %v4027_v21, %s3579_s2 }
 0xa93   :  { %1666 = vrot.lane.b32.xlu1 %v1390_v32, %s3579_s2 }
 0xa97   :  { %1807 = vrot.lane.b32.xlu1 %v1390_v32, %s3580_s22 }
 0xa9b   :  { %2077 = vrot.lane.b32.xlu1 %v1950_v1, %s3578_s1 }
 0xa9f   :  { %2206 = vrot.lane.b32.xlu1 %v1950_v1, %s3579_s2 }
 0xaa3   :  { %2335 = vrot.lane.b32.xlu1 %v1950_v1, %s3580_s22 }
 0xaa7   :  { %1721 = vrot.lane.b32.xlu1 %v1719_v4, %s3568_s21 }
 0xaab   :  { %1585 = vrot.lane.b32.xlu1 %v1583_v29, %s3578_s1 }
 0xaaf   :  { %1867 = vrot.lane.b32.xlu1 %v1865_v6, %s3580_s22 }
 0xad3   :  { %1450 = vadd.xlane.f32.xlu1 %v1449_v8 }
 0xae4   :  { %1474 = vrot.lane.b32.xlu1 %v4027_v21, %s3577_s4 }
 0xae8   :  { %1753 = vrot.lane.b32.xlu1 %v4027_v21, %s3582_s6 }
 0xafd   :  { %v1526_v9 = vpop.permute.xlu1 %1525 }
 0xafe   :  { %3136 = vmatmul.mubr.msk.bf16.vlgmr.msra.gmra.mrb[36].mxu0 %vm248_vm2, %v1526_v9 }
 0xaff   :  { %3147 = vmatprep.mubr.msk.bf16.mxu0 %vm3575_vm1, %v3574_v15 }
 0xb01   :  { %v1669_v36 = vpop.permute.xlu1 %1668 }
 0xb02   :  { %v1674_v10 = vsel %vm248_vm2, %v1669_v36, 0 }
 0xb03   :  { %3146 = vmatpush3.bf16.xpose.msra.mxu0 %v1674_v10 }
 0xb04   :  { %3157 = vmatprep.subr.bf16.mxu0 %v3574_v15 }
 0xb05   :  { %v1667_v12 = vpop.permute.xlu1 %1666 }
 0xb09   :  { %v1808_v13 = vpop.permute.xlu1 %1807 }
 0xb0a   :  { %3148 = vmatmul.mubr.msk.bf16.vlgmr.msra.gmra.mrb[40].mxu0 %vm248_vm2, %v1667_v12 }
 0xb0b   :  { %3158 = vmatpush3.bf16.xpose.msra.mxu0 %v1815_v14  ;;  %3159 = vmatprep.mubr.msk.bf16.mxu0 %vm3575_vm1, %v3574_v15 }
 0xb0c   :  { %3169 = vmatprep.subr.bf16.mxu0 %v3574_v15 }
 0xb0d   :  { %v2078_v16 = vpop.permute.xlu1 %2077 }
 0xb11   :  { %v2207_v17 = vpop.permute.xlu1 %2206 }
 0xb12   :  { %3160 = vmatmul.mubr.msk.bf16.vlgmr.msra.gmra.mrb[44].mxu0 %vm248_vm2, %v1808_v13 }
 0xb13   :  { %3170 = vmatpush3.bf16.xpose.msra.mxu0 %v1962_v18  ;;  %3171 = vmatprep.mubr.msk.bf16.mxu0 %vm3575_vm1, %v3574_v15  ;;  %v2877_v18 = vld [vmem:[#allocation6 + $0x1] ss:$0 sm:$0xff] }
 0xb14   :  { %3181 = vmatprep.subr.bf16.mxu0 %v3574_v15 }
 0xb15   :  { %v2336_v19 = vpop.permute.xlu1 %2335 }
 0xb19   :  { %v1722_v20 = vpop.permute.xlu1 %1721 }
 0xb1a   :  { %v1724_v23 = vmul.f32 %v1722_v20, %v1320_v54  ;;  %v2256_v24 = vmul.f32 %v1722_v20, %v4059_v57  ;;  %3172 = vmatmul.mubr.msk.bf16.vlgmr.msra.gmra.mrb[48].mxu0 %vm248_vm2, %v1950_v1 }
 0xb1b   :  { %3182 = vmatpush3.bf16.xpose.msra.mxu0 %v2085_v22  ;;  %3183 = vmatprep.mubr.msk.bf16.mxu0 %vm3575_vm1, %v3574_v15 }
 0xb1c   :  { %1726 = vrot.lane.b32.xlu0 %v1724_v23, %s3579_s2  ;;  %2258 = vrot.lane.b32.xlu1 %v2256_v24, %s3579_s2 }
 0xb1d   :  { %3193 = vmatprep.subr.bf16.mxu0 %v3574_v15  ;;  %v1586_v37 = vpop.permute.xlu1 %1585 }
 0xb1e   :  { %v1588_v38 = vsel %vm248_vm2, %v1586_v37, 0.0 }
 0xb20   :  { %1612 = vrot.lane.b32.xlu0 %v4027_v21, %s3581_s24 }
 0xb21   :  { %v1868_v39 = vpop.permute.xlu1 %1867 }
 0xb22   :  { %3184 = vmatmul.mubr.msk.bf16.vlgmr.msra.gmra.mrb[52].mxu0 %vm248_vm2, %v2078_v16  ;;  %v1870_v57 = vsel %vm248_vm2, %v1868_v39, 0.0 }
 0xb23   :  { %3194 = vmatpush3.bf16.xpose.msra.mxu0 %v2214_v25  ;;  %3195 = vmatprep.mubr.msk.bf16.mxu0 %vm3575_vm1, %v3574_v15 }
 0xb24   :  { %2129 = vrot.lane.b32.xlu0 %v2127_v30, %s3578_s1  ;;  %3205 = vmatprep.subr.bf16.mxu0 %v3574_v15 }
 0xb28   :  { %2387 = vrot.lane.b32.xlu0 %v2385_v31, %s3580_s22 }
 0xb2a   :  { %3196 = vmatmul.mubr.msk.bf16.vlgmr.msra.gmra.mrb[56].mxu0 %vm248_vm2, %v2207_v17 }
 0xb2b   :  { %3206 = vmatpush3.bf16.xpose.msra.mxu0 %v2343_v34  ;;  %3207 = vmatprep.mubr.msk.bf16.mxu0 %vm3575_vm1, %v3574_v15 }
 0xb2c   :  { %3217 = vmatprep.subr.bf16.mxu0 %v3574_v15 }
 0xb32   :  { %3208 = vmatmul.mubr.msk.bf16.vlgmr.msra.gmra.mrb[60].mxu0 %vm248_vm2, %v2336_v19 }
 0xb33   :  { %3221 = vmatprep.mubr.msk.bf16.mxu0 %vm3575_vm1, %v3574_v15 }
 0xb47   :  { %2006 = vadd.xlane.f32.xlu0 %v2005_v35 }
 0xb4b   :  { %1589 = vadd.xlane.f32.xlu0 %v1588_v38 }
 0xb5e   :  { %v1438_v41 = vpop.f32.mrb[32].mxu0 }
 0xb5f   :  { %v1439_v42 = vadd.f32 %v2868_v40, %v1438_v41  ;;  %v3125_v43 = vpop.f32.mrb[33].mxu0 }
 0xb60   :  { %v1441_v44 = vpop.f32.mrb[34].mxu0  ;;  %v4137_v45 = vpop.xlane.xlu1 %1450 }
 0xb61   :  { %v3126_v46 = vpop.f32.mrb[35].mxu0  ;;  %v1452_v47 = vsel %vm248_vm2, %v1439_v42, -inf }
 0xb62   :  { %1453 = vmax.xlane.f32.xlu0 %v1452_v47 }
 0xb64   :  { %v1475_v48 = vpop.permute.xlu1 %1474 }
 0xb65   :  { %v1480_v50 = vsel %vm311_vm3, %v1475_v48, 0 }
 0xb66   :  { %3128 = vmatpush3.bf16.msra.mxu1 %v1480_v50 }
 0xb67   :  { %3139 = vmatprep.subr.bf16.mxu1 %v3574_v15 }
 0xb68   :  { %v4142_v51 = vpop.permute.xlu1 %1753 }
 0xb8e   :  { %v2259_v52 = vpop.permute.xlu1 %2258  ;;  %v1727_v54 = vpop.permute.xlu0 %1726 }
 0xb8f   :  { %v2261_v55 = vsel %vm248_vm2, %v2259_v52, 0.0  ;;  %v1729_v56 = vsel %vm248_vm2, %v1727_v54, 0.0 }
 0xb90   :  { %2262 = vadd.xlane.f32.xlu0 %v2261_v55  ;;  %1730 = vadd.xlane.f32.xlu1 %v1729_v56 }
 0xb92   :  { %v1613_v32 = vpop.permute.xlu0 %1612 }
 0xb93   :  { %v1618_v55 = vsel %vm311_vm3, %v1613_v32, 0 }
 0xb94   :  { %1871 = vadd.xlane.f32.xlu1 %v1870_v57 }
 0xb96   :  { %v2130_v58 = vpop.permute.xlu0 %2129 }
 0xb97   :  { %v2132_v59 = vsel %vm248_vm2, %v2130_v58, 0.0 }
 0xb98   :  { %2133 = vadd.xlane.f32.xlu1 %v2132_v59 }
 0xb9a   :  { %v2388_v4 = vpop.permute.xlu0 %2387 }
 0xb9b   :  { %v2390_v28 = vsel %vm248_vm2, %v2388_v4, 0.0 }
 0xba9   :  { %1894 = vrot.lane.b32.xlu1 %v4027_v21, %s3583_s25 }
 0xbd1   :  { %v1569_v60 = vpop.f32.mrb[36].mxu0 }
 0xbd2   :  { %v4150_v61 = vadd.f32 %v2868_v40, %v1569_v60  ;;  %v3137_v63 = vpop.f32.mrb[37].mxu0 }
 0xbd3   :  { %v1572_v49 = vpop.f32.mrb[38].mxu0 }
 0xbd4   :  { %v3138_v1 = vpop.f32.mrb[39].mxu0  ;;  %v1591_v2 = vsel %vm248_vm2, %v4150_v61, -inf  ;;  %v4159_v9 = vpop.xlane.xlu0 %2006 }
 0xbd5   :  { %1592 = vmax.xlane.f32.xlu0 %v1591_v2 }
 0xbd8   :  { %v4165_v17 = vpop.xlane.xlu0 %1589 }
 0xbd9   :  { %2391 = vadd.xlane.f32.xlu0 %v2390_v28 }
 0xbdd   :  { %v1710_v29 = vpop.f32.mrb[40].mxu0 }
 0xbde   :  { %v4155_v5 = vadd.f32 %v2868_v40, %v1710_v29  ;;  %v3149_v6 = vpop.f32.mrb[41].mxu0 }
 0xbdf   :  { %v1713_v7 = vpop.f32.mrb[42].mxu0 }
 0xbe0   :  { %v3150_v21 = vpop.f32.mrb[43].mxu0  ;;  %v1732_v8 = vsel %vm248_vm2, %v4155_v5, -inf }
 0xbe1   :  { %1733 = vmax.xlane.f32.xlu0 %v1732_v8 }
 0xbe5   :  { %v1851_v36 = vpop.f32.mrb[44].mxu0 }
 0xbe6   :  { %v4161_v10 = vadd.f32 %v2868_v40, %v1851_v36  ;;  %v3161_v12 = vpop.f32.mrb[45].mxu0 }
 0xbe7   :  { %v1854_v13 = vpop.f32.mrb[46].mxu0 }
 0xbe8   :  { %v3162_v14 = vpop.f32.mrb[47].mxu0  ;;  %v1873_v16 = vsel %vm248_vm2, %v4161_v10, -inf  ;;  %v1759_v13 = vsel %vm311_vm3, %v4142_v51, 0 }
 0xbe9   :  { %1874 = vmax.xlane.f32.xlu0 %v1873_v16 }
 0xbed   :  { %v1998_v19 = vpop.f32.mrb[48].mxu0 }
 0xbee   :  { %v4167_v20 = vadd.f32 %v2877_v18, %v1998_v19  ;;  %v3173_v22 = vpop.f32.mrb[49].mxu0 }
 0xbef   :  { %v1454_v23 = vpop.xlane.xlu0 %1453  ;;  %v2001_v24 = vpop.f32.mrb[50].mxu0 }
 0xbf0   :  { %v4170_v25 = vmax.f32 %v1454_v23, %v4137_v45  ;;  %v3174_v30 = vpop.f32.mrb[51].mxu0  ;;  %v2008_v31 = vsel %vm248_vm2, %v4167_v20, -inf }
 0xbf1   :  { %2009 = vmax.xlane.f32.xlu0 %v2008_v31 }
 0xbf2   :  { %v1456_v34 = vsub.f32 %v1439_v42, %v4170_v25 }
 0xbf4   :  { %v1457_v35 = vmul.f32 1.442695, %v1456_v34 }
 0xbf5   :  { %v2121_v37 = vpop.f32.mrb[52].mxu0 }
 0xbf6   :  { %3338 = vpow2.f32 %v1457_v35  ;;  %v4175_v38 = vadd.f32 %v2877_v18, %v2121_v37  ;;  %v3185_v39 = vpop.f32.mrb[53].mxu0 }
 0xbf7   :  { %v2124_v40 = vpop.f32.mrb[54].mxu0 }
 0xbf8   :  { %v3186_v41 = vpop.f32.mrb[55].mxu0  ;;  %v2135_v43 = vsel %vm248_vm2, %v4175_v38, -inf }
 0xbf9   :  { %2136 = vmax.xlane.f32.xlu0 %v2135_v43 }
 0xbfd   :  { %v2250_v44 = vpop.f32.mrb[56].mxu0 }
 0xbfe   :  { %v4179_v46 = vadd.f32 %v2877_v18, %v2250_v44  ;;  %v3197_v47 = vpop.f32.mrb[57].mxu0 }
 0xbff   :  { %v2253_v48 = vpop.f32.mrb[58].mxu0 }
 0xc00   :  { %v4181_v50 = vpop.eup %3338  ;;  %v3198_v42 = vpop.f32.mrb[59].mxu0  ;;  %v2264_v52 = vsel %vm248_vm2, %v4179_v46, -inf }
 0xc01   :  { %2265 = vmax.xlane.f32.xlu0 %v2264_v52  ;;  %v1467_v54 = vpack.c.bf16 %v4181_v50, %v4181_v50 }
 0xc03   :  { %3130 = vmatmul.mubr.msk.bf16.vlgmr.msra.gmra.mrb[48].mxu1 %vm248_vm2, %v1467_v54 }
 0xc04   :  { %3140 = vmatpush3.bf16.msra.mxu1 %v1618_v55  ;;  %3141 = vmatprep.mubr.msk.bf16.mxu1 %vm3575_vm1, %v3574_v15 }
 0xc05   :  { %v2379_v56 = vpop.f32.mrb[60].mxu0  ;;  %3151 = vmatprep.subr.bf16.mxu1 %v3574_v15 }
 0xc06   :  { %v4192_v57 = vadd.f32 %v2877_v18, %v2379_v56  ;;  %v3209_v58 = vpop.f32.mrb[61].mxu0 }
 0xc07   :  { %v2382_v59 = vpop.f32.mrb[62].mxu0 }
 0xc08   :  { %v3210_v60 = vpop.f32.mrb[63].mxu0  ;;  %v2393_v63 = vsel %vm248_vm2, %v4192_v57, -inf }
 0xc09   :  { %2394 = vmax.xlane.f32.xlu1 %v2393_v63 }
 0xc17   :  { %2026 = vrot.lane.b32.xlu0 %v4033_v11, %s3577_s4 }
 0xc1b   :  { %2152 = vrot.lane.b32.xlu0 %v4033_v11, %s3581_s24 }
 0xc1d   :  { %v4204_v32 = vpop.xlane.xlu0 %2262  ;;  %v4213_v29 = vpop.xlane.xlu1 %1730 }
 0xc1f   :  { %2281 = vrot.lane.b32.xlu0 %v4033_v11, %s3582_s6 }
 0xc21   :  { %v4220_v8 = vpop.xlane.xlu1 %1871 }
 0xc23   :  { %2410 = vrot.lane.b32.xlu0 %v4033_v11, %s3583_s25 }
 0xc62   :  { %v1593_v49 = vpop.xlane.xlu0 %1592 }
 0xc63   :  { %v4207_v1 = vmax.f32 %v1593_v49, %v4165_v17 }
 0xc65   :  { %v1595_v2 = vsub.f32 %v4150_v61, %v4207_v1 }
 0xc66   :  { %v4211_v28 = vpop.xlane.xlu0 %2391 }
 0xc67   :  { %v1596_v4 = vmul.f32 1.442695, %v1595_v2 }
 0xc69   :  { %3340 = vpow2.f32 %v1596_v4 }
 0xc6e   :  { %v1734_v6 = vpop.xlane.xlu0 %1733 }
 0xc6f   :  { %v4216_v7 = vmax.f32 %v1734_v6, %v4213_v29 }
 0xc71   :  { %v1736_v11 = vsub.f32 %v4155_v5, %v4216_v7  ;;  %v4232_v5 = vpop.xlane.xlu1 %2133 }
 0xc73   :  { %v3341_v21 = vpop.eup %3340  ;;  %v1737_v36 = vmul.f32 1.442695, %v1736_v11 }
 0xc74   :  { %v1601_v12 = vsel %vm248_vm2, %v3341_v21, 0.0  ;;  %v1606_v61 = vpack.c.bf16 %v3341_v21, %v3341_v21 }
 0xc75   :  { %3342 = vpow2.f32 %v1737_v36  ;;  %1602 = vadd.xlane.f32.xlu1 %v1601_v12  ;;  %v1895_v23 = vpop.permute.xlu1 %1894 }
 0xc76   :  { %3142 = vmatmul.mubr.msk.bf16.vlgmr.msra.gmra.mrb[52].mxu1 %vm248_vm2, %v1606_v61  ;;  %v1875_v14 = vpop.xlane.xlu0 %1874  ;;  %v1900_v35 = vsel %vm311_vm3, %v1895_v23, 0 }
 0xc77   :  { %3152 = vmatpush3.bf16.msra.mxu1 %v1759_v13  ;;  %v4227_v16 = vmax.f32 %v1875_v14, %v4220_v8  ;;  %3153 = vmatprep.mubr.msk.bf16.mxu1 %vm3575_vm1, %v3574_v15 }
 0xc78   :  { %3163 = vmatprep.subr.bf16.mxu1 %v3574_v15 }
 0xc79   :  { %v1877_v18 = vsub.f32 %v4161_v10, %v4227_v16 }
 0xc7b   :  { %v1878_v19 = vmul.f32 1.442695, %v1877_v18 }
 0xc7d   :  { %3344 = vpow2.f32 %v1878_v19 }
 0xc7e   :  { %v2010_v51 = vpop.xlane.xlu0 %2009 }
 0xc7f   :  { %v3343_v22 = vpop.eup %3342  ;;  %v4237_v24 = vmax.f32 %v2010_v51, %v4159_v9  ;;  %v1462_v51 = vsel %vm248_vm2, %v4181_v50, 0.0 }
 0xc80   :  { %v1742_v30 = vsel %vm248_vm2, %v3343_v22, 0.0  ;;  %v1747_v31 = vpack.c.bf16 %v3343_v22, %v3343_v22 }
 0xc81   :  { %v2012_v34 = vsub.f32 %v4167_v20, %v4237_v24  ;;  %1743 = vadd.xlane.f32.xlu1 %v1742_v30  ;;  %v1459_v30 = vsub.f32 %v4137_v45, %v4170_v25  ;;  %v1880_v45 = vsub.f32 %v4220_v8, %v4227_v16  ;;  %v1739_v8 = vsub.f32 %v4213_v29, %v4216_v7 }
 0xc82   :  { %3154 = vmatmul.mubr.msk.bf16.vlgmr.msra.gmra.mrb[56].mxu1 %vm248_vm2, %v1747_v31 }
 0xc83   :  { %3164 = vmatpush3.bf16.msra.mxu1 %v1900_v35  ;;  %3165 = vmatprep.mubr.msk.bf16.mxu1 %vm3575_vm1, %v3574_v15  ;;  %v2013_v10 = vmul.f32 1.442695, %v2012_v34  ;;  %v1460_v31 = vmul.f32 1.442695, %v1459_v30  ;;  %v4294_v34 = vld [vmem:[#allocation12] sm:$0xf] }
 0xc84   :  { %3175 = vmatprep.subr.bf16.mxu1 %v3574_v15  ;;  %v4299_v50 = vrot.slane %v4294_v34, %v1446_v53  ;;  %v1881_v25 = vmul.f32 1.442695, %v1880_v45 }
 0xc85   :  { %3346 = vpow2.f32 %v2013_v10 }
 0xc86   :  { %v2137_v37 = vpop.xlane.xlu0 %2136 }
 0xc87   :  { %v3345_v39 = vpop.eup %3344  ;;  %v4248_v40 = vmax.f32 %v2137_v37, %v4232_v5 }
 0xc88   :  { %v1883_v20 = vsel %vm248_vm2, %v3345_v39, 0.0  ;;  %v1888_v41 = vpack.c.bf16 %v3345_v39, %v3345_v39 }
 0xc89   :  { %v2139_v43 = vsub.f32 %v4175_v38, %v4248_v40  ;;  %1884 = vadd.xlane.f32.xlu1 %v1883_v20 }
 0xc8a   :  { %3166 = vmatmul.mubr.msk.bf16.vlgmr.msra.gmra.mrb[60].mxu1 %vm248_vm2, %v1888_v41 }
 0xc8b   :  { %v2140_v44 = vmul.f32 1.442695, %v2139_v43  ;;  %3177 = vmatprep.mubr.msk.bf16.mxu1 %vm3575_vm1, %v3574_v15 }
 0xc8d   :  { %3348 = vpow2.f32 %v2140_v44 }
 0xc8e   :  { %v2266_v47 = vpop.xlane.xlu0 %2265 }
 0xc8f   :  { %v4257_v48 = vmax.f32 %v2266_v47, %v4204_v32  ;;  %v3347_v54 = vpop.eup %3346 }
 0xc90   :  { %v2023_v58 = vpack.c.bf16 %v3347_v54, %v3347_v54  ;;  %v2018_v23 = vsel %vm248_vm2, %v3347_v54, 0.0 }
 0xc91   :  { %v2268_v42 = vsub.f32 %v4179_v46, %v4257_v48  ;;  %v2271_v52 = vsub.f32 %v4204_v32, %v4257_v48 }
 0xc92   :  { %v2027_v38 = vpop.permute.xlu0 %2026 }
 0xc93   :  { %v2269_v55 = vmul.f32 1.442695, %v2268_v42  ;;  %v2032_v56 = vsel %vm311_vm3, %v2027_v38, 0 }
 0xc94   :  { %3176 = vmatpush3.bf16.msra.mxu1 %v2032_v56 }
 0xc95   :  { %3350 = vpow2.f32 %v2269_v55  ;;  %3187 = vmatprep.subr.bf16.mxu1 %v3574_v15  ;;  %v1598_v55 = vsub.f32 %v4165_v17, %v4207_v1  ;;  %v4318_v17 = vrot.slane %v4294_v34, %v1577_v27 }
 0xc96   :  { %v2153_v59 = vpop.permute.xlu0 %2152  ;;  %v2395_v60 = vpop.xlane.xlu1 %2394 }
 0xc97   :  { %v3349_v63 = vpop.eup %3348  ;;  %v2158_v49 = vsel %vm311_vm3, %v2153_v59, 0  ;;  %v2396_v46 = vmax.f32 %v2395_v60, %v4211_v28  ;;  %3178 = vmatmul.mubr.msk.bf16.vlgmr.msra.gmra.mrb[64].mxu1 %vm248_vm2, %v2023_v58  ;;  %v1599_v56 = vmul.f32 1.442695, %v1598_v55 }
 0xc98   :  { %3188 = vmatpush3.bf16.msra.mxu1 %v2158_v49  ;;  %v2145_v2 = vsel %vm248_vm2, %v3349_v63, 0.0  ;;  %3189 = vmatprep.mubr.msk.bf16.mxu1 %vm3575_vm1, %v3574_v15  ;;  %v2150_v36 = vpack.c.bf16 %v3349_v63, %v3349_v63  ;;  %v1740_v63 = vmul.f32 1.442695, %v1739_v8 }
 0xc99   :  { %v2397_v4 = vsub.f32 %v4192_v57, %v2396_v46  ;;  %v2400_v6 = vsub.f32 %v4211_v28, %v2396_v46  ;;  %2146 = vadd.xlane.f32.xlu0 %v2145_v2  ;;  %3199 = vmatprep.subr.bf16.mxu1 %v3574_v15 }
 0xc9a   :  { %v2282_v21 = vpop.permute.xlu0 %2281 }
 0xc9b   :  { %v2398_v11 = vmul.f32 1.442695, %v2397_v4  ;;  %v2287_v61 = vsel %vm311_vm3, %v2282_v21, 0  ;;  %v2401_v53 = vmul.f32 1.442695, %v2400_v6 }
 0xc9d   :  { %3352 = vpow2.f32 %v2398_v11 }
 0xc9e   :  { %v2411_v57 = vpop.permute.xlu0 %2410  ;;  %3354 = vpow2.f32 %v1460_v31 }
 0xc9f   :  { %v3351_v12 = vpop.eup %3350  ;;  %3190 = vmatmul.mubr.msk.bf16.vlgmr.msra.gmra.mrb[68].mxu1 %vm248_vm2, %v2150_v36  ;;  %v2416_v18 = vsel %vm311_vm3, %v2411_v57, 0  ;;  %3356 = vpow2.f32 %v1881_v25  ;;  %v2272_v25 = vmul.f32 1.442695, %v2271_v52 }
 0xca0   :  { %3200 = vmatpush3.bf16.msra.mxu1 %v2287_v61  ;;  %v2274_v13 = vsel %vm248_vm2, %v3351_v12, 0.0  ;;  %3201 = vmatprep.mubr.msk.bf16.mxu1 %vm3575_vm1, %v3574_v15  ;;  %v2279_v28 = vpack.c.bf16 %v3351_v12, %v3351_v12  ;;  %3358 = vpow2.f32 %v2401_v53 }
 0xca1   :  { %2275 = vadd.xlane.f32.xlu1 %v2274_v13  ;;  %3211 = vmatprep.subr.bf16.mxu1 %v3574_v15  ;;  %3360 = vpow2.f32 %v1599_v56  ;;  %v2015_v13 = vsub.f32 %v4159_v9, %v4237_v24 }
 0xca3   :  { %v2016_v27 = vmul.f32 1.442695, %v2015_v13 }
 0xca7   :  { %v3353_v14 = vpop.eup %3352  ;;  %3202 = vmatmul.mubr.msk.bf16.vlgmr.msra.gmra.mrb[72].mxu1 %vm248_vm2, %v2279_v28 }
 0xca8   :  { %3212 = vmatpush3.bf16.msra.mxu1 %v2416_v18  ;;  %v2403_v19 = vsel %vm248_vm2, %v3353_v14, 0.0  ;;  %3213 = vmatprep.mubr.msk.bf16.mxu1 %vm3575_vm1, %v3574_v15  ;;  %v2408_v22 = vpack.c.bf16 %v3353_v14, %v3353_v14  ;;  %v3355_v35 = vpop.eup %3354  ;;  %v1751_v18 = vrot.slane %v4294_v34, %v1718_v3 }
 0xca9   :  { %2404 = vadd.xlane.f32.xlu1 %v2403_v19  ;;  %3225 = vmatprep.subr.bf16.mxu1 %v3574_v15  ;;  %v1472_v10 = vmul.f32 %v3355_v35, %v4299_v50  ;;  %v3357_v42 = vpop.eup %3356  ;;  %v2142_v19 = vsub.f32 %v4232_v5, %v4248_v40 }
 0xcaa   :  { %v4308_v59 = vpop.eup %3358 }
 0xcab   :  { %v3361_v2 = vpop.eup %3360  ;;  %v2143_v30 = vmul.f32 1.442695, %v2142_v19 }
 0xcac   :  { %v1611_v7 = vmul.f32 %v3361_v2, %v4318_v17 }
 0xcad   :  { %1463 = vadd.xlane.f32.xlu1 %v1462_v51 }
 0xcaf   :  { %3214 = vmatmul.mubr.msk.bf16.vlgmr.msra.gmra.mrb[76].mxu1 %vm248_vm2, %v2408_v22 }
 0xcb0   :  { %3229 = vmatprep.mubr.msk.bf16.mxu1 %vm3575_vm1, %v3574_v15 }
 0xcb1   :  { %2019 = vadd.xlane.f32.xlu1 %v2018_v23 }
 0xcd6   :  { %v1516_v37 = vpop.f32.mrb[48].mxu1 }
 0xcd7   :  { %v1517_v39 = vadd.f32 %v1516_v37, %v1472_v10  ;;  %v3131_v20 = vpop.f32.mrb[49].mxu1  ;;  %v1892_v37 = vrot.slane %v4294_v34, %v1859_v33 }
 0xcd8   :  { %v1519_v41 = vpop.f32.mrb[50].mxu1 }
 0xcd9   :  { %v3132_v43 = vpop.f32.mrb[51].mxu1 }
 0xd02   :  { %v1603_v44 = vpop.xlane.xlu1 %1602 }
 0xd03   :  { %v1604_v4 = vadd.f32 %v3361_v2, %v1603_v44 }
 0xd0e   :  { %v1744_v47 = vpop.xlane.xlu1 %1743 }
 0xd16   :  { %v1885_v54 = vpop.xlane.xlu1 %1884 }
 0xd17   :  { %v1886_v38 = vadd.f32 %v3357_v42, %v1885_v54 }
 0xd26   :  { %v2147_v33 = vpop.xlane.xlu0 %2146 }
 0xd2e   :  { %v4306_v58 = vpop.xlane.xlu1 %2275 }
 0xd36   :  { %v2405_v16 = vpop.xlane.xlu1 %2404 }
 0xd37   :  { %v4313_v60 = vadd.f32 %v4308_v59, %v2405_v16 }
 0xd3a   :  { %v1464_v49 = vpop.xlane.xlu1 %1463 }
 0xd3b   :  { %v1465_v46 = vadd.f32 %v3355_v35, %v1464_v49 }
 0xd3d   :  { %3362 = vrcp.f32 %v1465_v46 }
 0xd3e   :  { %3364 = vpow2.f32 %v1740_v63  ;;  %v2020_v3 = vpop.xlane.xlu1 %2019 }
 0xd3f   :  { %3366 = vrcp.f32 %v1604_v4 }
 0xd47   :  { %v3363_v1 = vpop.eup %3362 }
 0xd48   :  { %v3365_v6 = vpop.eup %3364  ;;  %v1522_v29 = vmul.f32 %v3363_v1, %v1517_v39  ;;  %v1893_v39 = vmul.f32 %v3357_v42, %v1892_v37 }
 0xd49   :  { %v1745_v11 = vadd.f32 %v3365_v6, %v1744_v47  ;;  %v1654_v21 = vpop.f32.mrb[52].mxu1  ;;  %v3367_v61 = vpop.eup %3366  ;;  %v1752_v51 = vmul.f32 %v3365_v6, %v1751_v18 }
 0xd4a   :  { %1523 = vst.msk [vmem:[#allocation2] sm:$0xff] %vm248_vm2, %v1522_v29  ;;  %v1655_v36 = vadd.f32 %v1654_v21, %v1611_v7  ;;  %v3143_v12 = vpop.f32.mrb[53].mxu1 }
 0xd4b   :  { %v1657_v57 = vpop.f32.mrb[54].mxu1  ;;  %3368 = vrcp.f32 %v1745_v11  ;;  %v3287_v12 = vld [vmem:[%s4446_s11 + $0x8] sm:$0xff]  }
 0xd4c   :  { %v1660_v28 = vmul.f32 %v3367_v61, %v1655_v36  ;;  %v3144_v14 = vpop.f32.mrb[55].mxu1  ;;  %3370 = vpow2.f32 %v2016_v27 }
 0xd4d   :  { %3372 = vrcp.f32 %v1886_v38 }
 0xd4e   :  { %1662 = vrot.lane.b32.xlu1 %v1660_v28, %s3587_s23  ;;  %3374 = vpow2.f32 %v2143_v30 }
 0xd55   :  { %v1795_v22 = vpop.f32.mrb[56].mxu1  ;;  %v3369_v24 = vpop.eup %3368 }
 0xd56   :  { %v1796_v23 = vadd.f32 %v1795_v22, %v1752_v51  ;;  %v3155_v9 = vpop.f32.mrb[57].mxu1  ;;  %v3371_v5 = vpop.eup %3370 }
 0xd57   :  { %v1798_v31 = vpop.f32.mrb[58].mxu1  ;;  %v2021_v20 = vadd.f32 %v3371_v5, %v2020_v3  ;;  %v3373_v45 = vpop.eup %3372  ;;  %v2024_v42 = vmul.f32 %v3371_v5, %v4299_v50  ;;  %v3289_v3 = vld [vmem:[%s4449_s14 + $0x8] sm:$0xff]  }
 0xd58   :  { %v1801_v35 = vmul.f32 %v3369_v24, %v1796_v23  ;;  %v3156_v10 = vpop.f32.mrb[59].mxu1  ;;  %v3375_v34 = vpop.eup %3374 }
 0xd59   :  { %3376 = vrcp.f32 %v2021_v20  ;;  %v2148_v54 = vadd.f32 %v3375_v34, %v2147_v33  ;;  %v2151_v52 = vmul.f32 %v3375_v34, %v4318_v17 }
 0xd5a   :  { %1803 = vrot.lane.b32.xlu1 %v1801_v35, %s3568_s21  ;;  %3378 = vpow2.f32 %v2272_v25 }
 0xd5b   :  { %3380 = vrcp.f32 %v2148_v54 }
 0xd5d   :  { %v1936_v40 = vpop.f32.mrb[60].mxu1 }
 0xd5e   :  { %v1937_v41 = vadd.f32 %v1936_v40, %v1893_v39  ;;  %v3167_v43 = vpop.f32.mrb[61].mxu1 }
 0xd5f   :  { %v1939_v44 = vpop.f32.mrb[62].mxu1 }
 0xd60   :  { %v1942_v47 = vmul.f32 %v3373_v45, %v1937_v41  ;;  %v3168_v26 = vpop.f32.mrb[63].mxu1 }
 0xd63   :  { %v3377_v56 = vpop.eup %3376 }
 0xd64   :  { %v3379_v16 = vpop.eup %3378 }
 0xd65   :  { %v2277_v48 = vadd.f32 %v3379_v16, %v4306_v58  ;;  %v3381_v50 = vpop.eup %3380  ;;  %v2280_v29 = vmul.f32 %v3379_v16, %v1751_v18  ;;  %v3286_v58 = vld [vmem:[%s4446_s11] sm:$0xff]  }
 0xd66   :  { %3218 = vmatpush3.bf16.msra.mxu0 %v3286_v58 }
 0xd67   :  { %3382 = vrcp.f32 %v2277_v48  ;;  %3219 = vmatprep.subr.bf16.mxu0 %v3574_v15 }
 0xd68   :  { %3384 = vrcp.f32 %v4313_v60  ;;  %v2409_v60 = vmul.f32 %v4308_v59, %v1892_v37  ;;  %v3288_v37 = vld [vmem:[%s4449_s14] sm:$0xff]  }
 0xd69   :  { %3226 = vmatpush3.bf16.msra.mxu1 %v3288_v37  ;;  %v3290_v37 = vld [vmem:[%s4451_s16] sm:$0xff]  }
 0xd6a   :  { %v2068_v38 = vpop.f32.mrb[64].mxu1  ;;  %3220 = vmatpush3.bf16.msra.mxu0 %v3287_v12  ;;  %3227 = vmatprep.subr.bf16.mxu1 %v3574_v15 }
 0xd6b   :  { %v2069_v53 = vadd.f32 %v2068_v38, %v2024_v42  ;;  %v3179_v55 = vpop.f32.mrb[65].mxu1  ;;  %3233 = vmatprep.subr.bf16.mxu0 %v3574_v15 }
 0xd6c   :  { %v2071_v8 = vpop.f32.mrb[66].mxu1 }
 0xd6d   :  { %v2074_v63 = vmul.f32 %v3377_v56, %v2069_v53  ;;  %v3180_v32 = vpop.f32.mrb[67].mxu1  ;;  %3228 = vmatpush3.bf16.msra.mxu1 %v3289_v3  ;;  %v3291_v3 = vld [vmem:[%s4451_s16 + $0x8] sm:$0xff]  }
 0xd6f   :  { %2075 = vst.msk [vmem:[#allocation2 + $0x8] sm:$0xff] %vm248_vm2, %v2074_v63 }
 0xd71   :  { %v3383_v21 = vpop.eup %3382 }
 0xd72   :  { %v2194_v49 = vpop.f32.mrb[68].mxu1  ;;  %v3385_v27 = vpop.eup %3384 }
 0xd73   :  { %v2195_v46 = vadd.f32 %v2194_v49, %v2151_v52  ;;  %v3191_v2 = vpop.f32.mrb[69].mxu1 }
 0xd74   :  { %v2197_v4 = vpop.f32.mrb[70].mxu1 }
 0xd75   :  { %v2200_v1 = vmul.f32 %v3381_v50, %v2195_v46  ;;  %v3192_v6 = vpop.f32.mrb[71].mxu1 }
 0xd77   :  { %2202 = vrot.lane.b32.xlu0 %v2200_v1, %s3587_s23 }
 0xd7a   :  { %v2323_v7 = vpop.f32.mrb[72].mxu1 }
 0xd7b   :  { %v2324_v11 = vadd.f32 %v2323_v7, %v2280_v29  ;;  %v3203_v17 = vpop.f32.mrb[73].mxu1 }
 0xd7c   :  { %v2326_v36 = vpop.f32.mrb[74].mxu1 }
 0xd7d   :  { %v2329_v61 = vmul.f32 %v3383_v21, %v2324_v11  ;;  %v3204_v13 = vpop.f32.mrb[75].mxu1 }
 0xd7f   :  { %2331 = vrot.lane.b32.xlu1 %v2329_v61, %s3568_s21 }
 0xd82   :  { %v2452_v57 = vpop.f32.mrb[76].mxu1 }
 0xd83   :  { %v2453_v28 = vadd.f32 %v2452_v57, %v2409_v60  ;;  %1944 = vrot.lane.b32.xlu1 %v1942_v47, %s3588_s26  ;;  %v3215_v14 = vpop.f32.mrb[77].mxu1 }
 0xd84   :  { %v2455_v18 = vpop.f32.mrb[78].mxu1 }
 0xd85   :  { %v2458_v19 = vmul.f32 %v3385_v27, %v2453_v28  ;;  %v3216_v51 = vpop.f32.mrb[79].mxu1 }
 0xd87   :  { %2460 = vrot.lane.b32.xlu0 %v2458_v19, %s3588_s26 }
 0xdc0   :  { %v1663_v22 = vpop.permute.xlu1 %1662 }
 0xdc1   :  { %1665 = vst.msk [vmem:[#allocation2] sm:$0xff] %vm471_vm4, %v1663_v22 }
 0xdcc   :  { %v1804_v23 = vpop.permute.xlu1 %1803 }
 0xdcd   :  { %1806 = vst.msk [vmem:[#allocation2] sm:$0xff] %vm587_vm5, %v1804_v23 }
 0xde9   :  { %v2203_v59 = vpop.permute.xlu0 %2202 }
 0xdea   :  { %2205 = vst.msk [vmem:[#allocation2 + $0x8] sm:$0xff] %vm471_vm4, %v2203_v59 }
 0xdf1   :  { %v2332_v9 = vpop.permute.xlu1 %2331 }
 0xdf2   :  { %2334 = vst.msk [vmem:[#allocation2 + $0x8] sm:$0xff] %vm587_vm5, %v2332_v9 }
 0xdf5   :  { %v1945_v24 = vpop.permute.xlu1 %1944 }
 0xdf6   :  { %1947 = vst.msk [vmem:[#allocation2] sm:$0xff] %vm703_vm6, %v1945_v24 }
 0xdf9   :  { %v2461_v30 = vpop.permute.xlu0 %2460 }
 0xdfa   :  { %2463 = vst.msk [vmem:[#allocation2 + $0x8] sm:$0xff] %vm703_vm6, %v2461_v30 }
 0xdfd   :  { %v2464_v31 = vld [vmem:[#allocation2] sm:$0xff] }
 0xe01   :  { %v2465_v35 = vld [vmem:[#allocation2 + $0x8] sm:$0xff] }
 0xe02   :  { %v2466_v10 = vpack.c.bf16 %v2465_v35, %v2464_v31 }
 0xe04   :  { %3222 = vmatmul.mubr.msk.bf16.vlgmr.msra.gmra.mrb[64].mxu0 %vm140_vm0, %v2466_v10 }
 0xe05   :  { %3249 = vmatprep.mubr.msk.bf16.mxu0 %vm3575_vm1, %v3574_v15  ;;  %3234 = vmatpush3.bf16.msra.mxu0 %v3290_v37 }
 0xe06   :  { %3235 = vmatprep.subr.bf16.mxu0 %v3574_v15 }
 0xe09   :  { %3236 = vmatpush3.bf16.msra.mxu0 %v3291_v3 }
 0xe0a   :  { %3237 = vmatprep.subr.bf16.mxu0 %v3574_v15 }
 0xed7   :  { %v2520_v39 = vpop.f32.mrb[64].mxu0 }
 0xed8   :  { %v3223_v5 = vpop.f32.mrb[65].mxu0  ;;  %v4372_v20 = vadd.f32 %v2520_v39, %v3989_v62 }
 0xed9   :  { %v2523_v40 = vpop.f32.mrb[66].mxu0 }
 0xeda   :  { %v4375_v41 = vadd.f32 %v2523_v40, %v3992_v0  ;;  %v3224_v43 = vpop.f32.mrb[67].mxu0 }
 0xedc   :  { %v2527_v45 = vpack.c.bf16 %v4375_v41, %v4372_v20 }
 0xede   :  { %3230 = vmatmul.mubr.msk.bf16.vlgmr.msra.gmra.mrb[80].mxu1 %vm140_vm0, %v2527_v45 }
 0xfb1   :  { %v2581_v25 = vpop.f32.mrb[80].mxu1 }
 0xfb2   :  { %v2590_v44 = vmul.f32 0.70710677, %v2581_v25  ;;  %v3231_v47 = vpop.f32.mrb[81].mxu1  ;;  %v2588_v23 = vmul.f32 0.5, %v2581_v25 }
 0xfb3   :  { %v2584_v26 = vpop.f32.mrb[82].mxu1 }
 0xfb4   :  { %v2592_v33 = vand.u32 2147483647, %v2590_v44  ;;  %v2591_v34 = vmul.f32 0.70710677, %v2584_v26  ;;  %v3232_v54 = vpop.f32.mrb[83].mxu1  ;;  %vm2632_vm7 = vcmp.lt.f32.partialorder %v2590_v44, 0.0 }
 0xfb5   :  { %v2589_v31 = vmul.f32 0.5, %v2584_v26  ;;  %v3292_v26 = vld [vmem:[%s4451_s16 + $0x10] sm:$0xff]   ;;  %v3295_v54 = vld [vmem:[%s4451_s16 + $0x28] sm:$0xff]  }
 0xfb6   :  { %v2594_v42 = vmul.f32 0.3275911, %v2592_v33  ;;  %v2593_v38 = vand.u32 2147483647, %v2591_v34  ;;  %v2620_v55 = vsub.f32 0.0, %v2592_v33  ;;  %vm2633_vm8 = vcmp.lt.f32.partialorder %v2591_v34, 0.0  ;;  %3238 = vmatpush3.bf16.msra.mxu0 %v3292_v26 }
 0xfb7   :  { %3239 = vmatprep.subr.bf16.mxu0 %v3574_v15  ;;  %v3294_v34 = vld [vmem:[%s4451_s16 + $0x20] sm:$0xff]  }
 0xfb8   :  { %v2596_v62 = vadd.f32 1.0, %v2594_v42  ;;  %v2595_v53 = vmul.f32 0.3275911, %v2593_v38  ;;  %v2621_v56 = vsub.f32 0.0, %v2593_v38  ;;  %v2622_v16 = vmul.f32 %v2620_v55, %v2592_v33  ;;  %v3293_v33 = vld [vmem:[%s4451_s16 + $0x18] sm:$0xff]   ;;  %v3296_v42 = vld [vmem:[%s4451_s16 + $0x30] sm:$0xff]  }
 0xfba   :  { %3386 = vrcp.f32 %v2596_v62  ;;  %v2597_v0 = vadd.f32 1.0, %v2595_v53  ;;  %v2623_v52 = vmul.f32 %v2621_v56, %v2593_v38  ;;  %v2624_v49 = vmul.f32 1.442695, %v2622_v16  ;;  %3240 = vmatpush3.bf16.msra.mxu0 %v3293_v33  ;;  %v3297_v38 = vld [vmem:[%s4451_s16 + $0x38] sm:$0xff]  }
 0xfbb   :  { %3241 = vmatprep.subr.bf16.mxu0 %v3574_v15 }
 0xfbc   :  { %3388 = vrcp.f32 %v2597_v0  ;;  %v2626_v1 = vmul.f32 1.442695, %v2623_v52 }
 0xfbd   :  { %3390 = vpow2.f32 %v2624_v49 }
 0xfbe   :  { %3392 = vpow2.f32 %v2626_v1  ;;  %3242 = vmatpush3.bf16.msra.mxu0 %v3294_v34 }
 0xfbf   :  { %3243 = vmatprep.subr.bf16.mxu0 %v3574_v15 }
 0xfc2   :  { %3244 = vmatpush3.bf16.msra.mxu0 %v3295_v54 }
 0xfc3   :  { %3245 = vmatprep.subr.bf16.mxu0 %v3574_v15 }
 0xfc4   :  { %v3387_v8 = vpop.eup %3386 }
 0xfc5   :  { %v2602_v63 = vmul.f32 1.0614054, %v3387_v8 }
 0xfc6   :  { %v3389_v32 = vpop.eup %3388  ;;  %3246 = vmatpush3.bf16.msra.mxu0 %v3296_v42 }
 0xfc7   :  { %v2604_v48 = vadd.f32 -1.4531521, %v2602_v63  ;;  %v2603_v46 = vmul.f32 1.0614054, %v3389_v32  ;;  %v3391_v13 = vpop.eup %3390  ;;  %3247 = vmatprep.subr.bf16.mxu0 %v3574_v15 }
 0xfc8   :  { %v3393_v14 = vpop.eup %3392 }
 0xfc9   :  { %v2606_v2 = vmul.f32 %v3387_v8, %v2604_v48  ;;  %v2605_v50 = vadd.f32 -1.4531521, %v2603_v46  ;;  %v2892_v48 = vld [vmem:[%s4450_s15] ss:$0 sm:$0xff]  ;;  %s3589_s15 = smov [#allocation14]  }
 0xfca   :  { %3248 = vmatpush3.bf16.msra.mxu0 %v3297_v38  ;;  %s2821_s16 = sshll.u32 %s3589_s15, 4  ;;  %s2822_s16 = int_to_ptr.vmem [resolvable:$true] %s2821_s16 }
 0xfcb   :  { %v2608_v4 = vadd.f32 1.4214138, %v2606_v2  ;;  %v2607_v6 = vmul.f32 %v3389_v32, %v2605_v50  ;;  %s3534_s0 = scalar_lea.vmem %s2822_s16, 256  ;;  %p3539_p7 = scmp.lt.s32.totalorder %s2822_s16, %s2822_s16 }
 0xfcc   :  { %p3535_p6 = scmp.ne.s32.totalorder %s2822_s16, %s3534_s0  ;;  %p3540_p8 = scmp.lt.s32.totalorder %s3534_s0, %s3534_s0 }
 0xfcd   :  { %v2610_v29 = vmul.f32 %v3387_v8, %v2608_v4  ;;  %v2609_v7 = vadd.f32 1.4214138, %v2607_v6 }
 0xfce   :  { %p3541_p9 = por %p3540_p8, %p3539_p7 }
 0xfcf   :  { %v2612_v58 = vadd.f32 -0.28449672, %v2610_v29  ;;  %v2611_v11 = vmul.f32 %v3389_v32, %v2609_v7 }
 0xfd0   :  { %p3542_p10 = pnand %p3541_p9, %p3535_p6 }
 0xfd1   :  { %v2614_v17 = vmul.f32 %v3387_v8, %v2612_v58  ;;  %v2613_v21 = vadd.f32 -0.28449672, %v2611_v11 }
 0xfd3   :  { %v2616_v36 = vadd.f32 0.2548296, %v2614_v17  ;;  %v2615_v12 = vmul.f32 %v3389_v32, %v2613_v21 }
 0xfd5   :  { %v2618_v61 = vmul.f32 %v3387_v8, %v2616_v36  ;;  %v2617_v60 = vadd.f32 0.2548296, %v2615_v12 }
 0xfd7   :  { %v2628_v57 = vmul.f32 %v3391_v13, %v2618_v61  ;;  %v2619_v28 = vmul.f32 %v3389_v32, %v2617_v60 }
 0xfd9   :  { %v2630_v27 = vsub.f32 1.0, %v2628_v57  ;;  %v2629_v18 = vmul.f32 %v3393_v14, %v2619_v28 }
 0xfdb   :  { %v2634_v19 = vsub.f32 0.0, %v2630_v27  ;;  %v2631_v51 = vsub.f32 1.0, %v2629_v18 }
 0xfdd   :  { %v2636_v22 = vsel %vm2632_vm7, %v2634_v19, %v2630_v27  ;;  %v2635_v9 = vsub.f32 0.0, %v2631_v51 }
 0xfde   :  { %v2638_v59 = vadd.f32 1.0, %v2636_v22  ;;  %v2901_v22 = vld [vmem:[#allocation9] ss:$0 sm:$0xff] }
 0xfdf   :  { %v2637_v30 = vsel %vm2633_vm8, %v2635_v9, %v2631_v51 }
 0xfe0   :  { %v2640_v24 = vmul.f32 %v2638_v59, %v2588_v23  ;;  %v2639_v35 = vadd.f32 1.0, %v2637_v30 }
 0xfe2   :  { %2643 = vadd.xlane.f32.xlu1 %v2640_v24  ;;  %v2641_v10 = vmul.f32 %v2639_v35, %v2589_v31 }
 0xfe4   :  { %2645 = vadd.xlane.f32.xlu0 %v2641_v10 }
0x106f   :  { %v2644_v39 = vpop.xlane.xlu1 %2643 }
0x1070   :  { %v2648_v5 = vmul.f32 0.0078125, %v2644_v39 }
0x1071   :  { %v2646_v43 = vpop.xlane.xlu0 %2645 }
0x1072   :  { %v2650_v40 = vsub.f32 %v2640_v24, %v2648_v5  ;;  %v2649_v45 = vmul.f32 0.0078125, %v2646_v43 }
0x1074   :  { %v2652_v25 = vmul.f32 %v2650_v40, %v2650_v40  ;;  %v2651_v44 = vsub.f32 %v2641_v10, %v2649_v45 }
0x1076   :  { %2654 = vadd.xlane.f32.xlu0 %v2652_v25  ;;  %v2653_v47 = vmul.f32 %v2651_v44, %v2651_v44 }
0x107a   :  { %2656 = vadd.xlane.f32.xlu0 %v2653_v47 }
0x1103   :  { %v2655_v62 = vpop.xlane.xlu0 %2654 }
0x1104   :  { %v2658_v53 = vmul.f32 0.0078125, %v2655_v62 }
0x1106   :  { %v2660_v0 = vadd.f32 1e-05, %v2658_v53 }
0x1107   :  { %v2657_v55 = vpop.xlane.xlu0 %2656 }
0x1108   :  { %3394 = vrsqrt.f32 %v2660_v0  ;;  %v2659_v56 = vmul.f32 0.0078125, %v2657_v55 }
0x110a   :  { %v2661_v8 = vadd.f32 1e-05, %v2659_v56 }
0x110c   :  { %3396 = vrsqrt.f32 %v2661_v8 }
0x1112   :  { %v3395_v16 = vpop.eup %3394 }
0x1113   :  { %v2664_v63 = vmul.f32 %v3395_v16, %v2650_v40 }
0x1115   :  { %v2672_v49 = vmul.f32 %v2892_v48, %v2664_v63 }
0x1116   :  { %v3397_v32 = vpop.eup %3396 }
0x1117   :  { %v2665_v52 = vmul.f32 %v3397_v32, %v2651_v44 }
0x1119   :  { %v2673_v46 = vmul.f32 %v2892_v48, %v2665_v52 }
0x111b   :  { %v2674_v15 = vpack.c.bf16 %v2673_v46, %v2672_v49 }
0x111d   :  { %3250 = vmatmul.mubr.bf16.vlgmr.msra.gmra.mrb[68].mxu0 %v2674_v15 }
0x11f0   :  { %v2773_v2 = vpop.f32.mrb[68].mxu0 }
0x11f1   :  { %v2774_v50 = vadd.f32 %v2773_v2, %v4372_v20  ;;  %v3251_v4 = vpop.f32.mrb[69].mxu0 }
0x11f2   :  { %v2776_v1 = vpop.f32.mrb[70].mxu0 }
0x11f3   :  { %v2777_v6 = vadd.f32 %v2776_v1, %v4375_v41  ;;  %v3252_v29 = vpop.f32.mrb[71].mxu0  ;;  %v2780_v7 = vsel %vm140_vm0, %v2774_v50, 0.0 }
0x11f4   :  { %2781 = vadd.xlane.f32.xlu1 %v2780_v7 }
0x11f5   :  { %v2783_v58 = vsel %vm140_vm0, %v2777_v6, 0.0 }
0x11f6   :  { %2784 = vadd.xlane.f32.xlu0 %v2783_v58 }
0x1281   :  { %v2782_v11 = vpop.xlane.xlu1 %2781 }
0x1282   :  { %v2786_v17 = vmul.f32 0.03125, %v2782_v11 }
0x1283   :  { %v2785_v21 = vpop.xlane.xlu0 %2784 }
0x1284   :  { %v2788_v36 = vsub.f32 %v2774_v50, %v2786_v17  ;;  %v2787_v12 = vmul.f32 0.03125, %v2785_v21 }
0x1286   :  { %v2789_v61 = vsub.f32 %v2777_v6, %v2787_v12  ;;  %v2790_v13 = vmul.f32 %v2788_v36, %v2788_v36 }
0x1288   :  { %v2792_v20 = vsel %vm140_vm0, %v2790_v13, 0.0  ;;  %v2791_v60 = vmul.f32 %v2789_v61, %v2789_v61 }
0x1289   :  { %2793 = vadd.xlane.f32.xlu1 %v2792_v20 }
0x128a   :  { %v2795_v41 = vsel %vm140_vm0, %v2791_v60, 0.0 }
0x128b   :  { %2796 = vadd.xlane.f32.xlu0 %v2795_v41 }
0x1316   :  { %v2794_v57 = vpop.xlane.xlu1 %2793 }
0x1317   :  { %v2798_v28 = vmul.f32 0.03125, %v2794_v57 }
0x1318   :  { %v2797_v14 = vpop.xlane.xlu0 %2796 }
0x1319   :  { %v2800_v27 = vadd.f32 1e-05, %v2798_v28  ;;  %v2799_v18 = vmul.f32 0.03125, %v2797_v14 }
0x131b   :  { %3398 = vrsqrt.f32 %v2800_v27  ;;  %v2801_v19 = vadd.f32 1e-05, %v2799_v18 }
0x131d   :  { %3400 = vrsqrt.f32 %v2801_v19 }
0x1325   :  { %v3399_v51 = vpop.eup %3398 }
0x1326   :  { %v2804_v23 = vmul.f32 %v3399_v51, %v2788_v36 }
0x1327   :  { %v3401_v59 = vpop.eup %3400 }
0x1328   :  { %v2805_v9 = vmul.f32 %v3401_v59, %v2789_v61  ;;  %v2812_v24 = vmul.f32 %v2901_v22, %v2804_v23 }
0x132a   :  { %v2813_v30 = vmul.f32 %v2901_v22, %v2805_v9  ;;  %2814 = vst.msk [vmem:[#allocation14] sm:$0xff] %vm140_vm0, %v2812_v24 }
0x132c   :  { %2815 = vst.msk [vmem:[#allocation14 + $0x8] sm:$0xff] %vm140_vm0, %v2813_v30 }
0x132d   :  { %3545 = shalt.err (!%p3542_p10)
}
0x132e   :  { %s3546_s1 = scalar_lea.hbm %s4452_s17, 256 }
0x132f   :  { %p3547_p11 = scmp.ne.s32.totalorder %s4452_s17, %s3546_s1  ;;  %p3550_p12 = scmp.lt.u32.totalorder %s3546_s1, %s4452_s17 }
0x1331   :  { %p3552_p13 = pnand %p3550_p12, %p3547_p11 }
0x1333   :  { %3555 = shalt.err (!%p3552_p13)
}
0x1334   :  { %s3590_s24 = smov 128  }
0x1335   :  { %2827 = dma.vmem_to_hbm [thread:$0]  %s2822_s16, 256, %s4452_s17, [#allocation5], %s3590_s24, %s3590_s24, %s3587_s23  }
0x1336   :  { %3564 = dma.done.wait [#allocation5], 256  }
0x1337   :  { %3565 = vsyncadd [#allocation5], 4294967040 }
0x1338   :  { %2831 = vsyncpa [#allocation4], 1 }
0x1339   :  { %2832 = vsyncpa [#allocation7], 1 }
0x133a   :  { %2833 = vsyncpa [#allocation10], 1 }
0x133b   :  { %2834 = vsyncpa [#allocation13], 1 }
0x133c   :  { %2835 = vsyncpa [#allocation5], 1 }

</bundles_post_ra>
